<compile_context>
chip_gen: v6e
topology: v6e:2x2x1
jax: 0.10.0
libtpu: 0.0.40
codegen_flags: <defaults>
</compile_context>

<pallas_src>
import functools
import math

import jax
import jax.numpy as jnp
from jax.experimental import pallas as pl
from jax.experimental.pallas import tpu as pltpu

_BN_EPS = 1e-5


def _round_up(x, m):
    return ((x + m - 1) // m) * m


# ----------------------------------------------------------------------------
# Fused Bottleneck kernel (one grid step == one image)
# ----------------------------------------------------------------------------

def _bottleneck_kernel(xp_ref, s1_ref, b1_ref, w1_ref, s2_ref, b2_ref, w2_ref,
                       o_ref, hp_ref, *, H, W, C_pad, inner):
    # xp_ref : (H, W, C_pad)     f32   channel-padded input  [x | zeros]
    # s1/b1  : (1, C_pad)        f32   folded BN1 scale/shift (zero-padded)
    # w1_ref : (C_pad, inner)    bf16  1x1 conv weight (zero rows for pad chans)
    # s2/b2  : (1, inner)        f32   folded BN2 scale/shift
    # w2_ref : (9, inner, C_pad) bf16  3x3 weights, output cols in [Cin, C_pad)
    # o_ref  : (H, W, C_pad)     f32   concatenated output slab
    # hp_ref : (H+2, W_pad, inner) f32 VMEM scratch with zero spatial halo

    xp = xp_ref[...]                                              # (H, W, C_pad)

    # ---- BN1 + ReLU fused prologue (VPU) ----
    a = jnp.maximum(xp * s1_ref[...].reshape(1, 1, C_pad)
                    + b1_ref[...].reshape(1, 1, C_pad), 0.0)

    # ---- 1x1 conv on the MXU (bf16 operands, f32 accumulation) ----
    h = jnp.dot(a.reshape(H * W, C_pad).astype(jnp.bfloat16), w1_ref[...],
                preferred_element_type=jnp.float32)               # (H*W, inner)

    # ---- BN2 + ReLU fused ----
    h = jnp.maximum(h * s2_ref[...] + b2_ref[...], 0.0)

    # ---- stage hidden activation into the zero-haloed VMEM scratch.
    #      Interior starts at column 8 (sublane-tile aligned store).
    hp_ref[...] = jnp.zeros_like(hp_ref)
    hp_ref[1:H + 1, 8:8 + W, :] = h.reshape(H, W, inner)

    # ---- 3x3 conv = 9 shifted-window matmuls accumulated in f32.
    #      The accumulator is seeded with the channel-padded input and the
    #      weights only touch columns [Cin, C_pad), so this IS the concat:
    #      columns [0, Cin) carry x through exactly (x + 0.0).
    acc = xp.reshape(H * W, C_pad)
    for kh in range(3):
        for kw in range(3):
            win = hp_ref[kh:kh + H, 7 + kw:7 + kw + W, :]
            acc = acc + jnp.dot(
                win.reshape(H * W, inner).astype(jnp.bfloat16),
                w2_ref[3 * kh + kw],
                preferred_element_type=jnp.float32)

    o_ref[...] = acc.reshape(H, W, C_pad)


# ----------------------------------------------------------------------------
# Wrapper: NCHW in -> NCHW out, matching torch.cat([x, bottleneck(x)], dim=1)
# ----------------------------------------------------------------------------

def bottleneck_forward(params, x_nchw):
    N, Cin, H, W = x_nchw.shape
    w1 = params["w1"]                          # (Cin, inner)
    w2 = params["w2"]                          # (3, 3, inner, growth)
    inner = w1.shape[1]
    growth = w2.shape[-1]
    C_out = Cin + growth
    # W must be a sublane multiple so in-kernel (H,W,C)<->(H*W,C) reshapes are
    # pure re-tilings; spatial tiles are small enough to live in VMEM whole.
    assert W % 8 == 0, "width must be a multiple of 8 for this kernel"
    W_pad = 8 + _round_up(W + 1, 8)            # staging width (aligned halo)

    # Fold eval-mode BatchNorm into per-channel scale / shift.
    s1 = params["bn1"]["gamma"] * jax.lax.rsqrt(params["bn1"]["var"] + _BN_EPS)
    b1 = params["bn1"]["beta"] - params["bn1"]["mean"] * s1
    s2 = params["bn2"]["gamma"] * jax.lax.rsqrt(params["bn2"]["var"] + _BN_EPS)
    b2 = params["bn2"]["beta"] - params["bn2"]["mean"] * s2

    # NCHW -> NHWC (channels on the lane axis), channel-pad to C_out so the
    # kernel's accumulator doubles as the concat slab.
    x_nhwc = jnp.transpose(x_nchw, (0, 2, 3, 1)).astype(jnp.float32)
    xp = jnp.pad(x_nhwc, ((0, 0), (0, 0), (0, 0), (0, growth)))

    s1p = jnp.pad(s1, (0, growth)).reshape(1, C_out)
    b1p = jnp.pad(b1, (0, growth)).reshape(1, C_out)
    w1p = jnp.pad(w1, ((0, growth), (0, 0))).astype(jnp.bfloat16)      # (C_out, inner)
    s2r = s2.reshape(1, inner)
    b2r = b2.reshape(1, inner)
    w2p = jnp.pad(w2.reshape(9, inner, growth),
                  ((0, 0), (0, 0), (Cin, 0))).astype(jnp.bfloat16)     # (9, inner, C_out)

    kernel = functools.partial(_bottleneck_kernel, H=H, W=W, C_pad=C_out,
                               inner=inner)

    out_nhwc = pl.pallas_call(
        kernel,
        out_shape=jax.ShapeDtypeStruct((N, H, W, C_out), jnp.float32),
        grid=(N,),
        in_specs=[
            pl.BlockSpec((None, H, W, C_out), lambda n: (n, 0, 0, 0)),
            pl.BlockSpec((1, C_out), lambda n: (0, 0)),
            pl.BlockSpec((1, C_out), lambda n: (0, 0)),
            pl.BlockSpec((C_out, inner), lambda n: (0, 0)),
            pl.BlockSpec((1, inner), lambda n: (0, 0)),
            pl.BlockSpec((1, inner), lambda n: (0, 0)),
            pl.BlockSpec((9, inner, C_out), lambda n: (0, 0, 0)),
        ],
        out_specs=pl.BlockSpec((None, H, W, C_out), lambda n: (n, 0, 0, 0)),
        scratch_shapes=[pltpu.VMEM((H + 2, W_pad, inner), jnp.float32)],
        compiler_params=pltpu.CompilerParams(
            dimension_semantics=("parallel",),
            vmem_limit_bytes=32 * 1024 * 1024),
    )(xp, s1p, b1p, w1p, s2r, b2r, w2p)

    return jnp.transpose(out_nhwc, (0, 3, 1, 2))                  # back to NCHW


# ----------------------------------------------------------------------------
# Pure-JAX reference (for a loose numerical check) and parameter init
# ----------------------------------------------------------------------------

def bottleneck_reference(params, x_nchw):
    x = x_nchw.astype(jnp.float32)
    s1 = params["bn1"]["gamma"] * jax.lax.rsqrt(params["bn1"]["var"] + _BN_EPS)
    b1 = params["bn1"]["beta"] - params["bn1"]["mean"] * s1
    s2 = params["bn2"]["gamma"] * jax.lax.rsqrt(params["bn2"]["var"] + _BN_EPS)
    b2 = params["bn2"]["beta"] - params["bn2"]["mean"] * s2
    a = jax.nn.relu(x * s1[None, :, None, None] + b1[None, :, None, None])
    h = jnp.einsum("nchw,ck->nkhw", a, params["w1"])
    h = jax.nn.relu(h * s2[None, :, None, None] + b2[None, :, None, None])
    y = jax.lax.conv_general_dilated(
        h, params["w2"], window_strides=(1, 1), padding=((1, 1), (1, 1)),
        dimension_numbers=("NCHW", "HWIO", "NCHW"))
    return jnp.concatenate([x, y], axis=1)


def init_params(key, in_channels, growth_rate):
    inner = 4 * growth_rate
    ks = jax.random.split(key, 10)

    def bn(kg, kb, km, kv, c):
        return dict(
            gamma=1.0 + 0.1 * jax.random.normal(kg, (c,), jnp.float32),
            beta=0.1 * jax.random.normal(kb, (c,), jnp.float32),
            mean=0.1 * jax.random.normal(km, (c,), jnp.float32),
            var=0.5 + jax.random.uniform(kv, (c,), dtype=jnp.float32))

    return dict(
        bn1=bn(ks[0], ks[1], ks[2], ks[3], in_channels),
        w1=jax.random.normal(ks[4], (in_channels, inner), jnp.float32)
           / math.sqrt(in_channels),
        bn2=bn(ks[5], ks[6], ks[7], ks[8], inner),
        w2=jax.random.normal(ks[9], (3, 3, inner, growth_rate), jnp.float32)
           / math.sqrt(9 * inner),
    )


# ----------------------------------------------------------------------------
# Main
# ----------------------------------------------------------------------------

if __name__ == "__main__":
    key = jax.random.PRNGKey(0)
    k_param, k_input = jax.random.split(key)

    in_channels, growth_rate = 24, 12          # inner_channel = 48
    N, H, W = 2, 16, 16

    params = init_params(k_param, in_channels, growth_rate)
    x = jax.random.normal(k_input, (N, in_channels, H, W), dtype=jnp.float32)

    fwd = jax.jit(bottleneck_forward)
    out = jax.block_until_ready(fwd(params, x))

    assert out.shape == (N, in_channels + growth_rate, H, W), out.shape
    assert bool(jnp.all(jnp.isfinite(out)))

    # Loose tolerance: MXU operands are bf16 (accumulation is f32); the x
    # passthrough half of the concat is exact.
    ref = bottleneck_reference(params, x)
    max_err = float(jnp.max(jnp.abs(out - ref)))
    assert max_err < 1e-1, f"max abs error vs reference: {max_err}"

    print("KERNEL_OK")
</pallas_src>

<mosaic_0001>
module attributes {stable_mosaic.version = 11 : i64} {
  func.func @_bottleneck_kernel(%arg0: i32, %arg1: memref<1x16x16x36xf32, #tpu.memory_space<vmem>>, %arg2: memref<1x36xf32, #tpu.memory_space<vmem>>, %arg3: memref<1x36xf32, #tpu.memory_space<vmem>>, %arg4: memref<36x48xbf16, #tpu.memory_space<vmem>>, %arg5: memref<1x48xf32, #tpu.memory_space<vmem>>, %arg6: memref<1x48xf32, #tpu.memory_space<vmem>>, %arg7: memref<9x48x36xbf16, #tpu.memory_space<vmem>>, %arg8: memref<1x16x16x36xf32, #tpu.memory_space<vmem>>, %arg9: memref<18x32x48xf32, #tpu.memory_space<vmem>>) attributes {dimension_semantics = [#tpu.dimension_semantics<parallel>], iteration_bounds = array<i64: 2>, scalar_prefetch = 0 : i64, scratch_operands = 1 : i64, tpu.core_type = #tpu.core_type<tc>, window_params = [{transform_indices = @transform_0, window_bounds = array<i64: 1, 16, 16, 36>}, {pipeline_mode = #tpu.pipeline_mode<synchronous>, transform_indices = @transform_1, window_bounds = array<i64: 1, 36>}, {pipeline_mode = #tpu.pipeline_mode<synchronous>, transform_indices = @transform_2, window_bounds = array<i64: 1, 36>}, {pipeline_mode = #tpu.pipeline_mode<synchronous>, transform_indices = @transform_3, window_bounds = array<i64: 36, 48>}, {pipeline_mode = #tpu.pipeline_mode<synchronous>, transform_indices = @transform_4, window_bounds = array<i64: 1, 48>}, {pipeline_mode = #tpu.pipeline_mode<synchronous>, transform_indices = @transform_5, window_bounds = array<i64: 1, 48>}, {pipeline_mode = #tpu.pipeline_mode<synchronous>, transform_indices = @transform_6, window_bounds = array<i64: 9, 48, 36>}, {transform_indices = @transform_7, window_bounds = array<i64: 1, 16, 16, 36>}]} {
    %c0 = arith.constant 0 : index
    %c0_0 = arith.constant 0 : index
    %c0_1 = arith.constant 0 : index
    %c0_2 = arith.constant 0 : index
    %0 = vector.load %arg1[%c0, %c0_0, %c0_1, %c0_2] : memref<1x16x16x36xf32, #tpu.memory_space<vmem>>, vector<1x16x16x36xf32>
    %1 = vector.shape_cast %0 : vector<1x16x16x36xf32> to vector<16x16x36xf32>
    %c0_3 = arith.constant 0 : index
    %c0_4 = arith.constant 0 : index
    %2 = vector.load %arg2[%c0_3, %c0_4] : memref<1x36xf32, #tpu.memory_space<vmem>>, vector<1x36xf32>
    %3 = vector.shape_cast %2 : vector<1x36xf32> to vector<1x1x36xf32>
    %4 = vector.broadcast %3 : vector<1x1x36xf32> to vector<16x16x36xf32>
    %5 = arith.mulf %1, %4 : vector<16x16x36xf32>
    %c0_5 = arith.constant 0 : index
    %c0_6 = arith.constant 0 : index
    %6 = vector.load %arg3[%c0_5, %c0_6] : memref<1x36xf32, #tpu.memory_space<vmem>>, vector<1x36xf32>
    %7 = vector.shape_cast %6 : vector<1x36xf32> to vector<1x1x36xf32>
    %8 = vector.broadcast %7 : vector<1x1x36xf32> to vector<16x16x36xf32>
    %9 = arith.addf %5, %8 : vector<16x16x36xf32>
    %cst = arith.constant 0.000000e+00 : f32
    %10 = vector.broadcast %cst : f32 to vector<16x16x36xf32>
    %11 = arith.maximumf %9, %10 : vector<16x16x36xf32>
    %12 = vector.shape_cast %11 : vector<16x16x36xf32> to vector<256x36xf32>
    %13 = arith.truncf %12 : vector<256x36xf32> to vector<256x36xbf16>
    %c0_7 = arith.constant 0 : index
    %c0_8 = arith.constant 0 : index
    %14 = vector.load %arg4[%c0_7, %c0_8] : memref<36x48xbf16, #tpu.memory_space<vmem>>, vector<36x48xbf16>
    %cst_9 = arith.constant dense<0.000000e+00> : vector<256x48xf32>
    %15 = tpu.matmul %13, %14, %cst_9 {dimension_numbers = #tpu.dot_dimension_numbers<[1], [0], [0], [1], [0, 0, 1, 1], [], []>} : vector<256x36xbf16>, vector<36x48xbf16>, vector<256x48xf32> -> vector<256x48xf32>
    %c0_10 = arith.constant 0 : index
    %c0_11 = arith.constant 0 : index
    %16 = vector.load %arg5[%c0_10, %c0_11] : memref<1x48xf32, #tpu.memory_space<vmem>>, vector<1x48xf32>
    %17 = vector.broadcast %16 : vector<1x48xf32> to vector<256x48xf32>
    %18 = arith.mulf %15, %17 : vector<256x48xf32>
    %c0_12 = arith.constant 0 : index
    %c0_13 = arith.constant 0 : index
    %19 = vector.load %arg6[%c0_12, %c0_13] : memref<1x48xf32, #tpu.memory_space<vmem>>, vector<1x48xf32>
    %20 = vector.broadcast %19 : vector<1x48xf32> to vector<256x48xf32>
    %21 = arith.addf %18, %20 : vector<256x48xf32>
    %cst_14 = arith.constant 0.000000e+00 : f32
    %22 = vector.broadcast %cst_14 : f32 to vector<256x48xf32>
    %23 = arith.maximumf %21, %22 : vector<256x48xf32>
    %cst_15 = arith.constant 0.000000e+00 : f32
    %24 = vector.broadcast %cst_15 : f32 to vector<18x32x48xf32>
    %c0_16 = arith.constant 0 : index
    %c0_17 = arith.constant 0 : index
    %c0_18 = arith.constant 0 : index
    %25 = vector.load %arg9[%c0_16, %c0_17, %c0_18] : memref<18x32x48xf32, #tpu.memory_space<vmem>>, vector<18x32x48xf32>
    tpu.vector_store %arg9[%c0_16, %c0_17, %c0_18], %24 {strides = array<i32>} : memref<18x32x48xf32, #tpu.memory_space<vmem>>, vector<18x32x48xf32>,
    %26 = vector.shape_cast %23 : vector<256x48xf32> to vector<16x16x48xf32>
    %c1 = arith.constant 1 : index
    %c8 = arith.constant 8 : index
    %c0_19 = arith.constant 0 : index
    %27 = vector.load %arg9[%c1, %c8, %c0_19] : memref<18x32x48xf32, #tpu.memory_space<vmem>>, vector<16x16x48xf32>
    tpu.vector_store %arg9[%c1, %c8, %c0_19], %26 {strides = array<i32>} : memref<18x32x48xf32, #tpu.memory_space<vmem>>, vector<16x16x48xf32>,
    %28 = vector.shape_cast %1 : vector<16x16x36xf32> to vector<256x36xf32>
    %c0_20 = arith.constant 0 : index
    %c7 = arith.constant 7 : index
    %c0_21 = arith.constant 0 : index
    %29 = vector.load %arg9[%c0_20, %c7, %c0_21] : memref<18x32x48xf32, #tpu.memory_space<vmem>>, vector<16x16x48xf32>
    %30 = vector.shape_cast %29 : vector<16x16x48xf32> to vector<256x48xf32>
    %31 = arith.truncf %30 : vector<256x48xf32> to vector<256x48xbf16>
    %c0_22 = arith.constant 0 : index
    %c0_23 = arith.constant 0 : index
    %c0_24 = arith.constant 0 : index
    %32 = vector.load %arg7[%c0_22, %c0_23, %c0_24] : memref<9x48x36xbf16, #tpu.memory_space<vmem>>, vector<1x48x36xbf16>
    %33 = vector.shape_cast %32 : vector<1x48x36xbf16> to vector<48x36xbf16>
    %cst_25 = arith.constant dense<0.000000e+00> : vector<256x36xf32>
    %34 = tpu.matmul %31, %33, %cst_25 {dimension_numbers = #tpu.dot_dimension_numbers<[1], [0], [0], [1], [0, 0, 1, 1], [], []>} : vector<256x48xbf16>, vector<48x36xbf16>, vector<256x36xf32> -> vector<256x36xf32>
    %35 = arith.addf %28, %34 : vector<256x36xf32>
    %c0_26 = arith.constant 0 : index
    %c8_27 = arith.constant 8 : index
    %c0_28 = arith.constant 0 : index
    %36 = vector.load %arg9[%c0_26, %c8_27, %c0_28] : memref<18x32x48xf32, #tpu.memory_space<vmem>>, vector<16x16x48xf32>
    %37 = vector.shape_cast %36 : vector<16x16x48xf32> to vector<256x48xf32>
    %38 = arith.truncf %37 : vector<256x48xf32> to vector<256x48xbf16>
    %c1_29 = arith.constant 1 : index
    %c0_30 = arith.constant 0 : index
    %c0_31 = arith.constant 0 : index
    %39 = vector.load %arg7[%c1_29, %c0_30, %c0_31] : memref<9x48x36xbf16, #tpu.memory_space<vmem>>, vector<1x48x36xbf16>
    %40 = vector.shape_cast %39 : vector<1x48x36xbf16> to vector<48x36xbf16>
    %cst_32 = arith.constant dense<0.000000e+00> : vector<256x36xf32>
    %41 = tpu.matmul %38, %40, %cst_32 {dimension_numbers = #tpu.dot_dimension_numbers<[1], [0], [0], [1], [0, 0, 1, 1], [], []>} : vector<256x48xbf16>, vector<48x36xbf16>, vector<256x36xf32> -> vector<256x36xf32>
    %42 = arith.addf %35, %41 : vector<256x36xf32>
    %c0_33 = arith.constant 0 : index
    %c9 = arith.constant 9 : index
    %c0_34 = arith.constant 0 : index
    %43 = vector.load %arg9[%c0_33, %c9, %c0_34] : memref<18x32x48xf32, #tpu.memory_space<vmem>>, vector<16x16x48xf32>
    %44 = vector.shape_cast %43 : vector<16x16x48xf32> to vector<256x48xf32>
    %45 = arith.truncf %44 : vector<256x48xf32> to vector<256x48xbf16>
    %c2 = arith.constant 2 : index
    %c0_35 = arith.constant 0 : index
    %c0_36 = arith.constant 0 : index
    %46 = vector.load %arg7[%c2, %c0_35, %c0_36] : memref<9x48x36xbf16, #tpu.memory_space<vmem>>, vector<1x48x36xbf16>
    %47 = vector.shape_cast %46 : vector<1x48x36xbf16> to vector<48x36xbf16>
    %cst_37 = arith.constant dense<0.000000e+00> : vector<256x36xf32>
    %48 = tpu.matmul %45, %47, %cst_37 {dimension_numbers = #tpu.dot_dimension_numbers<[1], [0], [0], [1], [0, 0, 1, 1], [], []>} : vector<256x48xbf16>, vector<48x36xbf16>, vector<256x36xf32> -> vector<256x36xf32>
    %49 = arith.addf %42, %48 : vector<256x36xf32>
    %c1_38 = arith.constant 1 : index
    %c7_39 = arith.constant 7 : index
    %c0_40 = arith.constant 0 : index
    %50 = vector.load %arg9[%c1_38, %c7_39, %c0_40] : memref<18x32x48xf32, #tpu.memory_space<vmem>>, vector<16x16x48xf32>
    %51 = vector.shape_cast %50 : vector<16x16x48xf32> to vector<256x48xf32>
    %52 = arith.truncf %51 : vector<256x48xf32> to vector<256x48xbf16>
    %c3 = arith.constant 3 : index
    %c0_41 = arith.constant 0 : index
    %c0_42 = arith.constant 0 : index
    %53 = vector.load %arg7[%c3, %c0_41, %c0_42] : memref<9x48x36xbf16, #tpu.memory_space<vmem>>, vector<1x48x36xbf16>
    %54 = vector.shape_cast %53 : vector<1x48x36xbf16> to vector<48x36xbf16>
    %cst_43 = arith.constant dense<0.000000e+00> : vector<256x36xf32>
    %55 = tpu.matmul %52, %54, %cst_43 {dimension_numbers = #tpu.dot_dimension_numbers<[1], [0], [0], [1], [0, 0, 1, 1], [], []>} : vector<256x48xbf16>, vector<48x36xbf16>, vector<256x36xf32> -> vector<256x36xf32>
    %56 = arith.addf %49, %55 : vector<256x36xf32>
    %c1_44 = arith.constant 1 : index
    %c8_45 = arith.constant 8 : index
    %c0_46 = arith.constant 0 : index
    %57 = vector.load %arg9[%c1_44, %c8_45, %c0_46] : memref<18x32x48xf32, #tpu.memory_space<vmem>>, vector<16x16x48xf32>
    %58 = vector.shape_cast %57 : vector<16x16x48xf32> to vector<256x48xf32>
    %59 = arith.truncf %58 : vector<256x48xf32> to vector<256x48xbf16>
    %c4 = arith.constant 4 : index
    %c0_47 = arith.constant 0 : index
    %c0_48 = arith.constant 0 : index
    %60 = vector.load %arg7[%c4, %c0_47, %c0_48] : memref<9x48x36xbf16, #tpu.memory_space<vmem>>, vector<1x48x36xbf16>
    %61 = vector.shape_cast %60 : vector<1x48x36xbf16> to vector<48x36xbf16>
    %cst_49 = arith.constant dense<0.000000e+00> : vector<256x36xf32>
    %62 = tpu.matmul %59, %61, %cst_49 {dimension_numbers = #tpu.dot_dimension_numbers<[1], [0], [0], [1], [0, 0, 1, 1], [], []>} : vector<256x48xbf16>, vector<48x36xbf16>, vector<256x36xf32> -> vector<256x36xf32>
    %63 = arith.addf %56, %62 : vector<256x36xf32>
    %c1_50 = arith.constant 1 : index
    %c9_51 = arith.constant 9 : index
    %c0_52 = arith.constant 0 : index
    %64 = vector.load %arg9[%c1_50, %c9_51, %c0_52] : memref<18x32x48xf32, #tpu.memory_space<vmem>>, vector<16x16x48xf32>
    %65 = vector.shape_cast %64 : vector<16x16x48xf32> to vector<256x48xf32>
    %66 = arith.truncf %65 : vector<256x48xf32> to vector<256x48xbf16>
    %c5 = arith.constant 5 : index
    %c0_53 = arith.constant 0 : index
    %c0_54 = arith.constant 0 : index
    %67 = vector.load %arg7[%c5, %c0_53, %c0_54] : memref<9x48x36xbf16, #tpu.memory_space<vmem>>, vector<1x48x36xbf16>
    %68 = vector.shape_cast %67 : vector<1x48x36xbf16> to vector<48x36xbf16>
    %cst_55 = arith.constant dense<0.000000e+00> : vector<256x36xf32>
    %69 = tpu.matmul %66, %68, %cst_55 {dimension_numbers = #tpu.dot_dimension_numbers<[1], [0], [0], [1], [0, 0, 1, 1], [], []>} : vector<256x48xbf16>, vector<48x36xbf16>, vector<256x36xf32> -> vector<256x36xf32>
    %70 = arith.addf %63, %69 : vector<256x36xf32>
    %c2_56 = arith.constant 2 : index
    %c7_57 = arith.constant 7 : index
    %c0_58 = arith.constant 0 : index
    %71 = vector.load %arg9[%c2_56, %c7_57, %c0_58] : memref<18x32x48xf32, #tpu.memory_space<vmem>>, vector<16x16x48xf32>
    %72 = vector.shape_cast %71 : vector<16x16x48xf32> to vector<256x48xf32>
    %73 = arith.truncf %72 : vector<256x48xf32> to vector<256x48xbf16>
    %c6 = arith.constant 6 : index
    %c0_59 = arith.constant 0 : index
    %c0_60 = arith.constant 0 : index
    %74 = vector.load %arg7[%c6, %c0_59, %c0_60] : memref<9x48x36xbf16, #tpu.memory_space<vmem>>, vector<1x48x36xbf16>
    %75 = vector.shape_cast %74 : vector<1x48x36xbf16> to vector<48x36xbf16>
    %cst_61 = arith.constant dense<0.000000e+00> : vector<256x36xf32>
    %76 = tpu.matmul %73, %75, %cst_61 {dimension_numbers = #tpu.dot_dimension_numbers<[1], [0], [0], [1], [0, 0, 1, 1], [], []>} : vector<256x48xbf16>, vector<48x36xbf16>, vector<256x36xf32> -> vector<256x36xf32>
    %77 = arith.addf %70, %76 : vector<256x36xf32>
    %c2_62 = arith.constant 2 : index
    %c8_63 = arith.constant 8 : index
    %c0_64 = arith.constant 0 : index
    %78 = vector.load %arg9[%c2_62, %c8_63, %c0_64] : memref<18x32x48xf32, #tpu.memory_space<vmem>>, vector<16x16x48xf32>
    %79 = vector.shape_cast %78 : vector<16x16x48xf32> to vector<256x48xf32>
    %80 = arith.truncf %79 : vector<256x48xf32> to vector<256x48xbf16>
    %c7_65 = arith.constant 7 : index
    %c0_66 = arith.constant 0 : index
    %c0_67 = arith.constant 0 : index
    %81 = vector.load %arg7[%c7_65, %c0_66, %c0_67] : memref<9x48x36xbf16, #tpu.memory_space<vmem>>, vector<1x48x36xbf16>
    %82 = vector.shape_cast %81 : vector<1x48x36xbf16> to vector<48x36xbf16>
    %cst_68 = arith.constant dense<0.000000e+00> : vector<256x36xf32>
    %83 = tpu.matmul %80, %82, %cst_68 {dimension_numbers = #tpu.dot_dimension_numbers<[1], [0], [0], [1], [0, 0, 1, 1], [], []>} : vector<256x48xbf16>, vector<48x36xbf16>, vector<256x36xf32> -> vector<256x36xf32>
    %84 = arith.addf %77, %83 : vector<256x36xf32>
    %c2_69 = arith.constant 2 : index
    %c9_70 = arith.constant 9 : index
    %c0_71 = arith.constant 0 : index
    %85 = vector.load %arg9[%c2_69, %c9_70, %c0_71] : memref<18x32x48xf32, #tpu.memory_space<vmem>>, vector<16x16x48xf32>
    %86 = vector.shape_cast %85 : vector<16x16x48xf32> to vector<256x48xf32>
    %87 = arith.truncf %86 : vector<256x48xf32> to vector<256x48xbf16>
    %c8_72 = arith.constant 8 : index
    %c0_73 = arith.constant 0 : index
    %c0_74 = arith.constant 0 : index
    %88 = vector.load %arg7[%c8_72, %c0_73, %c0_74] : memref<9x48x36xbf16, #tpu.memory_space<vmem>>, vector<1x48x36xbf16>
    %89 = vector.shape_cast %88 : vector<1x48x36xbf16> to vector<48x36xbf16>
    %cst_75 = arith.constant dense<0.000000e+00> : vector<256x36xf32>
    %90 = tpu.matmul %87, %89, %cst_75 {dimension_numbers = #tpu.dot_dimension_numbers<[1], [0], [0], [1], [0, 0, 1, 1], [], []>} : vector<256x48xbf16>, vector<48x36xbf16>, vector<256x36xf32> -> vector<256x36xf32>
    %91 = arith.addf %84, %90 : vector<256x36xf32>
    %92 = vector.shape_cast %91 : vector<256x36xf32> to vector<16x16x36xf32>
    %c0_76 = arith.constant 0 : index
    %c0_77 = arith.constant 0 : index
    %c0_78 = arith.constant 0 : index
    %c0_79 = arith.constant 0 : index
    %93 = vector.load %arg8[%c0_76, %c0_77, %c0_78, %c0_79] : memref<1x16x16x36xf32, #tpu.memory_space<vmem>>, vector<1x16x16x36xf32>
    %94 = vector.shape_cast %93 : vector<1x16x16x36xf32> to vector<16x16x36xf32>
    %95 = vector.shape_cast %92 : vector<16x16x36xf32> to vector<1x16x16x36xf32>
    tpu.vector_store %arg8[%c0_76, %c0_77, %c0_78, %c0_79], %95 {strides = array<i32>} : memref<1x16x16x36xf32, #tpu.memory_space<vmem>>, vector<1x16x16x36xf32>,
    return
  }
  func.func @transform_0(%arg0: i32) -> (i32, i32, i32, i32) {
    %c0_i32 = arith.constant 0 : i32
    %c0_i32_0 = arith.constant 0 : i32
    %c0_i32_1 = arith.constant 0 : i32
    %c0_i32_2 = arith.constant 0 : i32
    return %arg0, %c0_i32, %c0_i32_0, %c0_i32_1 : i32, i32, i32, i32
  }
  func.func @transform_1(%arg0: i32) -> (i32, i32) {
    %c0_i32 = arith.constant 0 : i32
    %c0_i32_0 = arith.constant 0 : i32
    %c0_i32_1 = arith.constant 0 : i32
    return %c0_i32, %c0_i32_0 : i32, i32
  }
  func.func @transform_2(%arg0: i32) -> (i32, i32) {
    %c0_i32 = arith.constant 0 : i32
    %c0_i32_0 = arith.constant 0 : i32
    %c0_i32_1 = arith.constant 0 : i32
    return %c0_i32, %c0_i32_0 : i32, i32
  }
  func.func @transform_3(%arg0: i32) -> (i32, i32) {
    %c0_i32 = arith.constant 0 : i32
    %c0_i32_0 = arith.constant 0 : i32
    %c0_i32_1 = arith.constant 0 : i32
    return %c0_i32, %c0_i32_0 : i32, i32
  }
  func.func @transform_4(%arg0: i32) -> (i32, i32) {
    %c0_i32 = arith.constant 0 : i32
    %c0_i32_0 = arith.constant 0 : i32
    %c0_i32_1 = arith.constant 0 : i32
    return %c0_i32, %c0_i32_0 : i32, i32
  }
  func.func @transform_5(%arg0: i32) -> (i32, i32) {
    %c0_i32 = arith.constant 0 : i32
    %c0_i32_0 = arith.constant 0 : i32
    %c0_i32_1 = arith.constant 0 : i32
    return %c0_i32, %c0_i32_0 : i32, i32
  }
  func.func @transform_6(%arg0: i32) -> (i32, i32, i32) {
    %c0_i32 = arith.constant 0 : i32
    %c0_i32_0 = arith.constant 0 : i32
    %c0_i32_1 = arith.constant 0 : i32
    %c0_i32_2 = arith.constant 0 : i32
    return %c0_i32, %c0_i32_0, %c0_i32_1 : i32, i32, i32
  }
  func.func @transform_7(%arg0: i32) -> (i32, i32, i32, i32) {
    %c0_i32 = arith.constant 0 : i32
    %c0_i32_0 = arith.constant 0 : i32
    %c0_i32_1 = arith.constant 0 : i32
    %c0_i32_2 = arith.constant 0 : i32
    return %arg0, %c0_i32, %c0_i32_0, %c0_i32_1 : i32, i32, i32, i32
  }
}

</mosaic_0001>

<bundles_post_ra>
// kernel: bottleneck_forward.1
= control target key start
LH: loop header
LB: loop body
LE: loop exit
PB: predicated region body
PF: predicated region fallthrough
CT: control target
= control target key end

     0   :  { %12 = vsyncpa [#allocation4], 0  ;;  %s6392_s0 = inlined_call_operand.vmem [shape: f32[2,16,16,36], index: 0, kind: input, shape index: {}]   ;;  %s6393_s1 = inlined_call_operand.vmem [shape: f32[1,36], index: 1, kind: input, shape index: {}]   ;;  %s6394_s2 = inlined_call_operand.vmem [shape: f32[1,36], index: 2, kind: input, shape index: {}]   ;;  %s6395_s3 = inlined_call_operand.vmem [shape: bf16[36,48], index: 3, kind: input, shape index: {}]   ;;  %s6396_s4 = inlined_call_operand.vmem [shape: f32[1,48], index: 4, kind: input, shape index: {}]   ;;  %s6397_s5 = inlined_call_operand.vmem [shape: f32[1,48], index: 5, kind: input, shape index: {}]   ;;  %s6398_s6 = inlined_call_operand.vmem [shape: bf16[9,48,36], index: 6, kind: input, shape index: {}]   ;;  %s6399_s7 = inlined_call_operand.hbm [shape: f32[2,16,16,36], index: 7, kind: output, shape index: {}]  }
   0x1   :  { %14 = vsyncpa [#allocation4 + $0x1], 0  ;;  %s4857_s24 = smov 0   ;;  %s4859_s25 = smov 0  }
   0x2   :  { %s4861_s26 = smov 0   ;;  %s4863_s27 = smov 0  }
   0x3 LB: > { %s4878_s28 = sadd.s32 4294967295, %s4811_s27   ;;  %s3820_s29 = sadd.s32 4294967294, %s4811_s27   ;;  %s4811_s27 = sphi %s4863_s27, %s6517_s27   ;;  %s4807_s26 = sphi %s4861_s26, %s6516_s26   ;;  %s4803_s25 = sphi %s4859_s25, %s6515_s25   ;;  %s4799_s24 = sphi %s4857_s24, %s6514_s24  }
   0x4   : > { %s4882_s30 = sadd.s32 1, %s4811_s27   ;;  %s179_s8 = sadd.s32 1, %s4807_s26 }
   0x5   : > { %s176_s9 = ssub.s32 %s4811_s27, %s4882_s30  ;;  %p189_p0 = scmp.ne.s32.totalorder %s4807_s26, %s4803_s25 }
   0x6   : > { %p177_p1 = scmp.eq.s32.totalorder %s176_s9, 0  ;;  %p190_p2 = scmp.eq.s32.totalorder %s4878_s28, 1 }
   0x7   : > { %p195_p3 = scmp.ne.s32.totalorder %s4803_s25, %s4799_s24  ;;  %p196_p4 = scmp.eq.s32.totalorder %s3820_s29, 1 }
   0x8   : > { %s4893_s10 = scalar_select %p177_p1, %s4807_s26, %s179_s8  }
   0x9   : > { %p4895_p5 = por %p190_p2, %p189_p0  ;;  %p4899_p6 = por %p196_p4, %p195_p3 }
   0xa   : > { %p3823_p7 = scmp.ge.s32.totalorder %s4811_s27, 1  ;;  %p240_p8 = scmp.lt.s32.totalorder %s4811_s27, 3 }
   0xc   : > { %p241_p9 = pnand %p3823_p7, %p240_p8 }
   0xe   : > { %244 = sbr.rel (%p241_p9) target bundleno = 777 (0x309), region = 48 }
  0x13   : > { %v4689_v0 = vld [vmem:[%s6395_s3 + $0x10] ss:$0 sps:$4 sm:$0x33]   ;;  %vm505_vm0 = vcmask 1041408   ;;  %v4690_v1 = vld [vmem:[%s6395_s3 + $0x8] sm:$0xff]   ;;  %p272_p10 = scmp.lt.s32.totalorder %s4878_s28, 1 }
  0x14   : > { %4646 = vmatprep.subr.msk.bf16.mxu0 %vm505_vm0, %v4689_v0  ;;  %v507_v2 = vsel %vm505_vm0, %v4689_v0, 0  ;;  %v4691_v3 = vld [vmem:[%s6395_s3] sm:$0xff]   ;;  %vm456_vm1 = vcmask 293888   ;;  %vm780_vm2 = vcmask 392192   ;;  %s4814_s15 = smov [#allocation3]  }
  0x15   : > { %4267 = vmatpush3.bf16.msra.mxu0 %v507_v2  ;;  %s273_s19 = scalar_select %p272_p10, %s4878_s28, 1  ;;  %v4919_v4 = vld [vmem:[%s6393_s1] ss:$0 sm:$0xff] }
  0x16   : > { %4268 = vmatprep.subr.bf16.mxu0 %v4690_v1  ;;  %v4924_v5 = vld [vmem:[%s6394_s2] ss:$0 sm:$0xff]  ;;  %s4755_s16 = sshll.u32 %s4814_s15, 4  ;;  %s4756_s16 = int_to_ptr.vmem [resolvable:$false] %s4755_s16 }
  0x17   : > { %s4074_s22 = sshll.u32 %s273_s19, 8  ;;  %s4757_s17 = scalar_lea.vmem %s4756_s16, 8192 }
  0x18   : > { %s4929_s13 = scalar_lea.vmem %s6392_s0, %s4074_s22  ;;  %s4075_s22 = sshll.u32 %s4878_s28, 12 }
  0x19   : > { %4269 = vmatpush3.bf16.msra.mxu0 %v4690_v1  ;;  %v278_v6 = vld [vmem:[%s4929_s13] sm:$0xff]  ;;  %v279_v7 = vld [vmem:[%s4929_s13 + $0x8] sm:$0xff]  ;;  %v280_v8 = vld [vmem:[%s4929_s13 + $0x10] sm:$0xff]  ;;  %s6342_s9 = scalar_lea.hbm %s6399_s7, %s4075_s22 }
  0x1a   : > { %4270 = vmatprep.subr.bf16.mxu0 %v4691_v3  ;;  %v317_v9 = vmul.f32 %v4919_v4, %v278_v6  ;;  %v318_v10 = vmul.f32 %v4919_v4, %v279_v7  ;;  %v281_v11 = vld [vmem:[%s4929_s13 + $0x18] sm:$0xff]  ;;  %v319_v12 = vmul.f32 %v4919_v4, %v280_v8  ;;  %v282_v13 = vld [vmem:[%s4929_s13 + $0x20] sm:$0xff]  ;;  %v283_v14 = vld [vmem:[%s4929_s13 + $0x28] sm:$0xff] }
  0x1b   : > { %v320_v15 = vmul.f32 %v4919_v4, %v281_v11  ;;  %v321_v16 = vmul.f32 %v4919_v4, %v282_v13  ;;  %v322_v17 = vmul.f32 %v4919_v4, %v283_v14  ;;  %v284_v18 = vld [vmem:[%s4929_s13 + $0x30] sm:$0xff]  ;;  %v285_v19 = vld [vmem:[%s4929_s13 + $0x38] sm:$0xff]  ;;  %v286_v28 = vld [vmem:[%s4929_s13 + $0x40] sm:$0xff] }
  0x1c   : > { %v356_v20 = vadd.f32 %v4924_v5, %v317_v9  ;;  %v357_v21 = vadd.f32 %v4924_v5, %v318_v10  ;;  %v358_v22 = vadd.f32 %v4924_v5, %v319_v12  ;;  %v323_v23 = vmul.f32 %v4919_v4, %v284_v18  ;;  %v287_v29 = vld [vmem:[%s4929_s13 + $0x48] sm:$0xff]  ;;  %v288_v41 = vld [vmem:[%s4929_s13 + $0x50] sm:$0xff]  ;;  %v289_v42 = vld [vmem:[%s4929_s13 + $0x58] sm:$0xff] }
  0x1d   : > { %4271 = vmatpush3.bf16.msra.mxu0 %v4691_v3  ;;  %v359_v24 = vadd.f32 %v4924_v5, %v320_v15  ;;  %v360_v25 = vadd.f32 %v4924_v5, %v321_v16  ;;  %v361_v26 = vadd.f32 %v4924_v5, %v322_v17  ;;  %v324_v27 = vmul.f32 %v4919_v4, %v285_v19  ;;  %v290_v45 = vld [vmem:[%s4929_s13 + $0x60] sm:$0xff]  ;;  %v291_v46 = vld [vmem:[%s4929_s13 + $0x68] sm:$0xff]  ;;  %v292_v57 = vld [vmem:[%s4929_s13 + $0x70] sm:$0xff] }
  0x1e   : > { %v388_v30 = vmax.f32 %v356_v20, 0.0  ;;  %v389_v31 = vmax.f32 %v357_v21, 0.0  ;;  %v390_v32 = vmax.f32 %v358_v22, 0.0  ;;  %v362_v33 = vadd.f32 %v4924_v5, %v323_v23  ;;  %v293_v58 = vld [vmem:[%s4929_s13 + $0x78] sm:$0xff]  ;;  %v294_v62 = vld [vmem:[%s4929_s13 + $0x80] sm:$0xff]  ;;  %v295_v2 = vld [vmem:[%s4929_s13 + $0x88] sm:$0xff] }
  0x1f   : > { %v391_v34 = vmax.f32 %v359_v24, 0.0  ;;  %v392_v35 = vmax.f32 %v360_v25, 0.0  ;;  %v393_v36 = vmax.f32 %v361_v26, 0.0  ;;  %v363_v37 = vadd.f32 %v4924_v5, %v324_v27  ;;  %v296_v13 = vld [vmem:[%s4929_s13 + $0x90] sm:$0xff]  ;;  %v297_v17 = vld [vmem:[%s4929_s13 + $0x98] sm:$0xff]  ;;  %v298_v21 = vld [vmem:[%s4929_s13 + $0xa0] sm:$0xff] }
  0x20   : > { %v420_v38 = vpack.c.bf16 %v389_v31, %v388_v30  ;;  %v325_v39 = vmul.f32 %v4919_v4, %v286_v28  ;;  %v326_v40 = vmul.f32 %v4919_v4, %v287_v29  ;;  %v394_v49 = vmax.f32 %v362_v33, 0.0  ;;  %v299_v22 = vld [vmem:[%s4929_s13 + $0xa8] sm:$0xff]  ;;  %v300_v31 = vld [vmem:[%s4929_s13 + $0xb0] sm:$0xff] }
  0x21   : > { %v421_v43 = vpack.c.bf16 %v391_v34, %v390_v32  ;;  %v422_v44 = vpack.c.bf16 %v393_v36, %v392_v35  ;;  %v395_v50 = vmax.f32 %v363_v37, 0.0  ;;  %v327_v51 = vmul.f32 %v4919_v4, %v288_v41  ;;  %v301_v35 = vld [vmem:[%s4929_s13 + $0xb8] sm:$0xff] }
  0x22   : > { %4272 = vmatprep.mubr.msk.bf16.mxu0 %vm456_vm1, %v420_v38  ;;  %v364_v47 = vadd.f32 %v4924_v5, %v325_v39  ;;  %v365_v48 = vadd.f32 %v4924_v5, %v326_v40  ;;  %v328_v52 = vmul.f32 %v4919_v4, %v289_v42  ;;  %v329_v55 = vmul.f32 %v4919_v4, %v290_v45  ;;  %v302_v39 = vld [vmem:[%s4929_s13 + $0xc0] sm:$0xff]  ;;  %v303_v40 = vld [vmem:[%s4929_s13 + $0xc8] sm:$0xff] }
  0x23   : > { %4273 = vmatmul.mubr.msk.bf16.vlgmr.msra.gmra.mxu0 %vm456_vm1, %v421_v43  ;;  %v330_v56 = vmul.f32 %v4919_v4, %v291_v46  ;;  %v423_v59 = vpack.c.bf16 %v395_v50, %v394_v49  ;;  %v366_v60 = vadd.f32 %v4924_v5, %v327_v51  ;;  %v331_v7 = vmul.f32 %v4919_v4, %v292_v57  ;;  %v306_v57 = vld [vmem:[%s4929_s13 + $0xe0] sm:$0xff] }
  0x24   : > { %4276 = vmatprep.mubr.msk.bf16.mxu0 %vm456_vm1, %v422_v44  ;;  %v396_v53 = vmax.f32 %v364_v47, 0.0  ;;  %v397_v54 = vmax.f32 %v365_v48, 0.0  ;;  %v367_v61 = vadd.f32 %v4924_v5, %v328_v52  ;;  %v368_v0 = vadd.f32 %v4924_v5, %v329_v55  ;;  %v304_v55 = vld [vmem:[%s4929_s13 + $0xd0] sm:$0xff] }
  0x25   : > { %v369_v1 = vadd.f32 %v4924_v5, %v330_v56  ;;  %v398_v3 = vmax.f32 %v366_v60, 0.0  ;;  %v332_v8 = vmul.f32 %v4919_v4, %v293_v58  ;;  %v333_v11 = vmul.f32 %v4919_v4, %v294_v62  ;;  %v305_v56 = vld [vmem:[%s4929_s13 + $0xd8] sm:$0xff]  ;;  %v307_v58 = vld [vmem:[%s4929_s13 + $0xe8] sm:$0xff] }
  0x26   : > { %v424_v63 = vpack.c.bf16 %v397_v54, %v396_v53  ;;  %v399_v6 = vmax.f32 %v367_v61, 0.0  ;;  %v400_v9 = vmax.f32 %v368_v0, 0.0  ;;  %v334_v12 = vmul.f32 %v4919_v4, %v295_v2 }
  0x27   : > { %v401_v10 = vmax.f32 %v369_v1, 0.0  ;;  %v370_v15 = vadd.f32 %v4924_v5, %v331_v7  ;;  %v371_v16 = vadd.f32 %v4924_v5, %v332_v8  ;;  %v372_v19 = vadd.f32 %v4924_v5, %v333_v11  ;;  %v308_v11 = vld [vmem:[%s4929_s13 + $0xf0] sm:$0xff] }
  0x28   : > { %v425_v14 = vpack.c.bf16 %v399_v6, %v398_v3  ;;  %v373_v20 = vadd.f32 %v4924_v5, %v334_v12  ;;  %v335_v25 = vmul.f32 %v4919_v4, %v296_v13  ;;  %v336_v26 = vmul.f32 %v4919_v4, %v297_v17  ;;  %v309_v12 = vld [vmem:[%s4929_s13 + $0xf8] sm:$0xff] }
  0x29   : > { %v426_v18 = vpack.c.bf16 %v401_v10, %v400_v9  ;;  %v402_v23 = vmax.f32 %v370_v15, 0.0  ;;  %v403_v24 = vmax.f32 %v371_v16, 0.0  ;;  %v404_v27 = vmax.f32 %v372_v19, 0.0 }
  0x2a   : > { %v405_v28 = vmax.f32 %v373_v20, 0.0  ;;  %v337_v29 = vmul.f32 %v4919_v4, %v298_v21  ;;  %v338_v30 = vmul.f32 %v4919_v4, %v299_v22  ;;  %v374_v33 = vadd.f32 %v4924_v5, %v335_v25 }
  0x2b   : > { %4277 = vmatmul.mubr.msk.bf16.gmra.mxu0 %vm456_vm1, %v423_v59  ;;  %v427_v32 = vpack.c.bf16 %v403_v24, %v402_v23  ;;  %v375_v34 = vadd.f32 %v4924_v5, %v336_v26  ;;  %v339_v43 = vmul.f32 %v4919_v4, %v300_v31  ;;  %v340_v44 = vmul.f32 %v4919_v4, %v301_v35  ;;  %v4693_v26 = vld [vmem:[%s6398_s6 + $0x28] sm:$0xff]  }
  0x2c   : > { %4280 = vmatprep.mubr.msk.bf16.mxu0 %vm456_vm1, %v424_v63  ;;  %v428_v36 = vpack.c.bf16 %v405_v28, %v404_v27  ;;  %v376_v37 = vadd.f32 %v4924_v5, %v337_v29  ;;  %v377_v38 = vadd.f32 %v4924_v5, %v338_v30  ;;  %v406_v41 = vmax.f32 %v374_v33, 0.0  ;;  %4342 = vmatprep.subr.bf16.mxu0 %v4693_v26  ;;  %v4694_v27 = vld [vmem:[%s6398_s6 + $0x8] sm:$0xff]   ;;  %v4695_v28 = vld [vmem:[%s6398_s6 + $0x20] sm:$0xff]   ;;  %v4697_v30 = vld [vmem:[%s6398_s6 + $0x18] sm:$0xff]  }
  0x2d   : > { %v407_v42 = vmax.f32 %v375_v34, 0.0  ;;  %v341_v47 = vmul.f32 %v4919_v4, %v302_v39  ;;  %v342_v48 = vmul.f32 %v4919_v4, %v303_v40  ;;  %v378_v50 = vadd.f32 %v4924_v5, %v339_v43  ;;  %4343 = vmatpush3.bf16.msra.mxu0 %v4693_v26  ;;  %v4696_v29 = vld [vmem:[%s6398_s6] sm:$0xff]  }
  0x2e   : > { %v408_v45 = vmax.f32 %v376_v37, 0.0  ;;  %v409_v46 = vmax.f32 %v377_v38, 0.0  ;;  %v379_v51 = vadd.f32 %v4924_v5, %v340_v44  ;;  %v343_v61 = vmul.f32 %v4919_v4, %v304_v55  ;;  %4344 = vmatprep.subr.bf16.mxu0 %v4695_v28  ;;  %v5210_v37 = vld [vmem:[%s6398_s6 + $0x40] sm:$0xff]   ;;  %v5216_v38 = vld [vmem:[%s6398_s6 + $0x58] sm:$0xff]  }
  0x2f   : > { %v429_v49 = vpack.c.bf16 %v407_v42, %v406_v41  ;;  %v380_v53 = vadd.f32 %v4924_v5, %v341_v47  ;;  %v381_v54 = vadd.f32 %v4924_v5, %v342_v48  ;;  %v410_v59 = vmax.f32 %v378_v50, 0.0  ;;  %v5222_v39 = vld [vmem:[%s6396_s4] ss:$0 sm:$0xff] }
  0x30   : > { %v430_v52 = vpack.c.bf16 %v409_v46, %v408_v45  ;;  %v411_v60 = vmax.f32 %v379_v51, 0.0  ;;  %v344_v62 = vmul.f32 %v4919_v4, %v305_v56  ;;  %v345_v1 = vmul.f32 %v4919_v4, %v306_v57  ;;  %v5227_v41 = vld [vmem:[%s6397_s5] ss:$0 sm:$0xff] }
  0x31   : > { %v412_v63 = vmax.f32 %v380_v53, 0.0  ;;  %v413_v0 = vmax.f32 %v381_v54, 0.0  ;;  %v346_v2 = vmul.f32 %v4919_v4, %v307_v58  ;;  %v382_v6 = vadd.f32 %v4924_v5, %v343_v61  ;;  %4345 = vmatpush3.bf16.msra.mxu0 %v4695_v28 }
  0x32   : > { %v431_v3 = vpack.c.bf16 %v411_v60, %v410_v59  ;;  %v383_v7 = vadd.f32 %v4924_v5, %v344_v62  ;;  %v384_v9 = vadd.f32 %v4924_v5, %v345_v1  ;;  %v347_v15 = vmul.f32 %v4919_v4, %v308_v11  ;;  %4346 = vmatprep.subr.bf16.mxu0 %v4697_v30 }
  0x33   : > { %4281 = vmatmul.mubr.msk.bf16.gmra.mxu0 %vm456_vm1, %v425_v14  ;;  %v432_v8 = vpack.c.bf16 %v413_v0, %v412_v63  ;;  %v385_v10 = vadd.f32 %v4924_v5, %v346_v2  ;;  %v414_v13 = vmax.f32 %v382_v6, 0.0  ;;  %v348_v16 = vmul.f32 %v4919_v4, %v309_v12 }
  0x34   : > { %4284 = vmatprep.mubr.msk.bf16.mxu0 %vm456_vm1, %v426_v18  ;;  %v415_v14 = vmax.f32 %v383_v7, 0.0  ;;  %v416_v17 = vmax.f32 %v384_v9, 0.0  ;;  %v386_v20 = vadd.f32 %v4924_v5, %v347_v15  ;;  %v4813_v4 = vmov 0.0  }
  0x35   : > { %v417_v18 = vmax.f32 %v385_v10, 0.0  ;;  %v387_v21 = vadd.f32 %v4924_v5, %v348_v16  ;;  %790 = vst.msk [vmem:[#allocation2 + $0x48] sm:$0xff] %vm780_vm2, %v4813_v4  ;;  %781 = vst.msk [vmem:[#allocation2] sm:$0xff] %vm780_vm2, %v4813_v4  ;;  %v4692_v5 = vld [vmem:[%s6398_s6 + $0x10] sm:$0xff]   ;;  %4347 = vmatpush3.bf16.msra.mxu0 %v4697_v30  ;;  %v4699_v30 = vld [vmem:[%s6398_s6 + $0x38] sm:$0xff]  }
  0x36   : > { %v433_v19 = vpack.c.bf16 %v415_v14, %v414_v13  ;;  %v418_v23 = vmax.f32 %v386_v20, 0.0  ;;  %782 = vst.msk [vmem:[#allocation2 + $0x8] sm:$0xff] %vm780_vm2, %v4813_v4  ;;  %783 = vst.msk [vmem:[#allocation2 + $0x10] sm:$0xff] %vm780_vm2, %v4813_v4  ;;  %4304 = vmatprep.subr.bf16.mxu1 %v4692_v5  ;;  %4418 = vmatprep.subr.bf16.mxu0 %v5216_v38 }
  0x37   : > { %v434_v22 = vpack.c.bf16 %v417_v18, %v416_v17  ;;  %v419_v24 = vmax.f32 %v387_v21, 0.0  ;;  %784 = vst.msk [vmem:[#allocation2 + $0x18] sm:$0xff] %vm780_vm2, %v4813_v4  ;;  %785 = vst.msk [vmem:[#allocation2 + $0x20] sm:$0xff] %vm780_vm2, %v4813_v4  ;;  %4305 = vmatpush3.bf16.msra.mxu1 %v4692_v5 }
  0x38   : > { %786 = vst.msk [vmem:[#allocation2 + $0x28] sm:$0xff] %vm780_vm2, %v4813_v4  ;;  %787 = vst.msk [vmem:[#allocation2 + $0x30] sm:$0xff] %vm780_vm2, %v4813_v4  ;;  %4306 = vmatprep.subr.bf16.mxu1 %v4694_v27 }
  0x39   : > { %v435_v25 = vpack.c.bf16 %v419_v24, %v418_v23  ;;  %788 = vst.msk [vmem:[#allocation2 + $0x38] sm:$0xff] %vm780_vm2, %v4813_v4  ;;  %789 = vst.msk [vmem:[#allocation2 + $0x40] sm:$0xff] %vm780_vm2, %v4813_v4 }
  0x3a   : > { %791 = vst.msk [vmem:[#allocation2 + $0x50] sm:$0xff] %vm780_vm2, %v4813_v4  ;;  %792 = vst.msk [vmem:[#allocation2 + $0x58] sm:$0xff] %vm780_vm2, %v4813_v4 }
  0x3b   : > { %4285 = vmatmul.mubr.msk.bf16.gmra.mxu0 %vm456_vm1, %v427_v32  ;;  %793 = vst.msk [vmem:[#allocation2 + $0x60] sm:$0xff] %vm780_vm2, %v4813_v4  ;;  %794 = vst.msk [vmem:[#allocation2 + $0x68] sm:$0xff] %vm780_vm2, %v4813_v4  ;;  %4307 = vmatpush3.bf16.msra.mxu1 %v4694_v27 }
  0x3c   : > { %4288 = vmatprep.mubr.msk.bf16.mxu0 %vm456_vm1, %v428_v36  ;;  %795 = vst.msk [vmem:[#allocation2 + $0x70] sm:$0xff] %vm780_vm2, %v4813_v4  ;;  %796 = vst.msk [vmem:[#allocation2 + $0x78] sm:$0xff] %vm780_vm2, %v4813_v4  ;;  %4308 = vmatprep.subr.bf16.mxu1 %v4696_v29 }
  0x3d   : > { %797 = vst.msk [vmem:[#allocation2 + $0x80] sm:$0xff] %vm780_vm2, %v4813_v4  ;;  %798 = vst.msk [vmem:[#allocation2 + $0x88] sm:$0xff] %vm780_vm2, %v4813_v4  ;;  %v886_v31 = vld [vmem:[#allocation2 + $0x7] sm:$0xff]  ;;  %v887_v32 = vld [vmem:[#allocation2 + $0xf] sm:$0xff] }
  0x3e   : > { %799 = vst.msk [vmem:[#allocation2 + $0x90] sm:$0xff] %vm780_vm2, %v4813_v4  ;;  %800 = vst.msk [vmem:[#allocation2 + $0x98] sm:$0xff] %vm780_vm2, %v4813_v4  ;;  %v1199_v33 = vld [vmem:[#allocation2 + $0x8] sm:$0xff]  ;;  %v918_v34 = vpack.c.bf16 %v887_v32, %v886_v31  ;;  %v1200_v35 = vld [vmem:[#allocation2 + $0x10] sm:$0xff] }
  0x3f   : > { %801 = vst.msk [vmem:[#allocation2 + $0xa0] sm:$0xff] %vm780_vm2, %v4813_v4  ;;  %802 = vst.msk [vmem:[#allocation2 + $0xa8] sm:$0xff] %vm780_vm2, %v4813_v4  ;;  %4309 = vmatpush3.bf16.msra.mxu1 %v4696_v29  ;;  %v1231_v36 = vpack.c.bf16 %v1200_v35, %v1199_v33  ;;  %v4702_v35 = vld [vmem:[%s6398_s6 + $0x50] sm:$0xff]  }
  0x40   : > { %803 = vst.msk [vmem:[#allocation2 + $0xb0] sm:$0xff] %vm780_vm2, %v4813_v4  ;;  %804 = vst.msk [vmem:[#allocation2 + $0xb8] sm:$0xff] %vm780_vm2, %v4813_v4  ;;  %4310 = vmatprep.mubr.msk.bf16.mxu1 %vm780_vm2, %v918_v34  ;;  %4380 = vmatprep.subr.bf16.mxu1 %v5210_v37 }
  0x41   : > { %805 = vst.msk [vmem:[#allocation2 + $0xc0] sm:$0xff] %vm780_vm2, %v4813_v4  ;;  %806 = vst.msk [vmem:[#allocation2 + $0xc8] sm:$0xff] %vm780_vm2, %v4813_v4 }
  0x42   : > { %807 = vst.msk [vmem:[#allocation2 + $0xd0] sm:$0xff] %vm780_vm2, %v4813_v4  ;;  %808 = vst.msk [vmem:[#allocation2 + $0xd8] sm:$0xff] %vm780_vm2, %v4813_v4 }
  0x43   : > { %4289 = vmatmul.mubr.msk.bf16.gmra.mxu0 %vm456_vm1, %v429_v49  ;;  %809 = vst.msk [vmem:[#allocation2 + $0xe0] sm:$0xff] %vm780_vm2, %v4813_v4  ;;  %810 = vst.msk [vmem:[#allocation2 + $0xe8] sm:$0xff] %vm780_vm2, %v4813_v4 }
  0x44   : > { %4292 = vmatprep.mubr.msk.bf16.mxu0 %vm456_vm1, %v430_v52  ;;  %811 = vst.msk [vmem:[#allocation2 + $0xf0] sm:$0xff] %vm780_vm2, %v4813_v4  ;;  %812 = vst.msk [vmem:[#allocation2 + $0xf8] sm:$0xff] %vm780_vm2, %v4813_v4 }
  0x45   : > { %813 = vst.msk [vmem:[#allocation2 + $0x100] sm:$0xff] %vm780_vm2, %v4813_v4  ;;  %814 = vst.msk [vmem:[#allocation2 + $0x108] sm:$0xff] %vm780_vm2, %v4813_v4 }
  0x46   : > { %815 = vst.msk [vmem:[#allocation2 + $0x110] sm:$0xff] %vm780_vm2, %v4813_v4  ;;  %816 = vst.msk [vmem:[#allocation2 + $0x118] sm:$0xff] %vm780_vm2, %v4813_v4 }
  0x47   : > { %817 = vst.msk [vmem:[#allocation2 + $0x120] sm:$0xff] %vm780_vm2, %v4813_v4  ;;  %818 = vst.msk [vmem:[#allocation2 + $0x128] sm:$0xff] %vm780_vm2, %v4813_v4 }
  0x48   : > { %819 = vst.msk [vmem:[#allocation2 + $0x130] sm:$0xff] %vm780_vm2, %v4813_v4  ;;  %820 = vst.msk [vmem:[#allocation2 + $0x138] sm:$0xff] %vm780_vm2, %v4813_v4 }
  0x49   : > { %821 = vst.msk [vmem:[#allocation2 + $0x140] sm:$0xff] %vm780_vm2, %v4813_v4  ;;  %822 = vst.msk [vmem:[#allocation2 + $0x148] sm:$0xff] %vm780_vm2, %v4813_v4 }
  0x4a   : > { %823 = vst.msk [vmem:[#allocation2 + $0x150] sm:$0xff] %vm780_vm2, %v4813_v4  ;;  %824 = vst.msk [vmem:[#allocation2 + $0x158] sm:$0xff] %vm780_vm2, %v4813_v4 }
  0x4b   : > { %4293 = vmatmul.mubr.msk.bf16.gmra.mxu0 %vm456_vm1, %v431_v3  ;;  %825 = vst.msk [vmem:[#allocation2 + $0x160] sm:$0xff] %vm780_vm2, %v4813_v4  ;;  %826 = vst.msk [vmem:[#allocation2 + $0x168] sm:$0xff] %vm780_vm2, %v4813_v4 }
  0x4c   : > { %4296 = vmatprep.mubr.msk.bf16.mxu0 %vm456_vm1, %v432_v8  ;;  %827 = vst.msk [vmem:[#allocation2 + $0x170] sm:$0xff] %vm780_vm2, %v4813_v4  ;;  %828 = vst.msk [vmem:[#allocation2 + $0x178] sm:$0xff] %vm780_vm2, %v4813_v4 }
  0x4d   : > { %829 = vst.msk [vmem:[#allocation2 + $0x180] sm:$0xff] %vm780_vm2, %v4813_v4  ;;  %830 = vst.msk [vmem:[#allocation2 + $0x188] sm:$0xff] %vm780_vm2, %v4813_v4 }
  0x4e   : > { %831 = vst.msk [vmem:[#allocation2 + $0x190] sm:$0xff] %vm780_vm2, %v4813_v4  ;;  %832 = vst.msk [vmem:[#allocation2 + $0x198] sm:$0xff] %vm780_vm2, %v4813_v4 }
  0x4f   : > { %833 = vst.msk [vmem:[#allocation2 + $0x1a0] sm:$0xff] %vm780_vm2, %v4813_v4  ;;  %834 = vst.msk [vmem:[#allocation2 + $0x1a8] sm:$0xff] %vm780_vm2, %v4813_v4 }
  0x50   : > { %835 = vst.msk [vmem:[#allocation2 + $0x1b0] sm:$0xff] %vm780_vm2, %v4813_v4  ;;  %836 = vst.msk [vmem:[#allocation2 + $0x1b8] sm:$0xff] %vm780_vm2, %v4813_v4 }
  0x51   : > { %837 = vst.msk [vmem:[#allocation2 + $0x1c0] sm:$0xff] %vm780_vm2, %v4813_v4  ;;  %838 = vst.msk [vmem:[#allocation2 + $0x1c8] sm:$0xff] %vm780_vm2, %v4813_v4 }
  0x52   : > { %839 = vst.msk [vmem:[#allocation2 + $0x1d0] sm:$0xff] %vm780_vm2, %v4813_v4  ;;  %840 = vst.msk [vmem:[#allocation2 + $0x1d8] sm:$0xff] %vm780_vm2, %v4813_v4 }
  0x53   : > { %4297 = vmatmul.mubr.msk.bf16.gmra.mxu0 %vm456_vm1, %v433_v19  ;;  %841 = vst.msk [vmem:[#allocation2 + $0x1e0] sm:$0xff] %vm780_vm2, %v4813_v4  ;;  %842 = vst.msk [vmem:[#allocation2 + $0x1e8] sm:$0xff] %vm780_vm2, %v4813_v4 }
  0x54   : > { %4300 = vmatprep.mubr.msk.bf16.mxu0 %vm456_vm1, %v434_v22  ;;  %843 = vst.msk [vmem:[#allocation2 + $0x1f0] sm:$0xff] %vm780_vm2, %v4813_v4  ;;  %844 = vst.msk [vmem:[#allocation2 + $0x1f8] sm:$0xff] %vm780_vm2, %v4813_v4 }
  0x55   : > { %845 = vst.msk [vmem:[#allocation2 + $0x200] sm:$0xff] %vm780_vm2, %v4813_v4  ;;  %846 = vst.msk [vmem:[#allocation2 + $0x208] sm:$0xff] %vm780_vm2, %v4813_v4 }
  0x56   : > { %847 = vst.msk [vmem:[#allocation2 + $0x210] sm:$0xff] %vm780_vm2, %v4813_v4  ;;  %848 = vst.msk [vmem:[#allocation2 + $0x218] sm:$0xff] %vm780_vm2, %v4813_v4 }
  0x57   : > { %849 = vst.msk [vmem:[#allocation2 + $0x220] sm:$0xff] %vm780_vm2, %v4813_v4  ;;  %850 = vst.msk [vmem:[#allocation2 + $0x228] sm:$0xff] %vm780_vm2, %v4813_v4 }
  0x58   : > { %851 = vst.msk [vmem:[#allocation2 + $0x230] sm:$0xff] %vm780_vm2, %v4813_v4  ;;  %852 = vst.msk [vmem:[#allocation2 + $0x238] sm:$0xff] %vm780_vm2, %v4813_v4 }
  0x5b   : > { %4301 = vmatmul.mubr.msk.bf16.gmra.mxu0 %vm456_vm1, %v435_v25 }
  0x5c   : > { %4348 = vmatprep.mubr.msk.bf16.mxu0 %vm780_vm2, %v1231_v36 }
  0xe3   : > { %v4274_v40 = vpop.f32.mrf.mxu0 }
  0xe4   : > { %v679_v42 = vmul.f32 %v4274_v40, %v5222_v39 }
  0xe5   : > { %v543_v43 = vpop.f32.mrf.mxu0 }
  0xe6   : > { %v718_v44 = vadd.f32 %v5227_v41, %v679_v42  ;;  %v677_v45 = vmul.f32 %v5222_v39, %v543_v43 }
  0xe7   : > { %v4275_v46 = vpop.f32.mrf.mxu0 }
  0xe8   : > { %v750_v47 = vmax.f32 %v718_v44, 0.0  ;;  %v716_v48 = vadd.f32 %v5227_v41, %v677_v45  ;;  %v680_v49 = vmul.f32 %v4275_v46, %v5222_v39  ;;  %v4700_v44 = vld [vmem:[%s6398_s6 + $0x30] sm:$0xff]  }
  0xe9   : > { %v546_v50 = vpop.f32.mrf.mxu0 }
  0xea   : > { %856 = vst.msk [vmem:[#allocation2 + $0x48] sm:$0xff] %vm780_vm2, %v750_v47  ;;  %v748_v51 = vmax.f32 %v716_v48, 0.0  ;;  %v719_v52 = vadd.f32 %v5227_v41, %v680_v49  ;;  %v678_v53 = vmul.f32 %v5222_v39, %v546_v50  ;;  %v4703_v50 = vld [vmem:[%s6398_s6 + $0x48] sm:$0xff]  }
  0xeb   : > { %v4278_v54 = vpop.f32.mrf.mxu0 }
  0xec   : > { %854 = vst.msk [vmem:[#allocation2 + $0x28] sm:$0xff] %vm780_vm2, %v748_v51  ;;  %v751_v55 = vmax.f32 %v719_v52, 0.0  ;;  %v717_v56 = vadd.f32 %v5227_v41, %v678_v53  ;;  %v683_v57 = vmul.f32 %v4278_v54, %v5222_v39 }
  0xed   : > { %v559_v58 = vpop.f32.mrf.mxu0 }
  0xee   : > { %857 = vst.msk [vmem:[#allocation2 + $0x50] sm:$0xff] %vm780_vm2, %v751_v55  ;;  %v749_v59 = vmax.f32 %v717_v56, 0.0  ;;  %v722_v60 = vadd.f32 %v5227_v41, %v683_v57  ;;  %v681_v61 = vmul.f32 %v5222_v39, %v559_v58 }
  0xef   : > { %v4279_v62 = vpop.f32.mrf.mxu0 }
  0xf0   : > { %855 = vst.msk [vmem:[#allocation2 + $0x30] sm:$0xff] %vm780_vm2, %v749_v59  ;;  %v754_v63 = vmax.f32 %v722_v60, 0.0  ;;  %v720_v0 = vadd.f32 %v5227_v41, %v681_v61  ;;  %v684_v1 = vmul.f32 %v4279_v62, %v5222_v39 }
  0xf1   : > { %v562_v2 = vpop.f32.mrf.mxu0  ;;  %v890_v5 = vld [vmem:[#allocation2 + $0x47] sm:$0xff] }
  0xf2   : > { %860 = vst.msk [vmem:[#allocation2 + $0x88] sm:$0xff] %vm780_vm2, %v754_v63  ;;  %v752_v3 = vmax.f32 %v720_v0, 0.0  ;;  %v723_v6 = vadd.f32 %v5227_v41, %v684_v1  ;;  %v682_v7 = vmul.f32 %v5222_v39, %v562_v2  ;;  %v1203_v29 = vld [vmem:[#allocation2 + $0x48] sm:$0xff]  ;;  %v5309_v0 = vld [vmem:[%s6398_s6 + $0x70] sm:$0xff]  }
  0xf3   : > { %v4282_v8 = vpop.f32.mrf.mxu0  ;;  %v888_v16 = vld [vmem:[#allocation2 + $0x27] sm:$0xff] }
  0xf4   : > { %858 = vst.msk [vmem:[#allocation2 + $0x68] sm:$0xff] %vm780_vm2, %v752_v3  ;;  %v755_v9 = vmax.f32 %v723_v6, 0.0  ;;  %v721_v10 = vadd.f32 %v5227_v41, %v682_v7  ;;  %v687_v11 = vmul.f32 %v4282_v8, %v5222_v39  ;;  %v1201_v4 = vld [vmem:[#allocation2 + $0x28] sm:$0xff] }
  0xf5   : > { %v575_v12 = vpop.f32.mrf.mxu0  ;;  %v891_v17 = vld [vmem:[#allocation2 + $0x4f] sm:$0xff] }
  0xf6   : > { %861 = vst.msk [vmem:[#allocation2 + $0x90] sm:$0xff] %vm780_vm2, %v755_v9  ;;  %v753_v13 = vmax.f32 %v721_v10, 0.0  ;;  %v726_v14 = vadd.f32 %v5227_v41, %v687_v11  ;;  %v685_v15 = vmul.f32 %v5222_v39, %v575_v12  ;;  %v1204_v21 = vld [vmem:[#allocation2 + $0x50] sm:$0xff]  ;;  %v5262_v28 = vpack.c.bf16 %v891_v17, %v890_v5  ;;  %v5321_v7 = vld [vmem:[%s6398_s6 + $0x88] sm:$0xff]  }
  0xf7   : > { %v4283_v18 = vpop.f32.mrf.mxu0  ;;  %v889_v19 = vld [vmem:[#allocation2 + $0x2f] sm:$0xff]  ;;  %v5272_v34 = vpack.c.bf16 %v1204_v21, %v1203_v29 }
  0xf8   : > { %v1202_v20 = vld [vmem:[#allocation2 + $0x30] sm:$0xff]  ;;  %859 = vst.msk [vmem:[#allocation2 + $0x70] sm:$0xff] %vm780_vm2, %v753_v13  ;;  %v758_v22 = vmax.f32 %v726_v14, 0.0  ;;  %v724_v23 = vadd.f32 %v5227_v41, %v685_v15  ;;  %v688_v24 = vmul.f32 %v4283_v18, %v5222_v39  ;;  %v5258_v25 = vpack.c.bf16 %v889_v19, %v888_v16 }
  0xf9   : > { %v578_v26 = vpop.f32.mrf.mxu0  ;;  %v5260_v27 = vpack.c.bf16 %v1202_v20, %v1201_v4  ;;  %v894_v59 = vld [vmem:[#allocation2 + $0x87] sm:$0xff] }
  0xfa   : > { %864 = vst.msk [vmem:[#allocation2 + $0xc8] sm:$0xff] %vm780_vm2, %v758_v22  ;;  %v756_v31 = vmax.f32 %v724_v23, 0.0  ;;  %v727_v32 = vadd.f32 %v5227_v41, %v688_v24  ;;  %v686_v33 = vmul.f32 %v5222_v39, %v578_v26  ;;  %4311 = vmatmul.mubr.msk.bf16.vlgmr.msra.gmra.mxu1 %vm780_vm2, %v5258_v25  ;;  %v1207_v63 = vld [vmem:[#allocation2 + $0x88] sm:$0xff] }
  0xfb   : > { %4349 = vmatmul.mubr.msk.bf16.vlgmr.msra.gmra.mxu0 %vm780_vm2, %v5260_v27  ;;  %4381 = vmatpush3.bf16.msra.mxu1 %v5210_v37  ;;  %v4286_v36 = vpop.f32.mrf.mxu0  ;;  %v892_v48 = vld [vmem:[#allocation2 + $0x67] sm:$0xff] }
  0xfc   : > { %862 = vst.msk [vmem:[#allocation2 + $0xa8] sm:$0xff] %vm780_vm2, %v756_v31  ;;  %v759_v40 = vmax.f32 %v727_v32, 0.0  ;;  %v725_v42 = vadd.f32 %v5227_v41, %v686_v33  ;;  %v691_v43 = vmul.f32 %v4286_v36, %v5222_v39  ;;  %4314 = vmatprep.mubr.msk.bf16.mxu1 %vm780_vm2, %v5262_v28  ;;  %4352 = vmatprep.mubr.msk.bf16.mxu0 %vm780_vm2, %v5272_v34  ;;  %v1205_v58 = vld [vmem:[#allocation2 + $0x68] sm:$0xff] }
  0xfd   : > { %v591_v45 = vpop.f32.mrf.mxu0  ;;  %4382 = vmatprep.subr.bf16.mxu1 %v4699_v30  ;;  %4419 = vmatpush3.bf16.msra.mxu0 %v5216_v38  ;;  %v895_v49 = vld [vmem:[#allocation2 + $0x8f] sm:$0xff] }
  0xfe   : > { %865 = vst.msk [vmem:[#allocation2 + $0xd0] sm:$0xff] %vm780_vm2, %v759_v40  ;;  %v757_v37 = vmax.f32 %v725_v42, 0.0  ;;  %v730_v46 = vadd.f32 %v5227_v41, %v691_v43  ;;  %v689_v47 = vmul.f32 %v5222_v39, %v591_v45  ;;  %4420 = vmatprep.subr.bf16.mxu0 %v4702_v35  ;;  %v1208_v54 = vld [vmem:[#allocation2 + $0x90] sm:$0xff]  ;;  %v5304_v62 = vpack.c.bf16 %v895_v49, %v894_v59 }
  0xff   : > { %v4287_v51 = vpop.f32.mrf.mxu0  ;;  %v893_v52 = vld [vmem:[#allocation2 + $0x6f] sm:$0xff]  ;;  %4383 = vmatpush3.bf16.msra.mxu1 %v4699_v30  ;;  %v5316_v6 = vpack.c.bf16 %v1208_v54, %v1207_v63 }
 0x100   : > { %v1206_v53 = vld [vmem:[#allocation2 + $0x70] sm:$0xff]  ;;  %863 = vst.msk [vmem:[#allocation2 + $0xb0] sm:$0xff] %vm780_vm2, %v757_v37  ;;  %v762_v38 = vmax.f32 %v730_v46, 0.0  ;;  %v728_v55 = vadd.f32 %v5227_v41, %v689_v47  ;;  %v692_v56 = vmul.f32 %v4287_v51, %v5222_v39  ;;  %v5300_v57 = vpack.c.bf16 %v893_v52, %v892_v48  ;;  %4384 = vmatprep.subr.bf16.mxu1 %v4700_v44 }
 0x101   : > { %v594_v60 = vpop.f32.mrf.mxu0  ;;  %v5302_v61 = vpack.c.bf16 %v1206_v53, %v1205_v58  ;;  %4421 = vmatpush3.bf16.msra.mxu0 %v4702_v35  ;;  %v898_v26 = vld [vmem:[#allocation2 + $0xc7] sm:$0xff] }
 0x102   : > { %868 = vst.msk [vmem:[#allocation2 + $0x108] sm:$0xff] %vm780_vm2, %v762_v38  ;;  %v760_v1 = vmax.f32 %v728_v55, 0.0  ;;  %v731_v2 = vadd.f32 %v5227_v41, %v692_v56  ;;  %v690_v3 = vmul.f32 %v5222_v39, %v594_v60  ;;  %4315 = vmatmul.mubr.msk.bf16.gmra.mxu1 %vm780_vm2, %v5300_v57  ;;  %4422 = vmatprep.subr.bf16.mxu0 %v4703_v50  ;;  %v1211_v32 = vld [vmem:[#allocation2 + $0xc8] sm:$0xff] }
 0x103   : > { %4353 = vmatmul.mubr.msk.bf16.gmra.mxu0 %vm780_vm2, %v5302_v61  ;;  %v4290_v8 = vpop.f32.mrf.mxu0  ;;  %4318 = vmatprep.mubr.msk.bf16.mxu1 %vm780_vm2, %v5304_v62  ;;  %v896_v16 = vld [vmem:[#allocation2 + $0xa7] sm:$0xff] }
 0x104   : > { %866 = vst.msk [vmem:[#allocation2 + $0xe8] sm:$0xff] %vm780_vm2, %v760_v1  ;;  %v763_v9 = vmax.f32 %v731_v2, 0.0  ;;  %v729_v10 = vadd.f32 %v5227_v41, %v690_v3  ;;  %v695_v11 = vmul.f32 %v4290_v8, %v5222_v39  ;;  %4356 = vmatprep.mubr.msk.bf16.mxu0 %vm780_vm2, %v5316_v6  ;;  %4385 = vmatpush3.bf16.msra.mxu1 %v4700_v44  ;;  %v1209_v5 = vld [vmem:[#allocation2 + $0xa8] sm:$0xff] }
 0x105   : > { %v607_v12 = vpop.f32.mrf.mxu0  ;;  %4423 = vmatpush3.bf16.msra.mxu0 %v4703_v50  ;;  %4456 = vmatprep.subr.bf16.mxu1 %v5309_v0  ;;  %v899_v17 = vld [vmem:[#allocation2 + $0xcf] sm:$0xff] }
 0x106   : > { %869 = vst.msk [vmem:[#allocation2 + $0x110] sm:$0xff] %vm780_vm2, %v763_v9  ;;  %v761_v13 = vmax.f32 %v729_v10, 0.0  ;;  %v734_v14 = vadd.f32 %v5227_v41, %v695_v11  ;;  %v693_v15 = vmul.f32 %v5222_v39, %v607_v12  ;;  %4494 = vmatprep.subr.bf16.mxu0 %v5321_v7  ;;  %v1212_v21 = vld [vmem:[#allocation2 + $0xd0] sm:$0xff]  ;;  %v5344_v31 = vpack.c.bf16 %v899_v17, %v898_v26 }
 0x107   : > { %v4291_v18 = vpop.f32.mrf.mxu0  ;;  %v897_v19 = vld [vmem:[#allocation2 + $0xaf] sm:$0xff]  ;;  %v5351_v40 = vpack.c.bf16 %v1212_v21, %v1211_v32 }
 0x108   : > { %v1210_v20 = vld [vmem:[#allocation2 + $0xb0] sm:$0xff]  ;;  %867 = vst.msk [vmem:[#allocation2 + $0xf0] sm:$0xff] %vm780_vm2, %v761_v13  ;;  %v766_v22 = vmax.f32 %v734_v14, 0.0  ;;  %v732_v23 = vadd.f32 %v5227_v41, %v693_v15  ;;  %v696_v24 = vmul.f32 %v4291_v18, %v5222_v39  ;;  %v5340_v4 = vpack.c.bf16 %v897_v19, %v896_v16 }
 0x109   : > { %v610_v29 = vpop.f32.mrf.mxu0  ;;  %v5342_v30 = vpack.c.bf16 %v1210_v20, %v1209_v5  ;;  %v902_v60 = vld [vmem:[#allocation2 + $0x107] sm:$0xff] }
 0x10a   : > { %872 = vst.msk [vmem:[#allocation2 + $0x148] sm:$0xff] %vm780_vm2, %v766_v22  ;;  %v764_v33 = vmax.f32 %v732_v23, 0.0  ;;  %v735_v35 = vadd.f32 %v5227_v41, %v696_v24  ;;  %v694_v36 = vmul.f32 %v5222_v39, %v610_v29  ;;  %4319 = vmatmul.mubr.msk.bf16.gmra.mxu1 %vm780_vm2, %v5340_v4  ;;  %v1215_v3 = vld [vmem:[#allocation2 + $0x108] sm:$0xff] }
 0x10b   : > { %4357 = vmatmul.mubr.msk.bf16.gmra.mxu0 %vm780_vm2, %v5342_v30  ;;  %v4294_v42 = vpop.f32.mrf.mxu0  ;;  %4322 = vmatprep.mubr.msk.bf16.mxu1 %vm780_vm2, %v5344_v31  ;;  %v900_v49 = vld [vmem:[#allocation2 + $0xe7] sm:$0xff] }
 0x10c   : > { %870 = vst.msk [vmem:[#allocation2 + $0x128] sm:$0xff] %vm780_vm2, %v764_v33  ;;  %v767_v43 = vmax.f32 %v735_v35, 0.0  ;;  %v733_v44 = vadd.f32 %v5227_v41, %v694_v36  ;;  %v699_v45 = vmul.f32 %v4294_v42, %v5222_v39  ;;  %4360 = vmatprep.mubr.msk.bf16.mxu0 %vm780_vm2, %v5351_v40  ;;  %v1213_v59 = vld [vmem:[#allocation2 + $0xe8] sm:$0xff] }
 0x10d   : > { %v623_v37 = vpop.f32.mrf.mxu0  ;;  %v903_v50 = vld [vmem:[#allocation2 + $0x10f] sm:$0xff] }
 0x10e   : > { %873 = vst.msk [vmem:[#allocation2 + $0x150] sm:$0xff] %vm780_vm2, %v767_v43  ;;  %v765_v46 = vmax.f32 %v733_v44, 0.0  ;;  %v738_v47 = vadd.f32 %v5227_v41, %v699_v45  ;;  %v697_v48 = vmul.f32 %v5222_v39, %v623_v37  ;;  %v1216_v54 = vld [vmem:[#allocation2 + $0x110] sm:$0xff]  ;;  %v5372_v2 = vpack.c.bf16 %v903_v50, %v902_v60 }
 0x10f   : > { %v4295_v51 = vpop.f32.mrf.mxu0  ;;  %v901_v52 = vld [vmem:[#allocation2 + $0xef] sm:$0xff]  ;;  %v5379_v11 = vpack.c.bf16 %v1216_v54, %v1215_v3 }
 0x110   : > { %v1214_v53 = vld [vmem:[#allocation2 + $0xf0] sm:$0xff]  ;;  %871 = vst.msk [vmem:[#allocation2 + $0x130] sm:$0xff] %vm780_vm2, %v765_v46  ;;  %v770_v38 = vmax.f32 %v738_v47, 0.0  ;;  %v736_v55 = vadd.f32 %v5227_v41, %v697_v48  ;;  %v700_v56 = vmul.f32 %v4295_v51, %v5222_v39  ;;  %v5368_v58 = vpack.c.bf16 %v901_v52, %v900_v49 }
 0x111   : > { %v626_v63 = vpop.f32.mrf.mxu0  ;;  %v5370_v1 = vpack.c.bf16 %v1214_v53, %v1213_v59  ;;  %v906_v36 = vld [vmem:[#allocation2 + $0x147] sm:$0xff] }
 0x112   : > { %876 = vst.msk [vmem:[#allocation2 + $0x188] sm:$0xff] %vm780_vm2, %v770_v38  ;;  %v768_v8 = vmax.f32 %v736_v55, 0.0  ;;  %v739_v9 = vadd.f32 %v5227_v41, %v700_v56  ;;  %v698_v10 = vmul.f32 %v5222_v39, %v626_v63  ;;  %4323 = vmatmul.mubr.msk.bf16.gmra.mxu1 %vm780_vm2, %v5368_v58  ;;  %v1219_v45 = vld [vmem:[#allocation2 + $0x148] sm:$0xff] }
 0x113   : > { %4361 = vmatmul.mubr.msk.bf16.gmra.mxu0 %vm780_vm2, %v5370_v1  ;;  %v4298_v12 = vpop.f32.mrf.mxu0  ;;  %4326 = vmatprep.mubr.msk.bf16.mxu1 %vm780_vm2, %v5372_v2  ;;  %v904_v20 = vld [vmem:[#allocation2 + $0x127] sm:$0xff] }
 0x114   : > { %874 = vst.msk [vmem:[#allocation2 + $0x168] sm:$0xff] %vm780_vm2, %v768_v8  ;;  %v771_v13 = vmax.f32 %v739_v9, 0.0  ;;  %v737_v14 = vadd.f32 %v5227_v41, %v698_v10  ;;  %v703_v15 = vmul.f32 %v4298_v12, %v5222_v39  ;;  %4364 = vmatprep.mubr.msk.bf16.mxu0 %vm780_vm2, %v5379_v11  ;;  %v1217_v35 = vld [vmem:[#allocation2 + $0x128] sm:$0xff] }
 0x115   : > { %v639_v16 = vpop.f32.mrf.mxu0  ;;  %v907_v21 = vld [vmem:[#allocation2 + $0x14f] sm:$0xff] }
 0x116   : > { %877 = vst.msk [vmem:[#allocation2 + $0x190] sm:$0xff] %vm780_vm2, %v771_v13  ;;  %v769_v17 = vmax.f32 %v737_v14, 0.0  ;;  %v742_v18 = vadd.f32 %v5227_v41, %v703_v15  ;;  %v701_v19 = vmul.f32 %v5222_v39, %v639_v16  ;;  %v1220_v5 = vld [vmem:[#allocation2 + $0x150] sm:$0xff]  ;;  %v5400_v44 = vpack.c.bf16 %v907_v21, %v906_v36 }
 0x117   : > { %v4299_v22 = vpop.f32.mrf.mxu0  ;;  %v905_v23 = vld [vmem:[#allocation2 + $0x12f] sm:$0xff]  ;;  %v5407_v48 = vpack.c.bf16 %v1220_v5, %v1219_v45 }
 0x118   : > { %v1218_v24 = vld [vmem:[#allocation2 + $0x130] sm:$0xff]  ;;  %875 = vst.msk [vmem:[#allocation2 + $0x170] sm:$0xff] %vm780_vm2, %v769_v17  ;;  %v774_v26 = vmax.f32 %v742_v18, 0.0  ;;  %v740_v29 = vadd.f32 %v5227_v41, %v701_v19  ;;  %v704_v32 = vmul.f32 %v4299_v22, %v5222_v39  ;;  %v5396_v33 = vpack.c.bf16 %v905_v23, %v904_v20 }
 0x119   : > { %v642_v42 = vpop.f32.mrf.mxu0  ;;  %v5398_v43 = vpack.c.bf16 %v1218_v24, %v1217_v35  ;;  %v910_v15 = vld [vmem:[#allocation2 + $0x187] sm:$0xff] }
 0x11a   : > { %880 = vst.msk [vmem:[#allocation2 + $0x1c8] sm:$0xff] %vm780_vm2, %v774_v26  ;;  %v772_v37 = vmax.f32 %v740_v29, 0.0  ;;  %v743_v46 = vadd.f32 %v5227_v41, %v704_v32  ;;  %v702_v47 = vmul.f32 %v5222_v39, %v642_v42  ;;  %4327 = vmatmul.mubr.msk.bf16.gmra.mxu1 %vm780_vm2, %v5396_v33  ;;  %v1223_v19 = vld [vmem:[#allocation2 + $0x188] sm:$0xff] }
 0x11b   : > { %4365 = vmatmul.mubr.msk.bf16.gmra.mxu0 %vm780_vm2, %v5398_v43  ;;  %v4302_v49 = vpop.f32.mrf.mxu0  ;;  %4330 = vmatprep.mubr.msk.bf16.mxu1 %vm780_vm2, %v5400_v44  ;;  %v908_v56 = vld [vmem:[#allocation2 + $0x167] sm:$0xff] }
 0x11c   : > { %878 = vst.msk [vmem:[#allocation2 + $0x1a8] sm:$0xff] %vm780_vm2, %v772_v37  ;;  %v775_v50 = vmax.f32 %v743_v46, 0.0  ;;  %v741_v51 = vadd.f32 %v5227_v41, %v702_v47  ;;  %v707_v52 = vmul.f32 %v4302_v49, %v5222_v39  ;;  %4368 = vmatprep.mubr.msk.bf16.mxu0 %vm780_vm2, %v5407_v48  ;;  %v1221_v14 = vld [vmem:[#allocation2 + $0x168] sm:$0xff] }
 0x11d   : > { %v655_v53 = vpop.f32.mrf.mxu0  ;;  %v911_v59 = vld [vmem:[#allocation2 + $0x18f] sm:$0xff] }
 0x11e   : > { %881 = vst.msk [vmem:[#allocation2 + $0x1d0] sm:$0xff] %vm780_vm2, %v775_v50  ;;  %v773_v54 = vmax.f32 %v741_v51, 0.0  ;;  %v746_v38 = vadd.f32 %v5227_v41, %v707_v52  ;;  %v705_v55 = vmul.f32 %v5222_v39, %v655_v53  ;;  %v1224_v8 = vld [vmem:[#allocation2 + $0x190] sm:$0xff]  ;;  %v5428_v18 = vpack.c.bf16 %v911_v59, %v910_v15 }
 0x11f   : > { %v4303_v60 = vpop.f32.mrf.mxu0  ;;  %v909_v63 = vld [vmem:[#allocation2 + $0x16f] sm:$0xff]  ;;  %v5435_v23 = vpack.c.bf16 %v1224_v8, %v1223_v19 }
 0x120   : > { %v1222_v3 = vld [vmem:[#allocation2 + $0x170] sm:$0xff]  ;;  %879 = vst.msk [vmem:[#allocation2 + $0x1b0] sm:$0xff] %vm780_vm2, %v773_v54  ;;  %v778_v9 = vmax.f32 %v746_v38, 0.0  ;;  %v744_v10 = vadd.f32 %v5227_v41, %v705_v55  ;;  %v708_v12 = vmul.f32 %v4303_v60, %v5222_v39  ;;  %v5424_v13 = vpack.c.bf16 %v909_v63, %v908_v56 }
 0x121   : > { %v658_v16 = vpop.f32.mrf.mxu0  ;;  %v5426_v17 = vpack.c.bf16 %v1222_v3, %v1221_v14  ;;  %v914_v46 = vld [vmem:[#allocation2 + $0x1c7] sm:$0xff]  ;;  %v1514_v51 = vld [vmem:[#allocation2 + $0x11] sm:$0xff] }
 0x122   : > { %884 = vst.msk [vmem:[#allocation2 + $0x208] sm:$0xff] %vm780_vm2, %v778_v9  ;;  %v776_v20 = vmax.f32 %v744_v10, 0.0  ;;  %v747_v21 = vadd.f32 %v5227_v41, %v708_v12  ;;  %v706_v22 = vmul.f32 %v5222_v39, %v658_v16  ;;  %4331 = vmatmul.mubr.msk.bf16.gmra.mxu1 %vm780_vm2, %v5424_v13  ;;  %v1227_v47 = vld [vmem:[#allocation2 + $0x1c8] sm:$0xff]  ;;  %v1516_v63 = vld [vmem:[#allocation2 + $0x31] sm:$0xff]  ;;  %v4708_v14 = vld [vmem:[%s6398_s6 + $0x80] sm:$0xff]  }
 0x123   : > { %4369 = vmatmul.mubr.msk.bf16.gmra.mxu0 %vm780_vm2, %v5426_v17  ;;  %4334 = vmatprep.mubr.msk.bf16.mxu1 %vm780_vm2, %v5428_v18  ;;  %v912_v26 = vld [vmem:[#allocation2 + $0x1a7] sm:$0xff]  ;;  %v1518_v8 = vld [vmem:[#allocation2 + $0x51] sm:$0xff] }
 0x124   : > { %882 = vst.msk [vmem:[#allocation2 + $0x1e8] sm:$0xff] %vm780_vm2, %v776_v20  ;;  %v779_v24 = vmax.f32 %v747_v21, 0.0  ;;  %v745_v5 = vadd.f32 %v5227_v41, %v706_v22  ;;  %4372 = vmatprep.mubr.msk.bf16.mxu0 %vm780_vm2, %v5435_v23  ;;  %v1225_v29 = vld [vmem:[#allocation2 + $0x1a8] sm:$0xff]  ;;  %v1520_v16 = vld [vmem:[#allocation2 + $0x71] sm:$0xff]  ;;  %v5507_v21 = vld [vmem:[%s6398_s6 + $0xa0] sm:$0xff]  }
 0x125   : > { %v915_v32 = vld [vmem:[#allocation2 + $0x1cf] sm:$0xff] }
 0x126   : > { %885 = vst.msk [vmem:[#allocation2 + $0x210] sm:$0xff] %vm780_vm2, %v779_v24  ;;  %v777_v39 = vmax.f32 %v745_v5, 0.0  ;;  %v1228_v42 = vld [vmem:[#allocation2 + $0x1d0] sm:$0xff]  ;;  %v5451_v41 = vpack.c.bf16 %v915_v32, %v914_v46  ;;  %v4705_v10 = vld [vmem:[%s6398_s6 + $0x68] sm:$0xff]  }
 0x127   : > { %v913_v35 = vld [vmem:[#allocation2 + $0x1af] sm:$0xff]  ;;  %v5455_v49 = vpack.c.bf16 %v1228_v42, %v1227_v47 }
 0x128   : > { %v1226_v36 = vld [vmem:[#allocation2 + $0x1b0] sm:$0xff]  ;;  %883 = vst.msk [vmem:[#allocation2 + $0x1f0] sm:$0xff] %vm780_vm2, %v777_v39  ;;  %v5447_v45 = vpack.c.bf16 %v913_v35, %v912_v26 }
 0x129   : > { %v5449_v37 = vpack.c.bf16 %v1226_v36, %v1225_v29  ;;  %v1513_v50 = vld [vmem:[#allocation2 + $0x9] sm:$0xff]  ;;  %v1522_v20 = vld [vmem:[#allocation2 + $0x91] sm:$0xff] }
 0x12a   : > { %4335 = vmatmul.mubr.msk.bf16.gmra.mxu1 %vm780_vm2, %v5447_v45  ;;  %v1545_v55 = vpack.c.bf16 %v1514_v51, %v1513_v50  ;;  %v1515_v60 = vld [vmem:[#allocation2 + $0x29] sm:$0xff]  ;;  %v1524_v24 = vld [vmem:[#allocation2 + $0xb1] sm:$0xff] }
 0x12b   : > { %4373 = vmatmul.mubr.msk.bf16.gmra.mxu0 %vm780_vm2, %v5449_v37  ;;  %4338 = vmatprep.mubr.msk.bf16.mxu1 %vm780_vm2, %v5451_v41  ;;  %v916_v52 = vld [vmem:[#allocation2 + $0x1e7] sm:$0xff]  ;;  %v5474_v9 = vpack.c.bf16 %v1516_v63, %v1515_v60  ;;  %v1526_v39 = vld [vmem:[#allocation2 + $0xd1] sm:$0xff] }
 0x12c   : > { %4376 = vmatprep.mubr.msk.bf16.mxu0 %vm780_vm2, %v5455_v49  ;;  %v1229_v54 = vld [vmem:[#allocation2 + $0x1e8] sm:$0xff]  ;;  %v1530_v35 = vld [vmem:[#allocation2 + $0x111] sm:$0xff] }
 0x12d   : > { %v1517_v3 = vld [vmem:[#allocation2 + $0x49] sm:$0xff]  ;;  %v1534_v47 = vld [vmem:[#allocation2 + $0x151] sm:$0xff] }
 0x12e   : > { %v5481_v12 = vpack.c.bf16 %v1518_v8, %v1517_v3  ;;  %v1519_v15 = vld [vmem:[#allocation2 + $0x69] sm:$0xff] }
 0x12f   : > { %v917_v53 = vld [vmem:[#allocation2 + $0x1ef] sm:$0xff] }
 0x130   : > { %v1230_v38 = vld [vmem:[#allocation2 + $0x1f0] sm:$0xff]  ;;  %v5463_v56 = vpack.c.bf16 %v917_v53, %v916_v52 }
 0x131   : > { %v5465_v59 = vpack.c.bf16 %v1230_v38, %v1229_v54  ;;  %v1521_v19 = vld [vmem:[#allocation2 + $0x89] sm:$0xff]  ;;  %v1538_v53 = vld [vmem:[#allocation2 + $0x191] sm:$0xff] }
 0x132   : > { %4339 = vmatmul.mubr.msk.bf16.gmra.mxu1 %vm780_vm2, %v5463_v56  ;;  %v1523_v22 = vld [vmem:[#allocation2 + $0xa9] sm:$0xff]  ;;  %v1544_v8 = vld [vmem:[#allocation2 + $0x1f1] sm:$0xff] }
 0x133   : > { %4377 = vmatmul.mubr.msk.bf16.gmra.mxu0 %vm780_vm2, %v5465_v59  ;;  %4386 = vmatprep.mubr.msk.bf16.mxu1 %vm780_vm2, %v1545_v55  ;;  %v1525_v5 = vld [vmem:[#allocation2 + $0xc9] sm:$0xff]  ;;  %v5524_v26 = vpack.c.bf16 %v1524_v24, %v1523_v22  ;;  %v1540_v55 = vld [vmem:[#allocation2 + $0x1b1] sm:$0xff] }
 0x134   : > { %4424 = vmatprep.mubr.msk.bf16.mxu0 %vm780_vm2, %v5258_v25  ;;  %v4706_v25 = vld [vmem:[%s6398_s6 + $0x60] sm:$0xff]   ;;  %v5526_v29 = vpack.c.bf16 %v1526_v39, %v1525_v5  ;;  %v1529_v32 = vld [vmem:[#allocation2 + $0x109] sm:$0xff] }
 0x135   : > { %v5538_v42 = vpack.c.bf16 %v1530_v35, %v1529_v32  ;;  %v1533_v46 = vld [vmem:[#allocation2 + $0x149] sm:$0xff]  ;;  %v4720_v35 = vld [vmem:[%s4929_s13] sm:$0xff] }
 0x136   : > { %v5550_v51 = vpack.c.bf16 %v1534_v47, %v1533_v46  ;;  %v1537_v52 = vld [vmem:[#allocation2 + $0x189] sm:$0xff] }
 0x137   : > { %v1557_v38 = vpack.c.bf16 %v1538_v53, %v1537_v52  ;;  %v1541_v60 = vld [vmem:[#allocation2 + $0x1c9] sm:$0xff] }
 0x138   : > { %v4719_v39 = vld [vmem:[%s4929_s13 + $0x10] sm:$0xff]  ;;  %v2776_v52 = vld [vmem:[#allocation2 + $0xa7] sm:$0xff] }
 0x139   : > { %v3091_v46 = vld [vmem:[#allocation2 + $0xb0] sm:$0xff] }
 0x13a   : > { %4387 = vmatmul.mubr.msk.bf16.vlgmr.msra.gmra.mxu1 %vm780_vm2, %v5474_v9  ;;  %v2779_v47 = vld [vmem:[#allocation2 + $0xcf] sm:$0xff] }
 0x13b   : > { %4425 = vmatmul.mubr.msk.bf16.vlgmr.msra.gmra.mxu0 %vm780_vm2, %v5262_v28  ;;  %4457 = vmatpush3.bf16.msra.mxu1 %v5309_v0  ;;  %v4709_v28 = vld [vmem:[%s6398_s6 + $0x78] sm:$0xff]   ;;  %v5500_v0 = vpack.c.bf16 %v1520_v16, %v1519_v15  ;;  %v2772_v15 = vld [vmem:[#allocation2 + $0x67] sm:$0xff]  ;;  %v2775_v16 = vld [vmem:[#allocation2 + $0x8f] sm:$0xff] }
 0x13c   : > { %4390 = vmatprep.mubr.msk.bf16.mxu1 %vm780_vm2, %v5481_v12  ;;  %4428 = vmatprep.mubr.msk.bf16.mxu0 %vm780_vm2, %v5300_v57  ;;  %v5502_v57 = vpack.c.bf16 %v1522_v20, %v1521_v19  ;;  %v3089_v19 = vld [vmem:[#allocation2 + $0x90] sm:$0xff] }
 0x13d   : > { %4458 = vmatprep.subr.bf16.mxu1 %v4705_v10  ;;  %4495 = vmatpush3.bf16.msra.mxu0 %v5321_v7  ;;  %v5514_v7 = vld [vmem:[%s6398_s6 + $0xb8] sm:$0xff]   ;;  %v3093_v53 = vld [vmem:[#allocation2 + $0xd0] sm:$0xff] }
 0x13e   : > { %4496 = vmatprep.subr.bf16.mxu0 %v4708_v14 }
 0x13f   : > { %4459 = vmatpush3.bf16.msra.mxu1 %v4705_v10  ;;  %v1858_v10 = vld [vmem:[#allocation2 + $0x20f] sm:$0xff] }
 0x140   : > { %4460 = vmatprep.subr.bf16.mxu1 %v4706_v25 }
 0x141   : > { %4497 = vmatpush3.bf16.msra.mxu0 %v4708_v14  ;;  %v1857_v14 = vld [vmem:[#allocation2 + $0x207] sm:$0xff] }
 0x142   : > { %4391 = vmatmul.mubr.msk.bf16.gmra.mxu1 %vm780_vm2, %v5500_v0  ;;  %4498 = vmatprep.subr.bf16.mxu0 %v4709_v28 }
 0x143   : > { %4429 = vmatmul.mubr.msk.bf16.gmra.mxu0 %vm780_vm2, %v5304_v62  ;;  %4394 = vmatprep.mubr.msk.bf16.mxu1 %vm780_vm2, %v5502_v57  ;;  %v1527_v62 = vld [vmem:[#allocation2 + $0xe9] sm:$0xff] }
 0x144   : > { %4432 = vmatprep.mubr.msk.bf16.mxu0 %vm780_vm2, %v5340_v4  ;;  %4461 = vmatpush3.bf16.msra.mxu1 %v4706_v25  ;;  %v1528_v4 = vld [vmem:[#allocation2 + $0xf1] sm:$0xff]  ;;  %v5572_v25 = vpack.c.bf16 %v1858_v10, %v1857_v14  ;;  %v3092_v10 = vld [vmem:[#allocation2 + $0xc8] sm:$0xff] }
 0x145   : > { %4499 = vmatpush3.bf16.msra.mxu0 %v4709_v28  ;;  %4532 = vmatprep.subr.bf16.mxu1 %v5507_v21  ;;  %v5536_v36 = vpack.c.bf16 %v1528_v4, %v1527_v62  ;;  %v3086_v28 = vld [vmem:[#allocation2 + $0x68] sm:$0xff]  ;;  %v4718_v4 = vld [vmem:[%s6398_s6 + $0xc0] sm:$0xff]   ;;  %v3120_v14 = vpack.c.bf16 %v3093_v53, %v3092_v10 }
 0x146   : > { %4570 = vmatprep.subr.bf16.mxu0 %v5514_v7 }
 0x14a   : > { %4395 = vmatmul.mubr.msk.bf16.gmra.mxu1 %vm780_vm2, %v5524_v26 }
 0x14b   : > { %4433 = vmatmul.mubr.msk.bf16.gmra.mxu0 %vm780_vm2, %v5344_v31  ;;  %4398 = vmatprep.mubr.msk.bf16.mxu1 %vm780_vm2, %v5526_v29  ;;  %v1531_v31 = vld [vmem:[#allocation2 + $0x129] sm:$0xff] }
 0x14c   : > { %4436 = vmatprep.mubr.msk.bf16.mxu0 %vm780_vm2, %v5368_v58  ;;  %v1532_v58 = vld [vmem:[#allocation2 + $0x131] sm:$0xff] }
 0x14d   : > { %v5548_v50 = vpack.c.bf16 %v1532_v58, %v1531_v31  ;;  %v2777_v31 = vld [vmem:[#allocation2 + $0xaf] sm:$0xff] }
 0x152   : > { %4399 = vmatmul.mubr.msk.bf16.gmra.mxu1 %vm780_vm2, %v5536_v36 }
 0x153   : > { %4437 = vmatmul.mubr.msk.bf16.gmra.mxu0 %vm780_vm2, %v5372_v2  ;;  %4402 = vmatprep.mubr.msk.bf16.mxu1 %vm780_vm2, %v5538_v42  ;;  %v1535_v2 = vld [vmem:[#allocation2 + $0x169] sm:$0xff] }
 0x154   : > { %4440 = vmatprep.mubr.msk.bf16.mxu0 %vm780_vm2, %v5396_v33  ;;  %v1536_v33 = vld [vmem:[#allocation2 + $0x171] sm:$0xff] }
 0x155   : > { %v1556_v54 = vpack.c.bf16 %v1536_v33, %v1535_v2 }
 0x15a   : > { %4403 = vmatmul.mubr.msk.bf16.gmra.mxu1 %vm780_vm2, %v5548_v50 }
 0x15b   : > { %4441 = vmatmul.mubr.msk.bf16.gmra.mxu0 %vm780_vm2, %v5400_v44  ;;  %4406 = vmatprep.mubr.msk.bf16.mxu1 %vm780_vm2, %v5550_v51  ;;  %v1539_v44 = vld [vmem:[#allocation2 + $0x1a9] sm:$0xff] }
 0x15c   : > { %4444 = vmatprep.mubr.msk.bf16.mxu0 %vm780_vm2, %v5424_v13  ;;  %v1542_v13 = vld [vmem:[#allocation2 + $0x1d1] sm:$0xff]  ;;  %v1558_v63 = vpack.c.bf16 %v1540_v55, %v1539_v44  ;;  %v3090_v44 = vld [vmem:[#allocation2 + $0xa8] sm:$0xff] }
 0x15d   : > { %v1559_v3 = vpack.c.bf16 %v1542_v13, %v1541_v60  ;;  %v2778_v55 = vld [vmem:[#allocation2 + $0xc7] sm:$0xff] }
 0x15e   : > { %v4722_v13 = vld [vmem:[%s4929_s13 + $0x8] sm:$0xff] }
 0x162   : > { %4407 = vmatmul.mubr.msk.bf16.gmra.mxu1 %vm780_vm2, %v1556_v54 }
 0x163   : > { %4445 = vmatmul.mubr.msk.bf16.gmra.mxu0 %vm780_vm2, %v5428_v18  ;;  %4410 = vmatprep.mubr.msk.bf16.mxu1 %vm780_vm2, %v1557_v38  ;;  %v1543_v18 = vld [vmem:[#allocation2 + $0x1e9] sm:$0xff] }
 0x164   : > { %4448 = vmatprep.mubr.msk.bf16.mxu0 %vm780_vm2, %v5447_v45  ;;  %v1560_v45 = vpack.c.bf16 %v1544_v8, %v1543_v18  ;;  %v3119_v18 = vpack.c.bf16 %v3091_v46, %v3090_v44  ;;  %v2806_v8 = vpack.c.bf16 %v2779_v47, %v2778_v55  ;;  %v2784_v55 = vld [vmem:[#allocation2 + $0x127] sm:$0xff] }
 0x16a   : > { %4411 = vmatmul.mubr.msk.bf16.gmra.mxu1 %vm780_vm2, %v1558_v63 }
 0x16b   : > { %4449 = vmatmul.mubr.msk.bf16.gmra.mxu0 %vm780_vm2, %v5451_v41  ;;  %4414 = vmatprep.mubr.msk.bf16.mxu1 %vm780_vm2, %v1559_v3  ;;  %v4711_v41 = vld [vmem:[%s6398_s6 + $0x98] sm:$0xff]  }
 0x16c   : > { %4452 = vmatprep.mubr.msk.bf16.mxu0 %vm780_vm2, %v5463_v56  ;;  %v4714_v56 = vld [vmem:[%s6398_s6 + $0xb0] sm:$0xff]  }
 0x172   : > { %4415 = vmatmul.mubr.msk.bf16.gmra.mxu1 %vm780_vm2, %v1560_v45 }
 0x173   : > { %4453 = vmatmul.mubr.msk.bf16.gmra.mxu0 %vm780_vm2, %v5572_v25  ;;  %4462 = vmatprep.mubr.msk.bf16.mxu1 %vm780_vm2, %v5260_v27  ;;  %v4712_v27 = vld [vmem:[%s6398_s6 + $0x90] sm:$0xff]  }
 0x174   : > { %4500 = vmatprep.mubr.msk.bf16.mxu0 %vm780_vm2, %v5474_v9 }
 0x17a   : > { %4463 = vmatmul.mubr.msk.bf16.vlgmr.msra.gmra.mxu1 %vm780_vm2, %v5272_v34  ;;  %v4715_v34 = vld [vmem:[%s6398_s6 + $0xa8] sm:$0xff]  }
 0x17b   : > { %4501 = vmatmul.mubr.msk.bf16.vlgmr.msra.gmra.mxu0 %vm780_vm2, %v5481_v12  ;;  %4533 = vmatpush3.bf16.msra.mxu1 %v5507_v21  ;;  %v3087_v12 = vld [vmem:[#allocation2 + $0x70] sm:$0xff]  ;;  %v3088_v21 = vld [vmem:[#allocation2 + $0x88] sm:$0xff] }
 0x17c   : > { %4466 = vmatprep.mubr.msk.bf16.mxu1 %vm780_vm2, %v5302_v61  ;;  %4504 = vmatprep.mubr.msk.bf16.mxu0 %vm780_vm2, %v5500_v0  ;;  %v5606_v61 = vld [vmem:[%s6398_s6 + $0xd0] sm:$0xff]   ;;  %v3117_v0 = vpack.c.bf16 %v3087_v12, %v3086_v28  ;;  %v3118_v5 = vpack.c.bf16 %v3089_v19, %v3088_v21  ;;  %v3094_v28 = vld [vmem:[#allocation2 + $0xe8] sm:$0xff] }
 0x17d   : > { %4534 = vmatprep.subr.bf16.mxu1 %v4711_v41  ;;  %4571 = vmatpush3.bf16.msra.mxu0 %v5514_v7  ;;  %v4717_v7 = vld [vmem:[%s6398_s6 + $0xc8] sm:$0xff]  }
 0x17e   : > { %4572 = vmatprep.subr.bf16.mxu0 %v4714_v56  ;;  %v4726_v21 = vld [vmem:[%s4929_s13 + $0x28] sm:$0xff] }
 0x17f   : > { %4535 = vmatpush3.bf16.msra.mxu1 %v4711_v41 }
 0x180   : > { %4536 = vmatprep.subr.bf16.mxu1 %v4712_v27 }
 0x181   : > { %4573 = vmatpush3.bf16.msra.mxu0 %v4714_v56  ;;  %v4723_v56 = vld [vmem:[%s4929_s13 + $0x30] sm:$0xff] }
 0x182   : > { %4467 = vmatmul.mubr.msk.bf16.gmra.mxu1 %vm780_vm2, %v5316_v6  ;;  %4574 = vmatprep.subr.bf16.mxu0 %v4715_v34  ;;  %v2172_v6 = vld [vmem:[#allocation2 + $0x210] sm:$0xff] }
 0x183   : > { %4505 = vmatmul.mubr.msk.bf16.gmra.mxu0 %vm780_vm2, %v5502_v57  ;;  %4470 = vmatprep.mubr.msk.bf16.mxu1 %vm780_vm2, %v5342_v30  ;;  %v2485_v30 = vld [vmem:[#allocation2 + $0x209] sm:$0xff] }
 0x184   : > { %4508 = vmatprep.mubr.msk.bf16.mxu0 %vm780_vm2, %v5524_v26  ;;  %4537 = vmatpush3.bf16.msra.mxu1 %v4712_v27  ;;  %v2774_v57 = vld [vmem:[#allocation2 + $0x87] sm:$0xff] }
 0x185   : > { %4575 = vmatpush3.bf16.msra.mxu0 %v4715_v34  ;;  %4608 = vmatprep.subr.bf16.mxu1 %v5606_v61  ;;  %v2804_v24 = vpack.c.bf16 %v2775_v16, %v2774_v57  ;;  %v3097_v16 = vld [vmem:[#allocation2 + $0x110] sm:$0xff] }
 0x18a   : > { %4471 = vmatmul.mubr.msk.bf16.gmra.mxu1 %vm780_vm2, %v5351_v40  ;;  %v2486_v40 = vld [vmem:[#allocation2 + $0x211] sm:$0xff] }
 0x18b   : > { %4509 = vmatmul.mubr.msk.bf16.gmra.mxu0 %vm780_vm2, %v5526_v29  ;;  %4474 = vmatprep.mubr.msk.bf16.mxu1 %vm780_vm2, %v5370_v1  ;;  %v2771_v1 = vld [vmem:[#allocation2 + $0x4f] sm:$0xff] }
 0x18c   : > { %4512 = vmatprep.mubr.msk.bf16.mxu0 %vm780_vm2, %v5536_v36 }
 0x192   : > { %4475 = vmatmul.mubr.msk.bf16.gmra.mxu1 %vm780_vm2, %v5379_v11  ;;  %v2171_v11 = vld [vmem:[#allocation2 + $0x208] sm:$0xff] }
 0x193   : > { %4513 = vmatmul.mubr.msk.bf16.gmra.mxu0 %vm780_vm2, %v5538_v42  ;;  %4478 = vmatprep.mubr.msk.bf16.mxu1 %vm780_vm2, %v5398_v43  ;;  %v3085_v43 = vld [vmem:[#allocation2 + $0x50] sm:$0xff] }
 0x194   : > { %4516 = vmatprep.mubr.msk.bf16.mxu0 %vm780_vm2, %v5548_v50 }
 0x19a   : > { %4479 = vmatmul.mubr.msk.bf16.gmra.mxu1 %vm780_vm2, %v5407_v48  ;;  %v5652_v48 = vpack.c.bf16 %v2172_v6, %v2171_v11  ;;  %v2781_v11 = vld [vmem:[#allocation2 + $0xef] sm:$0xff] }
 0x19b   : > { %4517 = vmatmul.mubr.msk.bf16.gmra.mxu0 %vm780_vm2, %v5550_v51  ;;  %4482 = vmatprep.mubr.msk.bf16.mxu1 %vm780_vm2, %v5426_v17  ;;  %v2770_v17 = vld [vmem:[#allocation2 + $0x47] sm:$0xff]  ;;  %v4721_v51 = vld [vmem:[%s4929_s13 + $0x18] sm:$0xff] }
 0x19c   : > { %4520 = vmatprep.mubr.msk.bf16.mxu0 %vm780_vm2, %v1556_v54 }
 0x1a2   : > { %4483 = vmatmul.mubr.msk.bf16.gmra.mxu1 %vm780_vm2, %v5435_v23  ;;  %v5654_v23 = vpack.c.bf16 %v2486_v40, %v2485_v30  ;;  %v4724_v30 = vld [vmem:[%s4929_s13 + $0x20] sm:$0xff] }
 0x1a3   : > { %4521 = vmatmul.mubr.msk.bf16.gmra.mxu0 %vm780_vm2, %v1557_v38  ;;  %4486 = vmatprep.mubr.msk.bf16.mxu1 %vm780_vm2, %v5449_v37  ;;  %v2802_v37 = vpack.c.bf16 %v2771_v1, %v2770_v17  ;;  %v2805_v38 = vpack.c.bf16 %v2777_v31, %v2776_v52  ;;  %v3095_v17 = vld [vmem:[#allocation2 + $0xf0] sm:$0xff] }
 0x1a4   : > { %4524 = vmatprep.mubr.msk.bf16.mxu0 %vm780_vm2, %v1558_v63  ;;  %v2787_v52 = vld [vmem:[#allocation2 + $0x14f] sm:$0xff] }
 0x1aa   : > { %4487 = vmatmul.mubr.msk.bf16.gmra.mxu1 %vm780_vm2, %v5455_v49  ;;  %v3084_v49 = vld [vmem:[#allocation2 + $0x48] sm:$0xff] }
 0x1ab   : > { %4525 = vmatmul.mubr.msk.bf16.gmra.mxu0 %vm780_vm2, %v1559_v3  ;;  %4490 = vmatprep.mubr.msk.bf16.mxu1 %vm780_vm2, %v5465_v59  ;;  %v3116_v9 = vpack.c.bf16 %v3085_v43, %v3084_v49  ;;  %v2773_v59 = vld [vmem:[#allocation2 + $0x6f] sm:$0xff] }
 0x1ac   : > { %4528 = vmatprep.mubr.msk.bf16.mxu0 %vm780_vm2, %v1560_v45  ;;  %v2803_v20 = vpack.c.bf16 %v2773_v59, %v2772_v15  ;;  %v2780_v15 = vld [vmem:[#allocation2 + $0xe7] sm:$0xff] }
 0x1b2   : > { %4491 = vmatmul.mubr.msk.bf16.gmra.mxu1 %vm780_vm2, %v5652_v48 }
 0x1b3   : > { %4529 = vmatmul.mubr.msk.bf16.gmra.mxu0 %vm780_vm2, %v5654_v23  ;;  %4538 = vmatprep.mubr.msk.bf16.mxu1 %vm780_vm2, %v2802_v37  ;;  %v2783_v37 = vld [vmem:[#allocation2 + $0x10f] sm:$0xff] }
 0x1b4   : > { %4576 = vmatprep.mubr.msk.bf16.mxu0 %vm780_vm2, %v3116_v9  ;;  %v4725_v9 = vld [vmem:[%s4929_s13 + $0x38] sm:$0xff] }
 0x1ba   : > { %v4312_v22 = vpop.f32.mrf.mxu1  ;;  %4539 = vmatmul.mubr.msk.bf16.vlgmr.msra.gmra.mxu1 %vm780_vm2, %v2803_v20  ;;  %v2807_v20 = vpack.c.bf16 %v2781_v11, %v2780_v15  ;;  %v4731_v11 = vld [vmem:[%s4929_s13 + $0x70] sm:$0xff] }
 0x1bb   : > { %v1169_v26 = vadd.f32 %v4719_v39, %v4312_v22  ;;  %v4350_v29 = vpop.f32.mrf.mxu0  ;;  %4577 = vmatmul.mubr.msk.bf16.vlgmr.msra.gmra.mxu0 %vm780_vm2, %v3117_v0  ;;  %4609 = vmatpush3.bf16.msra.mxu1 %v5606_v61  ;;  %v2782_v0 = vld [vmem:[#allocation2 + $0x107] sm:$0xff] }
 0x1bc   : > { %4542 = vmatprep.mubr.msk.bf16.mxu1 %vm780_vm2, %v2804_v24  ;;  %4580 = vmatprep.mubr.msk.bf16.mxu0 %vm780_vm2, %v3118_v5  ;;  %v1040_v62 = vpop.f32.mrf.mxu1  ;;  %v3121_v24 = vpack.c.bf16 %v3095_v17, %v3094_v28  ;;  %v2808_v5 = vpack.c.bf16 %v2783_v37, %v2782_v0  ;;  %v3096_v39 = vld [vmem:[#allocation2 + $0x108] sm:$0xff] }
 0x1bd   : > { %v5674_v32 = vadd.f32 %v4350_v29, %v1169_v26  ;;  %v1167_v36 = vadd.f32 %v4720_v35, %v1040_v62  ;;  %v1354_v42 = vpop.f32.mrf.mxu0  ;;  %4610 = vmatprep.subr.bf16.mxu1 %v4717_v7  ;;  %v3122_v29 = vpack.c.bf16 %v3097_v16, %v3096_v39  ;;  %v2789_v16 = vld [vmem:[#allocation2 + $0x16f] sm:$0xff] }
 0x1be   : > { %v4313_v58 = vpop.f32.mrf.mxu1  ;;  %v2791_v28 = vld [vmem:[#allocation2 + $0x18f] sm:$0xff] }
 0x1bf   : > { %v5677_v50 = vadd.f32 %v1354_v42, %v1167_v36  ;;  %v1170_v2 = vadd.f32 %v4721_v51, %v4313_v58  ;;  %v4351_v33 = vpop.f32.mrf.mxu0  ;;  %4611 = vmatpush3.bf16.msra.mxu1 %v4717_v7  ;;  %v4728_v58 = vld [vmem:[%s4929_s13 + $0x40] sm:$0xff]  ;;  %v2785_v51 = vld [vmem:[#allocation2 + $0x12f] sm:$0xff] }
 0x1c0   : > { %v1043_v54 = vpop.f32.mrf.mxu1  ;;  %4612 = vmatprep.subr.bf16.mxu1 %v4718_v4 }
 0x1c1   : > { %v5680_v60 = vadd.f32 %v4351_v33, %v1170_v2  ;;  %v1168_v63 = vadd.f32 %v4722_v13, %v1043_v54  ;;  %v1357_v3 = vpop.f32.mrf.mxu0  ;;  %v3099_v33 = vld [vmem:[#allocation2 + $0x130] sm:$0xff]  ;;  %v4729_v54 = vld [vmem:[%s4929_s13 + $0x58] sm:$0xff] }
 0x1c2   : > { %v4316_v45 = vpop.f32.mrf.mxu1  ;;  %4543 = vmatmul.mubr.msk.bf16.gmra.mxu1 %vm780_vm2, %v2805_v38  ;;  %v3101_v13 = vld [vmem:[#allocation2 + $0x150] sm:$0xff] }
 0x1c3   : > { %v5684_v41 = vadd.f32 %v1357_v3, %v1168_v63  ;;  %v1173_v27 = vadd.f32 %v4723_v56, %v4316_v45  ;;  %v4354_v34 = vpop.f32.mrf.mxu0  ;;  %4581 = vmatmul.mubr.msk.bf16.gmra.mxu0 %vm780_vm2, %v3119_v18  ;;  %4546 = vmatprep.mubr.msk.bf16.mxu1 %vm780_vm2, %v2806_v8  ;;  %v2809_v3 = vpack.c.bf16 %v2785_v51, %v2784_v55  ;;  %v3098_v18 = vld [vmem:[#allocation2 + $0x128] sm:$0xff] }
 0x1c4   : > { %4584 = vmatprep.mubr.msk.bf16.mxu0 %vm780_vm2, %v3120_v14  ;;  %v1056_v61 = vpop.f32.mrf.mxu1  ;;  %4613 = vmatpush3.bf16.msra.mxu1 %v4718_v4  ;;  %v4727_v4 = vld [vmem:[%s4929_s13 + $0x50] sm:$0xff]  ;;  %v2786_v8 = vld [vmem:[#allocation2 + $0x147] sm:$0xff] }
 0x1c5   : > { %v5690_v6 = vadd.f32 %v4354_v34, %v1173_v27  ;;  %v1171_v40 = vadd.f32 %v4724_v30, %v1056_v61  ;;  %v1370_v1 = vpop.f32.mrf.mxu0  ;;  %v4730_v45 = vld [vmem:[%s4929_s13 + $0x48] sm:$0xff]  ;;  %v3123_v27 = vpack.c.bf16 %v3099_v33, %v3098_v18  ;;  %v2810_v34 = vpack.c.bf16 %v2787_v52, %v2786_v8 }
 0x1c6   : > { %v4317_v43 = vpop.f32.mrf.mxu1  ;;  %v3100_v61 = vld [vmem:[#allocation2 + $0x148] sm:$0xff] }
 0x1c7   : > { %v5693_v49 = vadd.f32 %v1370_v1, %v1171_v40  ;;  %v1174_v59 = vadd.f32 %v4725_v9, %v4317_v43  ;;  %v4355_v12 = vpop.f32.mrf.mxu0  ;;  %v3124_v40 = vpack.c.bf16 %v3101_v13, %v3100_v61  ;;  %v3104_v51 = vld [vmem:[#allocation2 + $0x188] sm:$0xff] }
 0x1c8   : > { %v1059_v19 = vpop.f32.mrf.mxu1  ;;  %v2793_v8 = vld [vmem:[#allocation2 + $0x1af] sm:$0xff] }
 0x1c9   : > { %v5696_v57 = vadd.f32 %v4355_v12, %v1174_v59  ;;  %v1172_v7 = vadd.f32 %v4726_v21, %v1059_v19  ;;  %v1373_v22 = vpop.f32.mrf.mxu0  ;;  %v4732_v59 = vld [vmem:[%s4929_s13 + $0x60] sm:$0xff]  ;;  %v4733_v21 = vld [vmem:[%s4929_s13 + $0x78] sm:$0xff] }
 0x1ca   : > { %v4320_v26 = vpop.f32.mrf.mxu1  ;;  %4547 = vmatmul.mubr.msk.bf16.gmra.mxu1 %vm780_vm2, %v2807_v20  ;;  %v3103_v20 = vld [vmem:[#allocation2 + $0x170] sm:$0xff] }
 0x1cb   : > { %v5700_v62 = vadd.f32 %v1373_v22, %v1172_v7  ;;  %v1177_v35 = vadd.f32 %v4727_v4, %v4320_v26  ;;  %v4358_v36 = vpop.f32.mrf.mxu0  ;;  %4585 = vmatmul.mubr.msk.bf16.gmra.mxu0 %vm780_vm2, %v3121_v24  ;;  %4550 = vmatprep.mubr.msk.bf16.mxu1 %vm780_vm2, %v2808_v5  ;;  %v2788_v24 = vld [vmem:[#allocation2 + $0x167] sm:$0xff]  ;;  %v3105_v5 = vld [vmem:[#allocation2 + $0x190] sm:$0xff] }
 0x1cc   : > { %4588 = vmatprep.mubr.msk.bf16.mxu0 %vm780_vm2, %v3122_v29  ;;  %v1072_v42 = vpop.f32.mrf.mxu1  ;;  %v2811_v26 = vpack.c.bf16 %v2789_v16, %v2788_v24  ;;  %v3102_v29 = vld [vmem:[#allocation2 + $0x168] sm:$0xff]  ;;  %v3126_v33 = vpack.c.bf16 %v3105_v5, %v3104_v51  ;;  %v4739_v5 = vld [vmem:[%s4929_s13 + $0xb0] sm:$0xff] }
 0x1cd   : > { %v5706_v31 = vadd.f32 %v4358_v36, %v1177_v35  ;;  %v1175_v46 = vadd.f32 %v4728_v58, %v1072_v42  ;;  %v1386_v47 = vpop.f32.mrf.mxu0  ;;  %v2790_v4 = vld [vmem:[#allocation2 + $0x187] sm:$0xff]  ;;  %v3111_v51 = vld [vmem:[#allocation2 + $0x1f0] sm:$0xff] }
 0x1ce   : > { %v4321_v2 = vpop.f32.mrf.mxu1  ;;  %v4734_v36 = vld [vmem:[%s4929_s13 + $0x68] sm:$0xff] }
 0x1cf   : > { %v5709_v53 = vadd.f32 %v1386_v47, %v1175_v46  ;;  %v1178_v38 = vadd.f32 %v4729_v54, %v4321_v2  ;;  %v4359_v44 = vpop.f32.mrf.mxu0  ;;  %v3125_v46 = vpack.c.bf16 %v3103_v20, %v3102_v29  ;;  %v2812_v47 = vpack.c.bf16 %v2791_v28, %v2790_v4  ;;  %v4735_v54 = vld [vmem:[%s4929_s13 + $0x90] sm:$0xff] }
 0x1d0   : > { %v1075_v63 = vpop.f32.mrf.mxu1 }
 0x1d1   : > { %v5712_v10 = vadd.f32 %v4359_v44, %v1178_v38  ;;  %v1176_v14 = vadd.f32 %v4730_v45, %v1075_v63  ;;  %v1389_v56 = vpop.f32.mrf.mxu0  ;;  %v4736_v63 = vld [vmem:[%s4929_s13 + $0x80] sm:$0xff] }
 0x1d2   : > { %v4324_v30 = vpop.f32.mrf.mxu1  ;;  %4551 = vmatmul.mubr.msk.bf16.gmra.mxu1 %vm780_vm2, %v2809_v3 }
 0x1d3   : > { %v5716_v1 = vadd.f32 %v1389_v56, %v1176_v14  ;;  %v1181_v43 = vadd.f32 %v4731_v11, %v4324_v30  ;;  %v4362_v17 = vpop.f32.mrf.mxu0  ;;  %4589 = vmatmul.mubr.msk.bf16.gmra.mxu0 %vm780_vm2, %v3123_v27  ;;  %4554 = vmatprep.mubr.msk.bf16.mxu1 %vm780_vm2, %v2810_v34  ;;  %v3107_v14 = vld [vmem:[#allocation2 + $0x1b0] sm:$0xff]  ;;  %v4737_v34 = vld [vmem:[%s4929_s13 + $0x98] sm:$0xff] }
 0x1d4   : > { %4592 = vmatprep.mubr.msk.bf16.mxu0 %vm780_vm2, %v3124_v40  ;;  %v1088_v37 = vpop.f32.mrf.mxu1  ;;  %v2795_v56 = vld [vmem:[#allocation2 + $0x1cf] sm:$0xff]  ;;  %v2792_v40 = vld [vmem:[#allocation2 + $0x1a7] sm:$0xff] }
 0x1d5   : > { %v5722_v9 = vadd.f32 %v4362_v17, %v1181_v43  ;;  %v1179_v12 = vadd.f32 %v4732_v59, %v1088_v37  ;;  %v1402_v15 = vpop.f32.mrf.mxu0  ;;  %v3109_v11 = vld [vmem:[#allocation2 + $0x1d0] sm:$0xff]  ;;  %v2813_v17 = vpack.c.bf16 %v2793_v8, %v2792_v40  ;;  %v3106_v37 = vld [vmem:[#allocation2 + $0x1a8] sm:$0xff] }
 0x1d6   : > { %v4325_v19 = vpop.f32.mrf.mxu1  ;;  %v2794_v59 = vld [vmem:[#allocation2 + $0x1c7] sm:$0xff]  ;;  %v3127_v20 = vpack.c.bf16 %v3107_v14, %v3106_v37 }
 0x1d7   : > { %v5725_v0 = vadd.f32 %v1402_v15, %v1179_v12  ;;  %v1182_v7 = vadd.f32 %v4733_v21, %v4325_v19  ;;  %v4363_v22 = vpop.f32.mrf.mxu0  ;;  %v4738_v15 = vld [vmem:[%s4929_s13 + $0x88] sm:$0xff]  ;;  %v2814_v28 = vpack.c.bf16 %v2795_v56, %v2794_v59 }
 0x1d8   : > { %v1091_v39 = vpop.f32.mrf.mxu1  ;;  %v3108_v21 = vld [vmem:[#allocation2 + $0x1c8] sm:$0xff] }
 0x1d9   : > { %v5728_v35 = vadd.f32 %v4363_v22, %v1182_v7  ;;  %v1180_v42 = vadd.f32 %v4734_v36, %v1091_v39  ;;  %v1405_v58 = vpop.f32.mrf.mxu0  ;;  %v3128_v22 = vpack.c.bf16 %v3109_v11, %v3108_v21  ;;  %v4740_v36 = vld [vmem:[%s4929_s13 + $0xa0] sm:$0xff]  ;;  %v4742_v8 = vld [vmem:[%s4929_s13 + $0xa8] sm:$0xff] }
 0x1da   : > { %v4328_v2 = vpop.f32.mrf.mxu1  ;;  %4555 = vmatmul.mubr.msk.bf16.gmra.mxu1 %vm780_vm2, %v2811_v26  ;;  %v3114_v59 = vld [vmem:[#allocation2 + $0x228] sm:$0xff] }
 0x1db   : > { %v5732_v52 = vadd.f32 %v1405_v58, %v1180_v42  ;;  %v1185_v38 = vadd.f32 %v4735_v54, %v4328_v2  ;;  %v4366_v44 = vpop.f32.mrf.mxu0  ;;  %4593 = vmatmul.mubr.msk.bf16.gmra.mxu0 %vm780_vm2, %v3125_v46  ;;  %4558 = vmatprep.mubr.msk.bf16.mxu1 %vm780_vm2, %v2812_v47  ;;  %v2797_v46 = vld [vmem:[#allocation2 + $0x1ef] sm:$0xff] }
 0x1dc   : > { %4596 = vmatprep.mubr.msk.bf16.mxu0 %vm780_vm2, %v3126_v33  ;;  %v1104_v55 = vpop.f32.mrf.mxu1  ;;  %v4741_v33 = vld [vmem:[%s4929_s13 + $0xb8] sm:$0xff] }
 0x1dd   : > { %v5738_v13 = vadd.f32 %v4366_v44, %v1185_v38  ;;  %v1183_v3 = vadd.f32 %v4736_v63, %v1104_v55  ;;  %v1418_v18 = vpop.f32.mrf.mxu0  ;;  %v2796_v44 = vld [vmem:[#allocation2 + $0x1e7] sm:$0xff] }
 0x1de   : > { %v4329_v45 = vpop.f32.mrf.mxu1  ;;  %v2815_v63 = vpack.c.bf16 %v2797_v46, %v2796_v44 }
 0x1df   : > { %v5741_v27 = vadd.f32 %v1418_v18, %v1183_v3  ;;  %v1186_v61 = vadd.f32 %v4737_v34, %v4329_v45  ;;  %v4367_v30 = vpop.f32.mrf.mxu0  ;;  %v3110_v3 = vld [vmem:[#allocation2 + $0x1e8] sm:$0xff] }
 0x1e0   : > { %v1107_v43 = vpop.f32.mrf.mxu1  ;;  %v3129_v56 = vpack.c.bf16 %v3111_v51, %v3110_v3 }
 0x1e1   : > { %v5744_v12 = vadd.f32 %v4367_v30, %v1186_v61  ;;  %v1184_v16 = vadd.f32 %v4738_v15, %v1107_v43  ;;  %v1421_v19 = vpop.f32.mrf.mxu0  ;;  %v4743_v30 = vld [vmem:[%s4929_s13 + $0xd0] sm:$0xff]  ;;  %v2800_v43 = vld [vmem:[#allocation2 + $0x227] sm:$0xff] }
 0x1e2   : > { %v4332_v7 = vpop.f32.mrf.mxu1  ;;  %4559 = vmatmul.mubr.msk.bf16.gmra.mxu1 %vm780_vm2, %v2813_v17  ;;  %v2801_v17 = vld [vmem:[#allocation2 + $0x22f] sm:$0xff] }
 0x1e3   : > { %v5748_v24 = vadd.f32 %v1421_v19, %v1184_v16  ;;  %v1189_v39 = vadd.f32 %v4739_v5, %v4332_v7  ;;  %v4370_v26 = vpop.f32.mrf.mxu0  ;;  %4597 = vmatmul.mubr.msk.bf16.gmra.mxu0 %vm780_vm2, %v3127_v20  ;;  %4562 = vmatprep.mubr.msk.bf16.mxu1 %vm780_vm2, %v2814_v28  ;;  %v3115_v15 = vld [vmem:[#allocation2 + $0x230] sm:$0xff]  ;;  %v4744_v19 = vld [vmem:[%s4929_s13 + $0xc0] sm:$0xff]  ;;  %v2817_v7 = vpack.c.bf16 %v2801_v17, %v2800_v43  ;;  %v4749_v17 = vld [vmem:[%s4929_s13 + $0xf8] sm:$0xff] }
 0x1e4   : > { %4600 = vmatprep.mubr.msk.bf16.mxu0 %vm780_vm2, %v3128_v22  ;;  %v1120_v29 = vpop.f32.mrf.mxu1  ;;  %v3398_v22 = vld [vmem:[#allocation2 + $0x49] sm:$0xff] }
 0x1e5   : > { %v5754_v4 = vadd.f32 %v4370_v26, %v1189_v39  ;;  %v1187_v42 = vadd.f32 %v4740_v36, %v1120_v29  ;;  %v1434_v58 = vpop.f32.mrf.mxu0  ;;  %v4745_v39 = vld [vmem:[%s4929_s13 + $0xd8] sm:$0xff] }
 0x1e6   : > { %v4333_v47 = vpop.f32.mrf.mxu1 }
 0x1e7   : > { %v5757_v2 = vadd.f32 %v1434_v58, %v1187_v42  ;;  %v1190_v54 = vadd.f32 %v4741_v33, %v4333_v47  ;;  %v4371_v38 = vpop.f32.mrf.mxu0  ;;  %v4746_v58 = vld [vmem:[%s4929_s13 + $0xc8] sm:$0xff] }
 0x1e8   : > { %v1123_v55 = vpop.f32.mrf.mxu1 }
 0x1e9   : > { %v5760_v18 = vadd.f32 %v4371_v38, %v1190_v54  ;;  %v1188_v45 = vadd.f32 %v4742_v8, %v1123_v55  ;;  %v1437_v14 = vpop.f32.mrf.mxu0  ;;  %v4747_v38 = vld [vmem:[%s4929_s13 + $0xf0] sm:$0xff]  ;;  %v4748_v8 = vld [vmem:[%s4929_s13 + $0xe0] sm:$0xff] }
 0x1ea   : > { %v4336_v34 = vpop.f32.mrf.mxu1  ;;  %4563 = vmatmul.mubr.msk.bf16.gmra.mxu1 %vm780_vm2, %v2815_v63 }
 0x1eb   : > { %v5764_v61 = vadd.f32 %v1437_v14, %v1188_v45  ;;  %v1193_v40 = vadd.f32 %v4743_v30, %v4336_v34  ;;  %v4374_v11 = vpop.f32.mrf.mxu0  ;;  %4601 = vmatmul.mubr.msk.bf16.gmra.mxu0 %vm780_vm2, %v3129_v56  ;;  %4566 = vmatprep.mubr.msk.bf16.mxu1 %vm780_vm2, %v5572_v25  ;;  %v3399_v25 = vld [vmem:[#allocation2 + $0x51] sm:$0xff]  ;;  %v3400_v56 = vld [vmem:[#allocation2 + $0x69] sm:$0xff] }
 0x1ec   : > { %4604 = vmatprep.mubr.msk.bf16.mxu0 %vm780_vm2, %v5652_v48  ;;  %v1136_v37 = vpop.f32.mrf.mxu1  ;;  %v3131_v48 = vpack.c.bf16 %v3115_v15, %v3114_v59  ;;  %v3430_v51 = vpack.c.bf16 %v3399_v25, %v3398_v22  ;;  %v3401_v34 = vld [vmem:[#allocation2 + $0x71] sm:$0xff] }
 0x1ed   : > { %v5772_v16 = vadd.f32 %v4374_v11, %v1193_v40  ;;  %v1191_v20 = vadd.f32 %v4744_v19, %v1136_v37  ;;  %v1450_v28 = vpop.f32.mrf.mxu0  ;;  %v3402_v40 = vld [vmem:[#allocation2 + $0x89] sm:$0xff]  ;;  %v3403_v11 = vld [vmem:[#allocation2 + $0x91] sm:$0xff]  ;;  %v3431_v19 = vpack.c.bf16 %v3401_v34, %v3400_v56 }
 0x1ee   : > { %v4337_v21 = vpop.f32.mrf.mxu1  ;;  %v3432_v22 = vpack.c.bf16 %v3403_v11, %v3402_v40 }
 0x1ef   : > { %v5775_v5 = vadd.f32 %v1450_v28, %v1191_v20  ;;  %v1194_v26 = vadd.f32 %v4745_v39, %v4337_v21  ;;  %v4375_v29 = vpop.f32.mrf.mxu0  ;;  %v4750_v28 = vld [vmem:[%s4929_s13 + $0xe8] sm:$0xff]  ;;  %s269_s13 = sand.u32 1, %s4803_s25  }
 0x1f0   : > { %v1139_v36 = vpop.f32.mrf.mxu1  ;;  %s3824_s20 = sshll.u32 %s269_s13, 8  ;;  %s6352_s28 = scalar_lea.sflag [#allocation4], %s269_s13 }
 0x1f1   : > { %v5778_v42 = vadd.f32 %v4375_v29, %v1194_v26  ;;  %v1192_v46 = vadd.f32 %v4746_v58, %v1139_v36  ;;  %v1453_v47 = vpop.f32.mrf.mxu0  ;;  %s6167_s21 = scalar_lea.vmem [#allocation3], %s3824_s20 }
 0x1f2   : > { %v4340_v33 = vpop.f32.mrf.mxu1  ;;  %4567 = vmatmul.mubr.msk.bf16.gmra.mxu1 %vm780_vm2, %v2817_v7  ;;  %s3758_s23 = sshll.u32 %s6167_s21, 4  ;;  %s6344_s23 = int_to_ptr.vmem [resolvable:$true] %s3758_s23 }
 0x1f3   : > { %v5782_v54 = vadd.f32 %v1453_v47, %v1192_v46  ;;  %v1197_v44 = vadd.f32 %v4747_v38, %v4340_v33  ;;  %v4378_v55 = vpop.f32.mrf.mxu0  ;;  %4614 = vmatprep.mubr.msk.bf16.mxu1 %vm780_vm2, %v3430_v51  ;;  %4605 = vmatmul.mubr.msk.bf16.gmra.mxu0 %vm780_vm2, %v3131_v48  ;;  %v3404_v47 = vld [vmem:[#allocation2 + $0xa9] sm:$0xff]  ;;  %v3405_v51 = vld [vmem:[#allocation2 + $0xb1] sm:$0xff]  ;;  %s4751_s14 = scalar_lea.vmem %s6344_s23, 4096  ;;  %p4758_p0 = scmp.lt.s32.totalorder %s6344_s23, %s4756_s16 }
 0x1f4   : > { %v1152_v63 = vpop.f32.mrf.mxu1  ;;  %v3406_v38 = vld [vmem:[#allocation2 + $0xc9] sm:$0xff]  ;;  %p4752_p11 = scmp.ne.s32.totalorder %s6344_s23, %s4751_s14  ;;  %p4759_p1 = scmp.lt.s32.totalorder %s4757_s17, %s4751_s14 }
 0x1f5   : > { %v5787_v3 = vadd.f32 %v4378_v55, %v1197_v44  ;;  %v1195_v45 = vadd.f32 %v4748_v8, %v1152_v63  ;;  %v1466_v14 = vpop.f32.mrf.mxu0  ;;  %v3407_v44 = vld [vmem:[#allocation2 + $0xd1] sm:$0xff] }
 0x1f6   : > { %v4341_v30 = vpop.f32.mrf.mxu1  ;;  %p4753_p12 = pnand %p4752_p11, %p4895_p5  ;;  %p4760_p2 = por %p4759_p1, %p4758_p0 }
 0x1f7   : > { %v5790_v43 = vadd.f32 %v1466_v14, %v1195_v45  ;;  %v1198_v37 = vadd.f32 %v4749_v17, %v4341_v30  ;;  %v4379_v59 = vpop.f32.mrf.mxu0  ;;  %v3433_v45 = vpack.c.bf16 %v3405_v51, %v3404_v47  ;;  %v3434_v30 = vpack.c.bf16 %v3407_v44, %v3406_v38 }
 0x1f8   : > { %v1155_v15 = vpop.f32.mrf.mxu1  ;;  %p4754_p13 = pneg %p4753_p12 }
 0x1f9   : > { %v5793_v20 = vadd.f32 %v4379_v59, %v1198_v37  ;;  %v1196_v21 = vadd.f32 %v4750_v28, %v1155_v15  ;;  %v1469_v7 = vpop.f32.mrf.mxu0 }
 0x1fa   : > { %v4388_v25 = vpop.f32.mrf.mxu1  ;;  %4615 = vmatmul.mubr.msk.bf16.vlgmr.msra.gmra.mxu1 %vm780_vm2, %v3431_v19  ;;  %v3408_v19 = vld [vmem:[#allocation2 + $0xe9] sm:$0xff]  ;;  %p4761_p3 = pnand %p4760_p2, %p4754_p13 }
 0x1fb   : > { %v5797_v39 = vadd.f32 %v1469_v7, %v1196_v21  ;;  %v1797_v26 = vadd.f32 %v4388_v25, %v5674_v32  ;;  %v4426_v29 = vpop.f32.mrf.mxu0  ;;  %4618 = vmatprep.mubr.msk.bf16.mxu1 %vm780_vm2, %v3432_v22  ;;  %v3410_v21 = vld [vmem:[#allocation2 + $0x109] sm:$0xff]  ;;  %v3411_v7 = vld [vmem:[#allocation2 + $0x111] sm:$0xff] }
 0x1fc   : > { %v1668_v48 = vpop.f32.mrf.mxu1  ;;  %v3436_v47 = vpack.c.bf16 %v3411_v7, %v3410_v21 }
 0x1fd   : > { %v5801_v36 = vadd.f32 %v4426_v29, %v1797_v26  ;;  %v1795_v58 = vadd.f32 %v1668_v48, %v5677_v50  ;;  %v1982_v46 = vpop.f32.mrf.mxu0 }
 0x1fe   : > { %v4389_v33 = vpop.f32.mrf.mxu1 }
 0x1ff   : > { %v5804_v55 = vadd.f32 %v1982_v46, %v1795_v58  ;;  %v1798_v63 = vadd.f32 %v4389_v33, %v5680_v60  ;;  %v4427_v8 = vpop.f32.mrf.mxu0 }
 0x200   : > { %v1671_v32 = vpop.f32.mrf.mxu1 }
 0x201   : > { %v5807_v14 = vadd.f32 %v4427_v8, %v1798_v63  ;;  %v1796_v56 = vadd.f32 %v1671_v32, %v5684_v41  ;;  %v1985_v34 = vpop.f32.mrf.mxu0  ;;  %v3409_v41 = vld [vmem:[#allocation2 + $0xf1] sm:$0xff]  ;;  %v3412_v32 = vld [vmem:[#allocation2 + $0x129] sm:$0xff] }
 0x202   : > { %v4392_v50 = vpop.f32.mrf.mxu1  ;;  %4619 = vmatmul.mubr.msk.bf16.gmra.mxu1 %vm780_vm2, %v3433_v45  ;;  %v3435_v29 = vpack.c.bf16 %v3409_v41, %v3408_v19 }
 0x203   : > { %v5811_v40 = vadd.f32 %v1985_v34, %v1796_v56  ;;  %v1801_v11 = vadd.f32 %v4392_v50, %v5690_v6  ;;  %v4430_v17 = vpop.f32.mrf.mxu0  ;;  %4622 = vmatprep.mubr.msk.bf16.mxu1 %vm780_vm2, %v3434_v30  ;;  %v3414_v56 = vld [vmem:[#allocation2 + $0x149] sm:$0xff]  ;;  %v3415_v34 = vld [vmem:[#allocation2 + $0x151] sm:$0xff] }
 0x204   : > { %v1684_v60 = vpop.f32.mrf.mxu1  ;;  %v3438_v19 = vpack.c.bf16 %v3415_v34, %v3414_v56 }
 0x205   : > { %v5815_v37 = vadd.f32 %v4430_v17, %v1801_v11  ;;  %v1799_v59 = vadd.f32 %v1684_v60, %v5693_v49  ;;  %v1998_v15 = vpop.f32.mrf.mxu0 }
 0x206   : > { %v4393_v28 = vpop.f32.mrf.mxu1 }
 0x207   : > { %v5818_v22 = vadd.f32 %v1998_v15, %v1799_v59  ;;  %v1802_v25 = vadd.f32 %v4393_v28, %v5696_v57  ;;  %v4431_v26 = vpop.f32.mrf.mxu0 }
 0x208   : > { %v1687_v6 = vpop.f32.mrf.mxu1 }
 0x209   : > { %v5821_v48 = vadd.f32 %v4431_v26, %v1802_v25  ;;  %v1800_v58 = vadd.f32 %v1687_v6, %v5700_v62  ;;  %v2001_v46 = vpop.f32.mrf.mxu0  ;;  %v3413_v62 = vld [vmem:[#allocation2 + $0x131] sm:$0xff]  ;;  %v3416_v6 = vld [vmem:[#allocation2 + $0x169] sm:$0xff] }
 0x20a   : > { %v4396_v49 = vpop.f32.mrf.mxu1  ;;  %4623 = vmatmul.mubr.msk.bf16.gmra.mxu1 %vm780_vm2, %v3435_v29  ;;  %v3437_v17 = vpack.c.bf16 %v3413_v62, %v3412_v32 }
 0x20b   : > { %v5825_v51 = vadd.f32 %v2001_v46, %v1800_v58  ;;  %v1805_v33 = vadd.f32 %v4396_v49, %v5706_v31  ;;  %v4434_v38 = vpop.f32.mrf.mxu0  ;;  %4626 = vmatprep.mubr.msk.bf16.mxu1 %vm780_vm2, %v3436_v47  ;;  %v3418_v58 = vld [vmem:[#allocation2 + $0x189] sm:$0xff]  ;;  %v3419_v46 = vld [vmem:[#allocation2 + $0x191] sm:$0xff] }
 0x20c   : > { %v1700_v57 = vpop.f32.mrf.mxu1  ;;  %v3440_v32 = vpack.c.bf16 %v3419_v46, %v3418_v58 }
 0x20d   : > { %v5829_v44 = vadd.f32 %v4434_v38, %v1805_v33  ;;  %v1803_v63 = vadd.f32 %v1700_v57, %v5709_v53  ;;  %v2014_v8 = vpop.f32.mrf.mxu0 }
 0x20e   : > { %v4397_v45 = vpop.f32.mrf.mxu1 }
 0x20f   : > { %v5832_v30 = vadd.f32 %v2014_v8, %v1803_v63  ;;  %v1806_v50 = vadd.f32 %v4397_v45, %v5712_v10  ;;  %v4435_v11 = vpop.f32.mrf.mxu0 }
 0x210   : > { %v1703_v31 = vpop.f32.mrf.mxu1 }
 0x211   : > { %v5835_v60 = vadd.f32 %v4435_v11, %v1806_v50  ;;  %v1804_v59 = vadd.f32 %v1703_v31, %v5716_v1  ;;  %v2017_v15 = vpop.f32.mrf.mxu0  ;;  %v3417_v1 = vld [vmem:[#allocation2 + $0x171] sm:$0xff]  ;;  %v3420_v31 = vld [vmem:[#allocation2 + $0x1a9] sm:$0xff] }
 0x212   : > { %v4400_v53 = vpop.f32.mrf.mxu1  ;;  %4627 = vmatmul.mubr.msk.bf16.gmra.mxu1 %vm780_vm2, %v3437_v17  ;;  %v3439_v38 = vpack.c.bf16 %v3417_v1, %v3416_v6 }
 0x213   : > { %v5839_v41 = vadd.f32 %v2017_v15, %v1804_v59  ;;  %v1809_v28 = vadd.f32 %v4400_v53, %v5722_v9  ;;  %v4438_v21 = vpop.f32.mrf.mxu0  ;;  %4630 = vmatprep.mubr.msk.bf16.mxu1 %vm780_vm2, %v3438_v19  ;;  %v3422_v59 = vld [vmem:[#allocation2 + $0x1c9] sm:$0xff]  ;;  %v3423_v15 = vld [vmem:[#allocation2 + $0x1d1] sm:$0xff] }
 0x214   : > { %v1716_v10 = vpop.f32.mrf.mxu1  ;;  %v3442_v6 = vpack.c.bf16 %v3423_v15, %v3422_v59 }
 0x215   : > { %v5843_v7 = vadd.f32 %v4438_v21, %v1809_v28  ;;  %v1807_v25 = vadd.f32 %v1716_v10, %v5725_v0  ;;  %v2030_v26 = vpop.f32.mrf.mxu0 }
 0x216   : > { %v4401_v29 = vpop.f32.mrf.mxu1 }
 0x217   : > { %v5846_v47 = vadd.f32 %v2030_v26, %v1807_v25  ;;  %v1810_v49 = vadd.f32 %v4401_v29, %v5728_v35  ;;  %v4439_v33 = vpop.f32.mrf.mxu0 }
 0x218   : > { %v1719_v9 = vpop.f32.mrf.mxu1 }
 0x219   : > { %v5849_v57 = vadd.f32 %v4439_v33, %v1810_v49  ;;  %v1808_v63 = vadd.f32 %v1719_v9, %v5732_v52  ;;  %v2033_v8 = vpop.f32.mrf.mxu0  ;;  %v3421_v52 = vld [vmem:[#allocation2 + $0x1b1] sm:$0xff]  ;;  %v3424_v9 = vld [vmem:[#allocation2 + $0x1e9] sm:$0xff] }
 0x21a   : > { %v4404_v0 = vpop.f32.mrf.mxu1  ;;  %4631 = vmatmul.mubr.msk.bf16.gmra.mxu1 %vm780_vm2, %v3439_v38  ;;  %v3441_v21 = vpack.c.bf16 %v3421_v52, %v3420_v31  ;;  %v3429_v52 = vld [vmem:[#allocation2 + $0x231] sm:$0xff] }
 0x21b   : > { %v5853_v62 = vadd.f32 %v2033_v8, %v1808_v63  ;;  %v1813_v45 = vadd.f32 %v4404_v0, %v5738_v13  ;;  %v4442_v56 = vpop.f32.mrf.mxu0  ;;  %4634 = vmatprep.mubr.msk.bf16.mxu1 %vm780_vm2, %v3440_v32 }
 0x21c   : > { %v1732_v35 = vpop.f32.mrf.mxu1 }
 0x21d   : > { %v5857_v34 = vadd.f32 %v4442_v56, %v1813_v45  ;;  %v1811_v50 = vadd.f32 %v1732_v35, %v5741_v27  ;;  %v2046_v11 = vpop.f32.mrf.mxu0 }
 0x21e   : > { %v4405_v17 = vpop.f32.mrf.mxu1 }
 0x21f   : > { %v5860_v19 = vadd.f32 %v2046_v11, %v1811_v50  ;;  %v1814_v53 = vadd.f32 %v4405_v17, %v5744_v12  ;;  %v4443_v28 = vpop.f32.mrf.mxu0 }
 0x220   : > { %v1735_v13 = vpop.f32.mrf.mxu1 }
 0x221   : > { %v5863_v10 = vadd.f32 %v4443_v28, %v1814_v53  ;;  %v1812_v25 = vadd.f32 %v1735_v13, %v5748_v24  ;;  %v2049_v26 = vpop.f32.mrf.mxu0  ;;  %v3425_v24 = vld [vmem:[#allocation2 + $0x1f1] sm:$0xff] }
 0x222   : > { %v4408_v27 = vpop.f32.mrf.mxu1  ;;  %4635 = vmatmul.mubr.msk.bf16.gmra.mxu1 %vm780_vm2, %v3441_v21  ;;  %v3443_v45 = vpack.c.bf16 %v3425_v24, %v3424_v9 }
 0x223   : > { %v5867_v1 = vadd.f32 %v2049_v26, %v1812_v25  ;;  %v1817_v29 = vadd.f32 %v4408_v27, %v5754_v4  ;;  %v4446_v58 = vpop.f32.mrf.mxu0  ;;  %4638 = vmatprep.mubr.msk.bf16.mxu1 %vm780_vm2, %v3442_v6 }
 0x224   : > { %v1748_v12 = vpop.f32.mrf.mxu1 }
 0x225   : > { %v5871_v46 = vadd.f32 %v4446_v58, %v1817_v29  ;;  %v1815_v49 = vadd.f32 %v1748_v12, %v5757_v2  ;;  %v2062_v33 = vpop.f32.mrf.mxu0 }
 0x226   : > { %v4409_v38 = vpop.f32.mrf.mxu1 }
 0x227   : > { %v5874_v63 = vadd.f32 %v2062_v33, %v1815_v49  ;;  %v1818_v8 = vadd.f32 %v4409_v38, %v5760_v18  ;;  %v4447_v32 = vpop.f32.mrf.mxu0  ;;  %v3428_v18 = vld [vmem:[#allocation2 + $0x229] sm:$0xff] }
 0x228   : > { %v1751_v0 = vpop.f32.mrf.mxu1  ;;  %v3445_v28 = vpack.c.bf16 %v3429_v52, %v3428_v18 }
 0x229   : > { %v5877_v4 = vadd.f32 %v4447_v32, %v1818_v8  ;;  %v1816_v56 = vadd.f32 %v1751_v0, %v5764_v61  ;;  %v2065_v35 = vpop.f32.mrf.mxu0 }
 0x22a   : > { %v4412_v50 = vpop.f32.mrf.mxu1  ;;  %4639 = vmatmul.mubr.msk.bf16.gmra.mxu1 %vm780_vm2, %v3443_v45 }
 0x22b   : > { %v5881_v2 = vadd.f32 %v2065_v35, %v1816_v56  ;;  %v1821_v11 = vadd.f32 %v4412_v50, %v5772_v16  ;;  %v4450_v31 = vpop.f32.mrf.mxu0  ;;  %4642 = vmatprep.mubr.msk.bf16.mxu1 %vm780_vm2, %v5654_v23 }
 0x22c   : > { %v1764_v17 = vpop.f32.mrf.mxu1 }
 0x22d   : > { %v5886_v59 = vadd.f32 %v4450_v31, %v1821_v11  ;;  %v1819_v15 = vadd.f32 %v1764_v17, %v5775_v5  ;;  %v2078_v61 = vpop.f32.mrf.mxu0 }
 0x22e   : > { %v4413_v53 = vpop.f32.mrf.mxu1 }
 0x22f   : > { %v5889_v13 = vadd.f32 %v2078_v61, %v1819_v15  ;;  %v1822_v21 = vadd.f32 %v4413_v53, %v5778_v42  ;;  %v4451_v25 = vpop.f32.mrf.mxu0 }
 0x230   : > { %v1767_v16 = vpop.f32.mrf.mxu1 }
 0x231   : > { %v5892_v26 = vadd.f32 %v4451_v25, %v1822_v21  ;;  %v1820_v23 = vadd.f32 %v1767_v16, %v5782_v54  ;;  %v2081_v6 = vpop.f32.mrf.mxu0 }
 0x232   : > { %v4416_v27 = vpop.f32.mrf.mxu1  ;;  %4643 = vmatmul.mubr.msk.bf16.gmra.mxu1 %vm780_vm2, %v3445_v28 }
 0x233   : > { %v5896_v29 = vadd.f32 %v2081_v6, %v1820_v23  ;;  %v1825_v5 = vadd.f32 %v4416_v27, %v5787_v3  ;;  %v4454_v58 = vpop.f32.mrf.mxu0 }
 0x234   : > { %v1780_v12 = vpop.f32.mrf.mxu1 }
 0x235   : > { %v5899_v49 = vadd.f32 %v4454_v58, %v1825_v5  ;;  %v1823_v42 = vadd.f32 %v1780_v12, %v5790_v43  ;;  %v2094_v33 = vpop.f32.mrf.mxu0 }
 0x236   : > { %v4417_v9 = vpop.f32.mrf.mxu1 }
 0x237   : > { %v5902_v24 = vadd.f32 %v2094_v33, %v1823_v42  ;;  %v1826_v54 = vadd.f32 %v4417_v9, %v5793_v20  ;;  %v4455_v38 = vpop.f32.mrf.mxu0 }
 0x238   : > { %v1783_v8 = vpop.f32.mrf.mxu1 }
 0x239   : > { %v5905_v32 = vadd.f32 %v4455_v38, %v1826_v54  ;;  %v1824_v0 = vadd.f32 %v1783_v8, %v5797_v39  ;;  %v2097_v45 = vpop.f32.mrf.mxu0 }
 0x23a   : > { %v4464_v3 = vpop.f32.mrf.mxu1 }
 0x23b   : > { %v5908_v56 = vadd.f32 %v2097_v45, %v1824_v0  ;;  %v5911_v35 = vadd.f32 %v4464_v3, %v5801_v36  ;;  %v5913_v43 = vpop.f32.mrf.mxu0 }
 0x23c   : > { %v2296_v50 = vpop.f32.mrf.mxu1 }
 0x23d   : > { %v5916_v11 = vadd.f32 %v2296_v50, %v5804_v55  ;;  %v5918_v20 = vpop.f32.mrf.mxu0 }
 0x23e   : > { %v4465_v31 = vpop.f32.mrf.mxu1 }
 0x23f   : > { %v5921_v18 = vadd.f32 %v4465_v31, %v5807_v14  ;;  %v5923_v39 = vpop.f32.mrf.mxu0 }
 0x240   : > { %v2299_v52 = vpop.f32.mrf.mxu1 }
 0x241   : > { %v5926_v17 = vadd.f32 %v2299_v52, %v5811_v40  ;;  %v5928_v36 = vpop.f32.mrf.mxu0 }
 0x242   : > { %v4468_v15 = vpop.f32.mrf.mxu1 }
 0x243   : > { %v5931_v61 = vadd.f32 %v4468_v15, %v5815_v37  ;;  %v5933_v55 = vpop.f32.mrf.mxu0 }
 0x244   : > { %v2312_v53 = vpop.f32.mrf.mxu1 }
 0x245   : > { %v5936_v28 = vadd.f32 %v2312_v53, %v5818_v22  ;;  %v5938_v14 = vpop.f32.mrf.mxu0 }
 0x246   : > { %v4469_v21 = vpop.f32.mrf.mxu1 }
 0x247   : > { %v5941_v25 = vadd.f32 %v4469_v21, %v5821_v48  ;;  %v5943_v40 = vpop.f32.mrf.mxu0 }
 0x248   : > { %v2315_v16 = vpop.f32.mrf.mxu1 }
 0x249   : > { %v5946_v23 = vadd.f32 %v2315_v16, %v5825_v51  ;;  %v5948_v37 = vpop.f32.mrf.mxu0 }
 0x24a   : > { %v4472_v6 = vpop.f32.mrf.mxu1 }
 0x24b   : > { %v5951_v27 = vadd.f32 %v4472_v6, %v5829_v44  ;;  %v5953_v22 = vpop.f32.mrf.mxu0 }
 0x24c   : > { %v2328_v5 = vpop.f32.mrf.mxu1 }
 0x24d   : > { %v5956_v58 = vadd.f32 %v2328_v5, %v5832_v30  ;;  %v5958_v48 = vpop.f32.mrf.mxu0 }
 0x24e   : > { %v4473_v12 = vpop.f32.mrf.mxu1 }
 0x24f   : > { %v5961_v42 = vadd.f32 %v4473_v12, %v5835_v60  ;;  %v5963_v51 = vpop.f32.mrf.mxu0 }
 0x250   : > { %v2331_v33 = vpop.f32.mrf.mxu1 }
 0x251   : > { %v5966_v9 = vadd.f32 %v2331_v33, %v5839_v41  ;;  %v5968_v44 = vpop.f32.mrf.mxu0 }
 0x252   : > { %v4476_v54 = vpop.f32.mrf.mxu1 }
 0x253   : > { %v5971_v38 = vadd.f32 %v4476_v54, %v5843_v7  ;;  %v5973_v30 = vpop.f32.mrf.mxu0 }
 0x254   : > { %v2344_v8 = vpop.f32.mrf.mxu1 }
 0x255   : > { %v5976_v0 = vadd.f32 %v2344_v8, %v5846_v47  ;;  %v5978_v60 = vpop.f32.mrf.mxu0 }
 0x256   : > { %v4477_v45 = vpop.f32.mrf.mxu1 }
 0x257   : > { %v5981_v3 = vadd.f32 %v4477_v45, %v5849_v57  ;;  %v5983_v41 = vpop.f32.mrf.mxu0 }
 0x258   : > { %v2347_v50 = vpop.f32.mrf.mxu1 }
 0x259   : > { %v5986_v31 = vadd.f32 %v2347_v50, %v5853_v62  ;;  %v5988_v7 = vpop.f32.mrf.mxu0 }
 0x25a   : > { %6403 = vst [vmem:[#allocation7_spill] sm:$0xff] %v5988_v7  ;;  %v4480_v52 = vpop.f32.mrf.mxu1 }
 0x25b   : > { %6402 = vst [vmem:[#allocation6_spill] sm:$0xff] %v5986_v31  ;;  %v5991_v15 = vadd.f32 %v4480_v52, %v5857_v34  ;;  %v5993_v47 = vpop.f32.mrf.mxu0 }
 0x25c   : > { %6405 = vst [vmem:[#allocation9_spill] sm:$0xff] %v5993_v47  ;;  %v2360_v53 = vpop.f32.mrf.mxu1 }
 0x25d   : > { %6404 = vst [vmem:[#allocation8_spill] sm:$0xff] %v5991_v15  ;;  %v5996_v21 = vadd.f32 %v2360_v53, %v5860_v19  ;;  %v5998_v57 = vpop.f32.mrf.mxu0 }
 0x25e   : > { %6407 = vst [vmem:[#allocation11_spill] sm:$0xff] %v5998_v57  ;;  %v4481_v16 = vpop.f32.mrf.mxu1 }
 0x25f   : > { %6406 = vst [vmem:[#allocation10_spill] sm:$0xff] %v5996_v21  ;;  %v6001_v6 = vadd.f32 %v4481_v16, %v5863_v10  ;;  %v6003_v62 = vpop.f32.mrf.mxu0 }
 0x260   : > { %6409 = vst [vmem:[#allocation13_spill] sm:$0xff] %v6003_v62  ;;  %v2363_v5 = vpop.f32.mrf.mxu1 }
 0x261   : > { %6408 = vst [vmem:[#allocation12_spill] sm:$0xff] %v6001_v6  ;;  %v6006_v12 = vadd.f32 %v2363_v5, %v5867_v1  ;;  %v6008_v34 = vpop.f32.mrf.mxu0 }
 0x262   : > { %6411 = vst [vmem:[#allocation15_spill] sm:$0xff] %v6008_v34  ;;  %v4484_v33 = vpop.f32.mrf.mxu1 }
 0x263   : > { %6410 = vst [vmem:[#allocation14_spill] sm:$0xff] %v6006_v12  ;;  %v6011_v54 = vadd.f32 %v4484_v33, %v5871_v46  ;;  %v6013_v19 = vpop.f32.mrf.mxu0 }
 0x264   : > { %6413 = vst [vmem:[#allocation17_spill] sm:$0xff] %v6013_v19  ;;  %v2376_v8 = vpop.f32.mrf.mxu1 }
 0x265   : > { %6412 = vst [vmem:[#allocation16_spill] sm:$0xff] %v6011_v54  ;;  %v6016_v45 = vadd.f32 %v2376_v8, %v5874_v63  ;;  %v6018_v10 = vpop.f32.mrf.mxu0 }
 0x266   : > { %6415 = vst [vmem:[#allocation19_spill] sm:$0xff] %v6018_v10  ;;  %v4485_v50 = vpop.f32.mrf.mxu1 }
 0x267   : > { %6414 = vst [vmem:[#allocation18_spill] sm:$0xff] %v6016_v45  ;;  %v6021_v52 = vadd.f32 %v4485_v50, %v5877_v4  ;;  %v6023_v1 = vpop.f32.mrf.mxu0 }
 0x268   : > { %6417 = vst [vmem:[#allocation21_spill] sm:$0xff] %v6023_v1  ;;  %v2379_v53 = vpop.f32.mrf.mxu1 }
 0x269   : > { %6416 = vst [vmem:[#allocation20_spill] sm:$0xff] %v6021_v52  ;;  %v6026_v16 = vadd.f32 %v2379_v53, %v5881_v2  ;;  %v6028_v46 = vpop.f32.mrf.mxu0 }
 0x26a   : > { %6419 = vst [vmem:[#allocation23_spill] sm:$0xff] %v6028_v46  ;;  %v4488_v5 = vpop.f32.mrf.mxu1 }
 0x26b   : > { %6418 = vst [vmem:[#allocation22_spill] sm:$0xff] %v6026_v16  ;;  %v6031_v33 = vadd.f32 %v4488_v5, %v5886_v59  ;;  %v6033_v63 = vpop.f32.mrf.mxu0 }
 0x26c   : > { %6421 = vst [vmem:[#allocation25_spill] sm:$0xff] %v6033_v63  ;;  %v2392_v8 = vpop.f32.mrf.mxu1 }
 0x26d   : > { %6420 = vst [vmem:[#allocation24_spill] sm:$0xff] %v6031_v33  ;;  %v6036_v10 = vadd.f32 %v2392_v8, %v5889_v13  ;;  %v6038_v4 = vpop.f32.mrf.mxu0 }
 0x26e   : > { %6423 = vst [vmem:[#allocation27_spill] sm:$0xff] %v6038_v4  ;;  %v4489_v50 = vpop.f32.mrf.mxu1 }
 0x26f   : > { %6422 = vst [vmem:[#allocation26_spill] sm:$0xff] %v6036_v10  ;;  %v6041_v1 = vadd.f32 %v4489_v50, %v5892_v26  ;;  %v6043_v2 = vpop.f32.mrf.mxu0 }
 0x270   : > { %6425 = vst [vmem:[#allocation29_spill] sm:$0xff] %v6043_v2  ;;  %v2395_v53 = vpop.f32.mrf.mxu1 }
 0x271   : > { %6424 = vst [vmem:[#allocation28_spill] sm:$0xff] %v6041_v1  ;;  %v6046_v46 = vadd.f32 %v2395_v53, %v5896_v29  ;;  %v6048_v59 = vpop.f32.mrf.mxu0 }
 0x272   : > { %6427 = vst [vmem:[#allocation31_spill] sm:$0xff] %v6048_v59  ;;  %v4492_v5 = vpop.f32.mrf.mxu1 }
 0x273   : > { %6426 = vst [vmem:[#allocation30_spill] sm:$0xff] %v6046_v46  ;;  %v6051_v63 = vadd.f32 %v4492_v5, %v5899_v49  ;;  %v6053_v13 = vpop.f32.mrf.mxu0 }
 0x274   : > { %6429 = vst [vmem:[#allocation33_spill] sm:$0xff] %v6053_v13  ;;  %v2408_v8 = vpop.f32.mrf.mxu1 }
 0x275   : > { %6428 = vst [vmem:[#allocation32_spill] sm:$0xff] %v6051_v63  ;;  %v6056_v4 = vadd.f32 %v2408_v8, %v5902_v24  ;;  %v6058_v26 = vpop.f32.mrf.mxu0 }
 0x276   : > { %6431 = vst [vmem:[#allocation35_spill] sm:$0xff] %v6058_v26  ;;  %v4493_v50 = vpop.f32.mrf.mxu1 }
 0x277   : > { %6430 = vst [vmem:[#allocation34_spill] sm:$0xff] %v6056_v4  ;;  %v6061_v2 = vadd.f32 %v4493_v50, %v5905_v32  ;;  %v6063_v29 = vpop.f32.mrf.mxu0 }
 0x278   : > { %6433 = vst [vmem:[#allocation37_spill] sm:$0xff] %v6063_v29  ;;  %v2411_v53 = vpop.f32.mrf.mxu1 }
 0x279   : > { %6432 = vst [vmem:[#allocation36_spill] sm:$0xff] %v6061_v2  ;;  %v6066_v59 = vadd.f32 %v2411_v53, %v5908_v56  ;;  %v6068_v49 = vpop.f32.mrf.mxu0 }
 0x27a   : > { %6435 = vst [vmem:[#allocation39_spill] sm:$0xff] %v6068_v49  ;;  %v4540_v5 = vpop.f32.mrf.mxu1 }
 0x27b   : > { %6434 = vst [vmem:[#allocation38_spill] sm:$0xff] %v6066_v59  ;;  %v4578_v13 = vpop.f32.mrf.mxu0 }
 0x27c   : > { %v2925_v63 = vpop.f32.mrf.mxu1 }
 0x27d   : > { %v3239_v46 = vpop.f32.mrf.mxu0 }
 0x27e   : > { %v4541_v24 = vpop.f32.mrf.mxu1 }
 0x27f   : > { %v4579_v4 = vpop.f32.mrf.mxu0 }
 0x280   : > { %v2928_v8 = vpop.f32.mrf.mxu1 }
 0x281   : > { %v6072_v32 = vpop.f32.mrf.mxu0 }
 0x282   : > { %v4544_v26 = vpop.f32.mrf.mxu1 }
 0x283   : > { %v6078_v56 = vpop.f32.mrf.mxu0 }
 0x284   : > { %v6070_v1 = vpop.f32.mrf.mxu1 }
 0x285   : > { %v6084_v59 = vpop.f32.mrf.mxu0 }
 0x286   : > { %v6074_v50 = vpop.f32.mrf.mxu1 }
 0x287   : > { %v6090_v33 = vpop.f32.mrf.mxu0 }
 0x288   : > { %v6076_v29 = vpop.f32.mrf.mxu1 }
 0x289   : > { %v6096_v45 = vpop.f32.mrf.mxu0 }
 0x28a   : > { %v6080_v53 = vpop.f32.mrf.mxu1 }
 0x28b   : > { %v6102_v34 = vpop.f32.mrf.mxu0 }
 0x28c   : > { %v6082_v49 = vpop.f32.mrf.mxu1 }
 0x28d   : > { %v6108_v6 = vpop.f32.mrf.mxu0 }
 0x28e   : > { %v6086_v2 = vpop.f32.mrf.mxu1 }
 0x28f   : > { %v6114_v47 = vpop.f32.mrf.mxu0 }
 0x290   : > { %v6088_v10 = vpop.f32.mrf.mxu1 }
 0x292   : > { %v6092_v16 = vpop.f32.mrf.mxu1 }
 0x294   : > { %v6094_v52 = vpop.f32.mrf.mxu1 }
 0x295   : > { %6436 = vst [vmem:[#allocation40_spill] sm:$0xff] %v6094_v52 }
 0x296   : > { %v6098_v19 = vpop.f32.mrf.mxu1 }
 0x297   : > { %6437 = vst [vmem:[#allocation41_spill] sm:$0xff] %v6098_v19 }
 0x298   : > { %v6100_v54 = vpop.f32.mrf.mxu1 }
 0x299   : > { %6438 = vst [vmem:[#allocation42_spill] sm:$0xff] %v6100_v54  ;;  %v6120_v54 = vpop.f32.mrf.mxu0 }
 0x29a   : > { %v6104_v12 = vpop.f32.mrf.mxu1  ;;  %6445 = vst [vmem:[#allocation49_spill] sm:$0xff] %v6120_v54 }
 0x29b   : > { %6439 = vst [vmem:[#allocation43_spill] sm:$0xff] %v6104_v12 }
 0x29c   : > { %v6106_v62 = vpop.f32.mrf.mxu1 }
 0x29d   : > { %6440 = vst [vmem:[#allocation44_spill] sm:$0xff] %v6106_v62  ;;  %v6126_v62 = vpop.f32.mrf.mxu0 }
 0x29e   : > { %v6110_v57 = vpop.f32.mrf.mxu1  ;;  %6448 = vst [vmem:[#allocation52_spill] sm:$0xff] %v6126_v62 }
 0x29f   : > { %6441 = vst [vmem:[#allocation45_spill] sm:$0xff] %v6110_v57 }
 0x2a0   : > { %v6112_v21 = vpop.f32.mrf.mxu1 }
 0x2a1   : > { %6442 = vst [vmem:[#allocation46_spill] sm:$0xff] %v6112_v21  ;;  %v6132_v21 = vpop.f32.mrf.mxu0 }
 0x2a2   : > { %v6116_v15 = vpop.f32.mrf.mxu1  ;;  %6451 = vst [vmem:[#allocation55_spill] sm:$0xff] %v6132_v21 }
 0x2a3   : > { %6443 = vst [vmem:[#allocation47_spill] sm:$0xff] %v6116_v15 }
 0x2a4   : > { %v6118_v19 = vpop.f32.mrf.mxu1 }
 0x2a5   : > { %6444 = vst [vmem:[#allocation48_spill] sm:$0xff] %v6118_v19  ;;  %v6138_v19 = vpop.f32.mrf.mxu0 }
 0x2a6   : > { %v6122_v7 = vpop.f32.mrf.mxu1  ;;  %6454 = vst [vmem:[#allocation58_spill] sm:$0xff] %v6138_v19 }
 0x2a7   : > { %6446 = vst [vmem:[#allocation50_spill] sm:$0xff] %v6122_v7  ;;  %v6149_v62 = vpop.f32.mrf.mxu0 }
 0x2a8   : > { %v6124_v12 = vpop.f32.mrf.mxu1 }
 0x2a9   : > { %6447 = vst [vmem:[#allocation51_spill] sm:$0xff] %v6124_v12  ;;  %v2739_v12 = vadd.f32 %v5913_v43, %v5911_v35  ;;  %v2738_v35 = vadd.f32 %v5928_v36, %v5926_v17  ;;  %v6161_v19 = vpop.f32.mrf.mxu0 }
 0x2aa   : > { %v6128_v31 = vpop.f32.mrf.mxu1 }
 0x2ab   : > { %6449 = vst [vmem:[#allocation53_spill] sm:$0xff] %v6128_v31  ;;  %v2737_v31 = vadd.f32 %v5918_v20, %v5916_v11  ;;  %v2743_v20 = vadd.f32 %v5933_v55, %v5931_v61  ;;  %v6171_v36 = vpop.f32.mrf.mxu0  ;;  %v2744_v55 = vadd.f32 %v5943_v40, %v5941_v25 }
 0x2ac   : > { %v6130_v57 = vpop.f32.mrf.mxu1 }
 0x2ad   : > { %6450 = vst [vmem:[#allocation54_spill] sm:$0xff] %v6130_v57  ;;  %v3054_v57 = vadd.f32 %v4540_v5, %v2739_v12  ;;  %v3053_v5 = vadd.f32 %v2928_v8, %v2738_v35  ;;  %v6185_v40 = vpop.f32.mrf.mxu0 }
 0x2ae   : > { %v6134_v52 = vpop.f32.mrf.mxu1 }
 0x2af   : > { %6452 = vst [vmem:[#allocation56_spill] sm:$0xff] %v6134_v52  ;;  %v3052_v52 = vadd.f32 %v2925_v63, %v2737_v31  ;;  %v3368_v43 = vadd.f32 %v4578_v13, %v3054_v57  ;;  %v3058_v63 = vadd.f32 %v4544_v26, %v2743_v20  ;;  %v2742_v57 = vadd.f32 %v5948_v37, %v5946_v23  ;;  %v6458_v20 = vld [vmem:[#allocation49_spill] sm:$0xff] }
 0x2b0   : > { %v6136_v15 = vpop.f32.mrf.mxu1  ;;  %v2745_v26 = vadd.f32 %v5958_v48, %v5956_v58 }
 0x2b1   : > { %6453 = vst [vmem:[#allocation57_spill] sm:$0xff] %v6136_v15  ;;  %v2740_v15 = vadd.f32 %v5923_v39, %v5921_v18  ;;  %v3366_v12 = vadd.f32 %v3239_v46, %v3052_v52  ;;  %v2741_v39 = vadd.f32 %v5938_v14, %v5936_v28  ;;  %v3059_v52 = vadd.f32 %v6074_v50, %v2744_v55 }
 0x2b2   : > { %v6140_v54 = vpop.f32.mrf.mxu1  ;;  %v3057_v13 = vadd.f32 %v6076_v29, %v2742_v57  ;;  %v2748_v29 = vadd.f32 %v5963_v51, %v5961_v42  ;;  %v3060_v50 = vadd.f32 %v6082_v49, %v2745_v26  ;;  %v2751_v49 = vadd.f32 %v5973_v30, %v5971_v38  ;;  %v6471_v26 = vld [vmem:[#allocation43_spill] sm:$0xff] }
 0x2b3   : > { %6455 = vst [vmem:[#allocation59_spill] sm:$0xff] %v6140_v54  ;;  %v3056_v28 = vadd.f32 %v6070_v1, %v2741_v39  ;;  %v2747_v1 = vadd.f32 %v5953_v22, %v5951_v27  ;;  %v6199_v22 = vpop.f32.mrf.mxu0 }
 0x2b4   : > { %v6144_v7 = vpop.f32.mrf.mxu1  ;;  %v3374_v35 = vadd.f32 %v6108_v6, %v3060_v50 }
 0x2b5   : > { %6456 = vst [vmem:[#allocation60_spill] sm:$0xff] %v6144_v7  ;;  %v3055_v7 = vadd.f32 %v4541_v24, %v2740_v15  ;;  %v3367_v15 = vadd.f32 %v6072_v32, %v3053_v5  ;;  %v3373_v24 = vadd.f32 %v6090_v33, %v3059_v52  ;;  %v3062_v8 = vadd.f32 %v6080_v53, %v2747_v1  ;;  %v6213_v51 = vpop.f32.mrf.mxu0  ;;  %v6459_v5 = vld [vmem:[#allocation40_spill] sm:$0xff]  ;;  %v6468_v1 = vld [vmem:[#allocation10_spill] sm:$0xff] }
 0x2b6   : > { %v6151_v21 = vpop.f32.mrf.mxu1  ;;  %v3371_v32 = vadd.f32 %v6096_v45, %v3057_v13  ;;  %v2746_v33 = vadd.f32 %v5968_v44, %v5966_v9  ;;  %v3063_v53 = vadd.f32 %v6086_v2, %v2748_v29  ;;  %v6472_v29 = vld [vmem:[#allocation12_spill] sm:$0xff] }
 0x2b7   : > { %6457 = vst [vmem:[#allocation61_spill] sm:$0xff] %v6151_v21  ;;  %v3369_v31 = vadd.f32 %v4579_v4, %v3055_v7  ;;  %v3370_v4 = vadd.f32 %v6084_v59, %v3056_v28  ;;  %v6227_v30 = vpop.f32.mrf.mxu0  ;;  %v6465_v28 = vld [vmem:[#allocation9_spill] sm:$0xff] }
 0x2b8   : > { %v6157_v54 = vpop.f32.mrf.mxu1  ;;  %v3377_v2 = vadd.f32 %v6114_v47, %v3063_v53  ;;  %v6460_v47 = vld [vmem:[#allocation6_spill] sm:$0xff] }
 0x2ba   : > { %v4616_v11 = vpop.f32.mrf.mxu1 }
 0x2bb   : > { %v3682_v21 = vadd.f32 %v4616_v11, %v3368_v43  ;;  %v3061_v43 = vadd.f32 %v6088_v10, %v2746_v33  ;;  %v3066_v11 = vadd.f32 %v6092_v16, %v2751_v49  ;;  %v2752_v10 = vadd.f32 %v5983_v41, %v5981_v3  ;;  %v6461_v16 = vld [vmem:[#allocation7_spill] sm:$0xff]  ;;  %v4599_v41 = vpop.f32.mrf.mxu0 }
 0x2bc   : > { %v3553_v18 = vpop.f32.mrf.mxu1  ;;  %v2750_v39 = vadd.f32 %v6461_v16, %v6460_v47  ;;  %v6483_v47 = vld [vmem:[#allocation47_spill] sm:$0xff] }
 0x2bd   : > { %3714 = vst.msk [vmem:[%s6167_s21 + $0x10] sm:$0xff] %vm456_vm1, %v3682_v21  ;;  %v3680_v17 = vadd.f32 %v3553_v18, %v3366_v12  ;;  %v3372_v21 = vadd.f32 %v6078_v56, %v3058_v63  ;;  %v3376_v56 = vadd.f32 %v6102_v34, %v3062_v8  ;;  %v2749_v34 = vadd.f32 %v5978_v60, %v5976_v0 }
 0x2be   : > { %v4617_v61 = vpop.f32.mrf.mxu1  ;;  %v3375_v12 = vadd.f32 %v6458_v20, %v3061_v43  ;;  %v6477_v43 = vld [vmem:[#allocation45_spill] sm:$0xff] }
 0x2bf   : > { %3712 = vst.msk [vmem:[%s6167_s21] sm:$0xff] %vm456_vm1, %v3680_v17  ;;  %v3683_v14 = vadd.f32 %v4617_v61, %v3369_v31  ;;  %v3064_v18 = vadd.f32 %v6459_v5, %v2749_v34  ;;  %v6462_v31 = vld [vmem:[#allocation52_spill] sm:$0xff]  ;;  %v6463_v17 = vld [vmem:[#allocation41_spill] sm:$0xff] }
 0x2c0   : > { %v3556_v7 = vpop.f32.mrf.mxu1  ;;  %v3380_v63 = vadd.f32 %v6462_v31, %v3066_v11  ;;  %v3067_v61 = vadd.f32 %v6463_v17, %v2752_v10  ;;  %v6479_v11 = vld [vmem:[#allocation17_spill] sm:$0xff]  ;;  %v6480_v10 = vld [vmem:[#allocation46_spill] sm:$0xff] }
 0x2c1   : > { %3715 = vst.msk [vmem:[%s6167_s21 + $0x18] sm:$0xff] %vm456_vm1, %v3683_v14  ;;  %v3681_v25 = vadd.f32 %v3556_v7, %v3367_v15  ;;  %v6464_v15 = vld [vmem:[#allocation8_spill] sm:$0xff]  ;;  %v6466_v7 = vld [vmem:[#allocation55_spill] sm:$0xff]  ;;  %v6485_v17 = vld [vmem:[#allocation21_spill] sm:$0xff] }
 0x2c2   : > { %v4620_v46 = vpop.f32.mrf.mxu1  ;;  %v2755_v14 = vadd.f32 %v6465_v28, %v6464_v15  ;;  %v3378_v57 = vadd.f32 %v6466_v7, %v3064_v18  ;;  %v6482_v18 = vld [vmem:[#allocation19_spill] sm:$0xff] }
 0x2c3   : > { %3713 = vst.msk [vmem:[%s6167_s21 + $0x8] sm:$0xff] %vm456_vm1, %v3681_v25  ;;  %v3686_v23 = vadd.f32 %v4620_v46, %v3372_v21  ;;  %v6467_v21 = vld [vmem:[#allocation42_spill] sm:$0xff]  ;;  %v6488_v7 = vld [vmem:[#allocation23_spill] sm:$0xff] }
 0x2c4   : > { %v3569_v37 = vpop.f32.mrf.mxu1  ;;  %v3065_v52 = vadd.f32 %v6467_v21, %v2750_v39 }
 0x2c5   : > { %3718 = vst.msk [vmem:[%s6167_s21 + $0x30] sm:$0xff] %vm456_vm1, %v3686_v23  ;;  %v3684_v27 = vadd.f32 %v3569_v37, %v3370_v4  ;;  %v6469_v4 = vld [vmem:[#allocation11_spill] sm:$0xff]  ;;  %v6470_v23 = vld [vmem:[#allocation58_spill] sm:$0xff] }
 0x2c6   : > { %v4621_v59 = vpop.f32.mrf.mxu1  ;;  %v2753_v13 = vadd.f32 %v6469_v4, %v6468_v1  ;;  %v3381_v37 = vadd.f32 %v6470_v23, %v3067_v61 }
 0x2c7   : > { %3716 = vst.msk [vmem:[%s6167_s21 + $0x20] sm:$0xff] %vm456_vm1, %v3684_v27  ;;  %v3687_v58 = vadd.f32 %v4621_v59, %v3373_v24  ;;  %v3070_v24 = vadd.f32 %v6471_v26, %v2755_v14  ;;  %v3322_v27 = vpop.f32.mrf.mxu0  ;;  %v6492_v26 = vld [vmem:[#allocation51_spill] sm:$0xff] }
 0x2c8   : > { %v3572_v48 = vpop.f32.mrf.mxu1 }
 0x2c9   : > { %3719 = vst.msk [vmem:[%s6167_s21 + $0x38] sm:$0xff] %vm456_vm1, %v3687_v58  ;;  %v3685_v42 = vadd.f32 %v3572_v48, %v3371_v32  ;;  %v6473_v32 = vld [vmem:[#allocation13_spill] sm:$0xff]  ;;  %v3379_v58 = vadd.f32 %v6149_v62, %v3065_v52  ;;  %v6474_v48 = vld [vmem:[#allocation44_spill] sm:$0xff]  ;;  %v4602_v34 = vpop.f32.mrf.mxu0  ;;  %v6489_v52 = vld [vmem:[#allocation50_spill] sm:$0xff] }
 0x2ca   : > { %v4624_v45 = vpop.f32.mrf.mxu1  ;;  %v2756_v50 = vadd.f32 %v6473_v32, %v6472_v29  ;;  %v3068_v33 = vadd.f32 %v6474_v48, %v2753_v13  ;;  %v6478_v62 = vld [vmem:[#allocation16_spill] sm:$0xff]  ;;  %v6491_v13 = vld [vmem:[#allocation25_spill] sm:$0xff]  ;;  %v6494_v29 = vld [vmem:[#allocation27_spill] sm:$0xff] }
 0x2cb   : > { %3717 = vst.msk [vmem:[%s6167_s21 + $0x28] sm:$0xff] %vm456_vm1, %v3685_v42  ;;  %v3690_v9 = vadd.f32 %v4624_v45, %v3376_v56  ;;  %v6475_v42 = vld [vmem:[#allocation14_spill] sm:$0xff]  ;;  %v6476_v45 = vld [vmem:[#allocation15_spill] sm:$0xff]  ;;  %v3335_v31 = vpop.f32.mrf.mxu0 }
 0x2cc   : > { %v3585_v44 = vpop.f32.mrf.mxu1  ;;  %v2754_v49 = vadd.f32 %v6476_v45, %v6475_v42  ;;  %v6496_v42 = vld [vmem:[#allocation28_spill] sm:$0xff] }
 0x2cd   : > { %3722 = vst.msk [vmem:[%s6167_s21 + $0x50] sm:$0xff] %vm456_vm1, %v3690_v9  ;;  %v3688_v38 = vadd.f32 %v3585_v44, %v3374_v35  ;;  %v3384_v35 = vadd.f32 %v6161_v19, %v3070_v24  ;;  %v3071_v9 = vadd.f32 %v6477_v43, %v2756_v50  ;;  %v6481_v19 = vld [vmem:[#allocation18_spill] sm:$0xff]  ;;  %v4603_v1 = vpop.f32.mrf.mxu0 }
 0x2ce   : > { %v4625_v6 = vpop.f32.mrf.mxu1  ;;  %v3069_v20 = vadd.f32 %v6480_v10, %v2754_v49 }
 0x2cf   : > { %3720 = vst.msk [vmem:[%s6167_s21 + $0x40] sm:$0xff] %vm456_vm1, %v3688_v38  ;;  %v3691_v0 = vadd.f32 %v4625_v6, %v3377_v2  ;;  %v2759_v38 = vadd.f32 %v6479_v11, %v6478_v62  ;;  %v3382_v6 = vadd.f32 %v6171_v36, %v3068_v33  ;;  %v6484_v36 = vld [vmem:[#allocation20_spill] sm:$0xff]  ;;  %v6500_v62 = vld [vmem:[#allocation31_spill] sm:$0xff] }
 0x2d0   : > { %v3588_v60 = vpop.f32.mrf.mxu1  ;;  %v2760_v61 = vadd.f32 %v6485_v17, %v6484_v36 }
 0x2d1   : > { %3723 = vst.msk [vmem:[%s6167_s21 + $0x58] sm:$0xff] %vm456_vm1, %v3691_v0  ;;  %v3689_v3 = vadd.f32 %v3588_v60, %v3375_v12  ;;  %v2757_v0 = vadd.f32 %v6482_v18, %v6481_v19  ;;  %v3385_v60 = vadd.f32 %v6185_v40, %v3071_v9  ;;  %v3074_v16 = vadd.f32 %v6483_v47, %v2759_v38  ;;  %v6487_v40 = vld [vmem:[#allocation22_spill] sm:$0xff] }
 0x2d2   : > { %v4628_v55 = vpop.f32.mrf.mxu1 }
 0x2d3   : > { %3721 = vst.msk [vmem:[%s6167_s21 + $0x48] sm:$0xff] %vm456_vm1, %v3689_v3  ;;  %v3694_v25 = vadd.f32 %v4628_v55, %v3380_v63  ;;  %v3383_v3 = vadd.f32 %v6199_v22, %v3069_v20  ;;  %v6486_v55 = vld [vmem:[#allocation48_spill] sm:$0xff]  ;;  %v3388_v21 = vadd.f32 %v6213_v51, %v3074_v16  ;;  %v6493_v51 = vld [vmem:[#allocation26_spill] sm:$0xff] }
 0x2d4   : > { %v3601_v46 = vpop.f32.mrf.mxu1  ;;  %v3072_v15 = vadd.f32 %v6486_v55, %v2757_v0  ;;  %v6490_v22 = vld [vmem:[#allocation24_spill] sm:$0xff]  ;;  %v2761_v32 = vadd.f32 %v6494_v29, %v6493_v51  ;;  %v6504_v0 = vld [vmem:[#allocation57_spill] sm:$0xff] }
 0x2d5   : > { %3726 = vst.msk [vmem:[%s6167_s21 + $0x70] sm:$0xff] %vm456_vm1, %v3694_v25  ;;  %v3692_v8 = vadd.f32 %v3601_v46, %v3378_v57  ;;  %v2758_v57 = vadd.f32 %v6488_v7, %v6487_v40  ;;  %v3075_v25 = vadd.f32 %v6489_v52, %v2760_v61  ;;  %v2763_v23 = vadd.f32 %v6491_v13, %v6490_v22  ;;  %v6507_v61 = vld [vmem:[#allocation59_spill] sm:$0xff]  ;;  %v6510_v7 = vld [vmem:[#allocation60_spill] sm:$0xff]  ;;  %v6513_v13 = vld [vmem:[#allocation61_spill] sm:$0xff] }
 0x2d6   : > { %v4629_v59 = vpop.f32.mrf.mxu1 }
 0x2d7   : > { %3724 = vst.msk [vmem:[%s6167_s21 + $0x60] sm:$0xff] %vm456_vm1, %v3692_v8  ;;  %v3695_v56 = vadd.f32 %v4629_v59, %v3381_v37  ;;  %v3386_v37 = vadd.f32 %v6227_v30, %v3072_v15  ;;  %v3073_v24 = vadd.f32 %v6492_v26, %v2758_v57  ;;  %v3389_v50 = vadd.f32 %v4599_v41, %v3075_v25  ;;  %v6497_v30 = vld [vmem:[#allocation29_spill] sm:$0xff] }
 0x2d8   : > { %v3604_v53 = vpop.f32.mrf.mxu1  ;;  %v2764_v45 = vadd.f32 %v6497_v30, %v6496_v42 }
 0x2d9   : > { %3727 = vst.msk [vmem:[%s6167_s21 + $0x78] sm:$0xff] %vm456_vm1, %v3695_v56  ;;  %v3693_v44 = vadd.f32 %v3604_v53, %v3379_v58  ;;  %v6495_v58 = vld [vmem:[#allocation53_spill] sm:$0xff]  ;;  %v3338_v56 = vpop.f32.mrf.mxu0  ;;  %v3387_v49 = vadd.f32 %v3322_v27, %v3073_v24 }
 0x2da   : > { %v4632_v2 = vpop.f32.mrf.mxu1  ;;  %v3078_v48 = vadd.f32 %v6495_v58, %v2763_v23  ;;  %v6503_v27 = vld [vmem:[#allocation33_spill] sm:$0xff] }
 0x2db   : > { %3725 = vst.msk [vmem:[%s6167_s21 + $0x68] sm:$0xff] %vm456_vm1, %v3693_v44  ;;  %v3698_v12 = vadd.f32 %v4632_v2, %v3384_v35  ;;  %v6498_v35 = vld [vmem:[#allocation54_spill] sm:$0xff]  ;;  %v4606_v44 = vpop.f32.mrf.mxu0 }
 0x2dc   : > { %v3617_v5 = vpop.f32.mrf.mxu1  ;;  %v3076_v43 = vadd.f32 %v6498_v35, %v2761_v32  ;;  %v6499_v2 = vld [vmem:[#allocation30_spill] sm:$0xff]  ;;  %v3392_v38 = vadd.f32 %v4602_v34, %v3078_v48  ;;  %v6506_v34 = vld [vmem:[#allocation35_spill] sm:$0xff] }
 0x2dd   : > { %3730 = vst.msk [vmem:[%s6167_s21 + $0x90] sm:$0xff] %vm456_vm1, %v3698_v12  ;;  %v3696_v39 = vadd.f32 %v3617_v5, %v3382_v6  ;;  %v2762_v11 = vadd.f32 %v6500_v62, %v6499_v2  ;;  %v6501_v6 = vld [vmem:[#allocation56_spill] sm:$0xff]  ;;  %v3351_v16 = vpop.f32.mrf.mxu0 }
 0x2de   : > { %v4633_v63 = vpop.f32.mrf.mxu1  ;;  %v3079_v10 = vadd.f32 %v6501_v6, %v2764_v45  ;;  %v6502_v5 = vld [vmem:[#allocation32_spill] sm:$0xff]  ;;  %v3390_v18 = vadd.f32 %v3335_v31, %v3076_v43  ;;  %v6509_v31 = vld [vmem:[#allocation37_spill] sm:$0xff] }
 0x2df   : > { %3728 = vst.msk [vmem:[%s6167_s21 + $0x80] sm:$0xff] %vm456_vm1, %v3696_v39  ;;  %v3699_v28 = vadd.f32 %v4633_v63, %v3385_v60  ;;  %v2767_v19 = vadd.f32 %v6503_v27, %v6502_v5  ;;  %v3077_v60 = vadd.f32 %v6504_v0, %v2762_v11  ;;  %v6505_v63 = vld [vmem:[#allocation34_spill] sm:$0xff]  ;;  %v4607_v52 = vpop.f32.mrf.mxu0 }
 0x2e0   : > { %v3620_v14 = vpop.f32.mrf.mxu1  ;;  %v2765_v36 = vadd.f32 %v6506_v34, %v6505_v63  ;;  %v3393_v17 = vadd.f32 %v4603_v1, %v3079_v10  ;;  %v6512_v1 = vld [vmem:[#allocation39_spill] sm:$0xff] }
 0x2e1   : > { %3731 = vst.msk [vmem:[%s6167_s21 + $0x98] sm:$0xff] %vm456_vm1, %v3699_v28  ;;  %v3697_v46 = vadd.f32 %v3620_v14, %v3383_v3  ;;  %v3082_v3 = vadd.f32 %v6507_v61, %v2767_v19  ;;  %v6508_v28 = vld [vmem:[#allocation36_spill] sm:$0xff]  ;;  %v3391_v40 = vadd.f32 %v3338_v56, %v3077_v60  ;;  %v3354_v51 = vpop.f32.mrf.mxu0 }
 0x2e2   : > { %v4636_v4 = vpop.f32.mrf.mxu1  ;;  %v2768_v14 = vadd.f32 %v6509_v31, %v6508_v28  ;;  %v3080_v57 = vadd.f32 %v6510_v7, %v2765_v36 }
 0x2e3   : > { %3729 = vst.msk [vmem:[%s6167_s21 + $0x88] sm:$0xff] %vm456_vm1, %v3697_v46  ;;  %v3702_v8 = vadd.f32 %v4636_v4, %v3388_v21  ;;  %v6511_v46 = vld [vmem:[#allocation38_spill] sm:$0xff]  ;;  %v3396_v22 = vadd.f32 %v4606_v44, %v3082_v3 }
 0x2e4   : > { %v3633_v59 = vpop.f32.mrf.mxu1  ;;  %v2766_v4 = vadd.f32 %v6512_v1, %v6511_v46  ;;  %v3083_v23 = vadd.f32 %v6513_v13, %v2768_v14  ;;  %v3394_v24 = vadd.f32 %v3351_v16, %v3080_v57 }
 0x2e5   : > { %3734 = vst.msk [vmem:[%s6167_s21 + $0xb0] sm:$0xff] %vm456_vm1, %v3702_v8  ;;  %v3700_v33 = vadd.f32 %v3633_v59, %v3386_v37 }
 0x2e6   : > { %v4637_v53 = vpop.f32.mrf.mxu1  ;;  %v3081_v8 = vadd.f32 %v6157_v54, %v2766_v4  ;;  %v3397_v32 = vadd.f32 %v4607_v52, %v3083_v23 }
 0x2e7   : > { %3732 = vst.msk [vmem:[%s6167_s21 + $0xa0] sm:$0xff] %vm456_vm1, %v3700_v33  ;;  %v3703_v9 = vadd.f32 %v4637_v53, %v3389_v50 }
 0x2e8   : > { %v3636_v41 = vpop.f32.mrf.mxu1  ;;  %v3395_v48 = vadd.f32 %v3354_v51, %v3081_v8 }
 0x2e9   : > { %3735 = vst.msk [vmem:[%s6167_s21 + $0xb8] sm:$0xff] %vm456_vm1, %v3703_v9  ;;  %v3701_v20 = vadd.f32 %v3636_v41, %v3387_v49 }
 0x2ea   : > { %v4640_v12 = vpop.f32.mrf.mxu1 }
 0x2eb   : > { %3733 = vst.msk [vmem:[%s6167_s21 + $0xa8] sm:$0xff] %vm456_vm1, %v3701_v20  ;;  %v3706_v47 = vadd.f32 %v4640_v12, %v3392_v38 }
 0x2ec   : > { %v3649_v39 = vpop.f32.mrf.mxu1 }
 0x2ed   : > { %3738 = vst.msk [vmem:[%s6167_s21 + $0xd0] sm:$0xff] %vm456_vm1, %v3706_v47  ;;  %v3704_v55 = vadd.f32 %v3649_v39, %v3390_v18 }
 0x2ee   : > { %v4641_v15 = vpop.f32.mrf.mxu1 }
 0x2ef   : > { %3736 = vst.msk [vmem:[%s6167_s21 + $0xc0] sm:$0xff] %vm456_vm1, %v3704_v55  ;;  %v3707_v21 = vadd.f32 %v4641_v15, %v3393_v17 }
 0x2f0   : > { %v3652_v25 = vpop.f32.mrf.mxu1 }
 0x2f1   : > { %3739 = vst.msk [vmem:[%s6167_s21 + $0xd8] sm:$0xff] %vm456_vm1, %v3707_v21  ;;  %v3705_v37 = vadd.f32 %v3652_v25, %v3391_v40 }
 0x2f2   : > { %v4644_v26 = vpop.f32.mrf.mxu1 }
 0x2f3   : > { %3737 = vst.msk [vmem:[%s6167_s21 + $0xc8] sm:$0xff] %vm456_vm1, %v3705_v37  ;;  %v3710_v59 = vadd.f32 %v4644_v26, %v3396_v22 }
 0x2f4   : > { %v3665_v29 = vpop.f32.mrf.mxu1 }
 0x2f5   : > { %3742 = vst.msk [vmem:[%s6167_s21 + $0xf0] sm:$0xff] %vm456_vm1, %v3710_v59  ;;  %v3708_v50 = vadd.f32 %v3665_v29, %v3394_v24 }
 0x2f6   : > { %v4645_v58 = vpop.f32.mrf.mxu1 }
 0x2f7   : > { %3740 = vst.msk [vmem:[%s6167_s21 + $0xe0] sm:$0xff] %vm456_vm1, %v3708_v50  ;;  %v3711_v54 = vadd.f32 %v4645_v58, %v3397_v32 }
 0x2f8   : > { %v3668_v33 = vpop.f32.mrf.mxu1 }
 0x2f9   : > { %3743 = vst.msk [vmem:[%s6167_s21 + $0xf8] sm:$0xff] %vm456_vm1, %v3711_v54  ;;  %v3709_v56 = vadd.f32 %v3668_v33, %v3395_v48 }
 0x2fb   : > { %3741 = vst.msk [vmem:[%s6167_s21 + $0xe8] sm:$0xff] %vm456_vm1, %v3709_v56 }
 0x2fc   : > { %4764 = shalt.err (!%p4761_p3)
}
 0x2fd   : > { %s4765_s18 = scalar_lea.hbm %s6342_s9, 4096  ;;  %s4769_s20 = scalar_lea.hbm %s6399_s7, 8192 }
 0x2fe   : > { %p4766_p4 = scmp.ne.s32.totalorder %s6342_s9, %s4765_s18  ;;  %p4770_p9 = scmp.lt.s32.totalorder %s6342_s9, %s6399_s7 }
 0x2ff   : > { %p4771_p10 = scmp.lt.s32.totalorder %s4769_s20, %s4765_s18 }
 0x300   : > { %p4767_p7 = pnand %p4766_p4, %p4895_p5 }
 0x301   : > { %p4772_p11 = por %p4771_p10, %p4770_p9 }
 0x302   : > { %p4768_p8 = pneg %p4767_p7 }
 0x304   : > { %p4773_p12 = pnand %p4772_p11, %p4768_p8 }
 0x306   : > { %4776 = shalt.err (!%p4773_p12)
}
 0x307   : > { %s4815_s29 = smov 128   ;;  %s4816_s8 = smov 8  }
 0x308   : > { %4647 = dma.vmem_to_hbm [thread:$0]  (%p4895_p5), %s6344_s23, 4096, %s6342_s9, %s6352_s28, %s4815_s29, %s4815_s29, %s4816_s8  }
 0x309 PF: > { %p4653_p13 = scmp.ge.s32.totalorder %s4811_s27, 2  ;;  %s3773_s14 = sand.u32 1, %s4799_s24  }
 0x30a   : > { %s3774_s15 = scalar_lea.sflag [#allocation4], %s3773_s14 }
 0x30b   : > { %p4650_p0 = pnand %p4653_p13, %p4899_p6 }
 0x30d   : > { %p4651_p1 = pneg %p4650_p0 }
 0x30f   : > { %4794 = dma.done.wait (%p4651_p1), %s3774_s15, 4096  }
 0x310   : > { %4796 = vsyncadd (%p4651_p1), %s3774_s15, 4294963200  ;;  %p17_p2 = scmp.ge.s32.totalorder %s4882_s30, 4   ;;  %s6514_s24 = smov %s4803_s25 }
 0x311   : > { %s6515_s25 = smov %s4807_s26  ;;  %s6516_s26 = smov %s4893_s10 }
 0x312   : > { %s6517_s27 = smov %s4882_s30  ;;  %19 = sbr.rel (!%p17_p2) target bundleno = 3 (0x3), region = 93 }
 0x317   :  { %3779 = vsyncpa [#allocation4], 1 }
 0x318   :  { %3781 = vsyncpa [#allocation4 + $0x1], 1 }

</bundles_post_ra>
